<compile_context>
chip_gen: v6e
topology: v6e:2x2x1
jax: 0.10.0
libtpu: 0.0.40
codegen_flags: <defaults>
</compile_context>

<pallas_src>
import jax
import jax.numpy as jnp
from jax import lax
from jax.experimental import pallas as pl
from jax.experimental.pallas import tpu as pltpu

_NEG_SLOPE = 0.2
# source row/col offset d in the padded image -> (phase_half, tap_half) users
_TAP_USERS = {0: ((0, 0),), 1: ((0, 1), (1, 0)), 2: ((1, 1),)}


def _make_kernel(TH, W, C):
    THW = TH * W

    def kernel(xp_ref, w_ref, b_ref, o_ref):
        # xp_ref: [1, H+2, W+2, C]   replicate-padded image (resident per batch elem)
        # w_ref : [4, 4, C, C]       [phase = py*2+px, tap = a*2+b, cin, cout]
        # b_ref : [1, C]             f32 bias
        # o_ref : [1, 2, 2, TH*W, C] per-phase outputs for this row tile
        r0 = pl.multiple_of(pl.program_id(1) * TH, TH)

        accs = [[jnp.zeros((THW, C), jnp.float32) for _ in range(2)]
                for _ in range(2)]
        # 9 shifted source slabs; each feeds 1/2/4 phase accumulators (16 matmuls).
        for dy in range(3):
            for dx in range(3):
                slab = xp_ref[0, pl.ds(r0 + dy, TH), dx:dx + W, :]
                slab = slab.reshape(THW, C)          # GEMM LHS, native dtype
                for py, a in _TAP_USERS[dy]:
                    for px, b in _TAP_USERS[dx]:
                        accs[py][px] += jnp.dot(
                            slab, w_ref[py * 2 + px, a * 2 + b],
                            preferred_element_type=jnp.float32)

        bias = b_ref[...]                            # [1, C] f32
        for py in range(2):
            for px in range(2):
                y = accs[py][px] + bias
                y = jnp.maximum(y, _NEG_SLOPE * y)   # LeakyReLU(0.2)
                o_ref[0, py, px] = y.astype(o_ref.dtype)

    return kernel


def _round_up(x, m):
    return ((x + m - 1) // m) * m


def _pick_row_tile(H, W, C, itemsize, budget_bytes):
    """Largest divisor of H whose row-tile working set fits the budget."""
    cp = _round_up(C, 128)                           # lane-padded channels
    for th in range(H, 0, -1):
        if H % th:
            continue
        if th != H and (th * W) % 8:                 # out-block sublane constraint
            continue
        tile_bytes = _round_up(th * W, 8) * cp * (
            2 * 4 * itemsize                         # double-buffered out block (4 phases)
            + 4 * 4                                  # 4 f32 accumulators
            + itemsize + 4)                          # live slab + slack
        if tile_bytes <= budget_bytes:
            return th
    return H


def up2x_pallas(x_nchw, weight, bias):
    """Mirrors Up2x.forward(x). x_nchw: [B,C,H,W]; weight: [C,C,3,3]; bias: [C]."""
    B, C, H, W = x_nchw.shape
    dtype = x_nchw.dtype
    itemsize = jnp.dtype(dtype).itemsize

    # ---- wrapper-side layout plumbing --------------------------------------
    x_nhwc = jnp.transpose(x_nchw, (0, 2, 3, 1))                       # [B,H,W,C]
    xp = jnp.pad(x_nhwc, ((0, 0), (1, 1), (1, 1), (0, 0)), mode="edge")

    # Fold nearest-2x into the conv: per output parity (py,px), sum the 3x3 taps
    # that land on the same source pixel -> [2,2,2,2,Cin,Cout] effective kernels.
    w_hwio = jnp.transpose(weight, (2, 3, 1, 0)).astype(jnp.float32)   # [3,3,Ci,Co]
    sel = jnp.array([[[1., 0., 0.], [0., 1., 1.]],                     # phase 0 groups
                     [[1., 1., 0.], [0., 0., 1.]]], jnp.float32)       # phase 1 groups
    w_eff = jnp.einsum("pad,qbe,decf->pqabcf", sel, sel, w_hwio)       # [2,2,2,2,Ci,Co]
    w_eff = w_eff.reshape(4, 4, C, C).astype(dtype)
    b2d = bias.reshape(1, C).astype(jnp.float32)

    # ---- per-generation VMEM budget + row tile ------------------------------
    try:
        vmem_cap = int(pltpu.get_tpu_info().vmem_capacity_bytes)
    except Exception:
        vmem_cap = 64 << 20                       # conservative fallback
    cap = int(vmem_cap * 0.85)                    # headroom for compiler scratch
    TH = _pick_row_tile(H, W, C, itemsize, min(16 << 20, cap // 4))
    THW = TH * W

    cp = _round_up(C, 128)
    resident = itemsize * (2 * (H + 2) * _round_up(W + 2, 8) * cp      # padded input x2
                           + 2 * 16 * _round_up(C, 8) * cp)            # phase weights x2
    tile = _round_up(THW, 8) * cp * (2 * 4 * itemsize + 4 * 4 + itemsize + 4)
    vmem_limit = int(min(max(int(1.25 * (resident + tile)), 32 << 20), cap))

    out = pl.pallas_call(
        _make_kernel(TH, W, C),
        out_shape=jax.ShapeDtypeStruct((B, 2, 2, H * W, C), dtype),
        grid_spec=pltpu.PrefetchScalarGridSpec(
            num_scalar_prefetch=0,
            grid=(B, H // TH),
            in_specs=[
                pl.BlockSpec((1, H + 2, W + 2, C), lambda b, r: (b, 0, 0, 0)),
                pl.BlockSpec((4, 4, C, C), lambda b, r: (0, 0, 0, 0)),
                pl.BlockSpec((1, C), lambda b, r: (0, 0)),
            ],
            out_specs=pl.BlockSpec((1, 2, 2, THW, C),
                                   lambda b, r: (b, 0, 0, r, 0)),
        ),
        compiler_params=pltpu.CompilerParams(
            dimension_semantics=("parallel", "arbitrary"),
            vmem_limit_bytes=vmem_limit,
        ),
    )(xp, w_eff, b2d)

    # [B, py, px, H*W, C] -> NCHW [B, C, 2H, 2W] (one XLA transpose, wrapper-side).
    y = out.reshape(B, 2, 2, H, W, C)
    y = jnp.transpose(y, (0, 5, 3, 1, 4, 2))                           # [B,C,H,py,W,px]
    return y.reshape(B, C, 2 * H, 2 * W)


def _reference(x_nchw, weight, bias):
    """Pure-JAX reference (independent code path) for correctness checking."""
    up = jnp.repeat(jnp.repeat(x_nchw, 2, axis=2), 2, axis=3)
    up = jnp.pad(up, ((0, 0), (0, 0), (1, 1), (1, 1)), mode="edge")
    lhs = jnp.transpose(up, (0, 2, 3, 1))                              # NHWC
    rhs = jnp.transpose(weight, (2, 3, 1, 0))                          # HWIO
    y = lax.conv_general_dilated(
        lhs, rhs, window_strides=(1, 1), padding="VALID",
        dimension_numbers=("NHWC", "HWIO", "NHWC"),
        precision=lax.Precision.HIGHEST)
    y = y + bias[None, None, None, :]
    y = jnp.where(y >= 0.0, y, _NEG_SLOPE * y)
    return jnp.transpose(y, (0, 3, 1, 2))                              # NCHW


if __name__ == "__main__":
    key = jax.random.PRNGKey(0)
    kx, kw, kb = jax.random.split(key, 3)

    B, C, H, W = 2, 4, 16, 16
    x = jax.random.uniform(kx, (B, C, H, W), jnp.float32)

    # Conv2d-style init (uniform in +/- 1/sqrt(fan_in)), deterministic.
    fan_in = C * 3 * 3
    bound = 1.0 / (fan_in ** 0.5)
    weight = jax.random.uniform(kw, (C, C, 3, 3), jnp.float32,
                                minval=-bound, maxval=bound)
    bias = jax.random.uniform(kb, (C,), jnp.float32, minval=-bound, maxval=bound)

    up2x = jax.jit(up2x_pallas)
    out = jax.block_until_ready(up2x(x, weight, bias))

    ref = _reference(x, weight, bias)
    assert out.shape == (B, C, 2 * H, 2 * W), out.shape
    max_err = float(jnp.max(jnp.abs(out - ref)))
    assert max_err < 1e-2, f"max abs error vs reference: {max_err}"
    print("KERNEL_OK")
</pallas_src>

<mosaic_0001>
module attributes {stable_mosaic.version = 11 : i64} {
  func.func @kernel(%arg0: i32, %arg1: i32, %arg2: memref<1x18x18x4xf32, #tpu.memory_space<vmem>>, %arg3: memref<4x4x4x4xf32, #tpu.memory_space<vmem>>, %arg4: memref<1x4xf32, #tpu.memory_space<vmem>>, %arg5: memref<1x2x2x256x4xf32, #tpu.memory_space<vmem>>) attributes {dimension_semantics = [#tpu.dimension_semantics<parallel>, #tpu.dimension_semantics<arbitrary>], iteration_bounds = array<i64: 2, 1>, scalar_prefetch = 0 : i64, scratch_operands = 0 : i64, tpu.core_type = #tpu.core_type<tc>, window_params = [{transform_indices = @transform_0, window_bounds = array<i64: 1, 18, 18, 4>}, {pipeline_mode = #tpu.pipeline_mode<synchronous>, transform_indices = @transform_1, window_bounds = array<i64: 4, 4, 4, 4>}, {pipeline_mode = #tpu.pipeline_mode<synchronous>, transform_indices = @transform_2, window_bounds = array<i64: 1, 4>}, {transform_indices = @transform_3, window_bounds = array<i64: 1, 2, 2, 256, 4>}]} {
    %c16_i32 = arith.constant 16 : i32
    %0 = arith.muli %arg1, %c16_i32 : i32
    %1 = tpu.assume_multiple %0, 16 : i32
    %cst = arith.constant 0.000000e+00 : f32
    %2 = vector.broadcast %cst : f32 to vector<256x4xf32>
    %cst_0 = arith.constant 0.000000e+00 : f32
    %3 = vector.broadcast %cst_0 : f32 to vector<256x4xf32>
    %cst_1 = arith.constant 0.000000e+00 : f32
    %4 = vector.broadcast %cst_1 : f32 to vector<256x4xf32>
    %cst_2 = arith.constant 0.000000e+00 : f32
    %5 = vector.broadcast %cst_2 : f32 to vector<256x4xf32>
    %c0_i32 = arith.constant 0 : i32
    %6 = arith.addi %1, %c0_i32 : i32
    %c0 = arith.constant 0 : index
    %7 = arith.index_cast %6 : i32 to index
    %c0_3 = arith.constant 0 : index
    %c0_4 = arith.constant 0 : index
    %8 = vector.load %arg2[%c0, %7, %c0_3, %c0_4] : memref<1x18x18x4xf32, #tpu.memory_space<vmem>>, vector<1x16x16x4xf32>
    %9 = vector.shape_cast %8 : vector<1x16x16x4xf32> to vector<16x16x4xf32>
    %10 = vector.shape_cast %9 : vector<16x16x4xf32> to vector<256x4xf32>
    %c0_5 = arith.constant 0 : index
    %c0_6 = arith.constant 0 : index
    %c0_7 = arith.constant 0 : index
    %c0_8 = arith.constant 0 : index
    %11 = vector.load %arg3[%c0_5, %c0_6, %c0_7, %c0_8] : memref<4x4x4x4xf32, #tpu.memory_space<vmem>>, vector<1x1x4x4xf32>
    %12 = vector.shape_cast %11 : vector<1x1x4x4xf32> to vector<4x4xf32>
    %cst_9 = arith.constant dense<0.000000e+00> : vector<256x4xf32>
    %13 = tpu.matmul %10, %12, %cst_9 {dimension_numbers = #tpu.dot_dimension_numbers<[1], [0], [0], [1], [0, 0, 1, 1], [], []>} : vector<256x4xf32>, vector<4x4xf32>, vector<256x4xf32> -> vector<256x4xf32>
    %14 = arith.addf %2, %13 : vector<256x4xf32>
    %c0_i32_10 = arith.constant 0 : i32
    %15 = arith.addi %1, %c0_i32_10 : i32
    %c0_11 = arith.constant 0 : index
    %16 = arith.index_cast %15 : i32 to index
    %c1 = arith.constant 1 : index
    %c0_12 = arith.constant 0 : index
    %17 = vector.load %arg2[%c0_11, %16, %c1, %c0_12] : memref<1x18x18x4xf32, #tpu.memory_space<vmem>>, vector<1x16x16x4xf32>
    %18 = vector.shape_cast %17 : vector<1x16x16x4xf32> to vector<16x16x4xf32>
    %19 = vector.shape_cast %18 : vector<16x16x4xf32> to vector<256x4xf32>
    %c0_13 = arith.constant 0 : index
    %c1_14 = arith.constant 1 : index
    %c0_15 = arith.constant 0 : index
    %c0_16 = arith.constant 0 : index
    %20 = vector.load %arg3[%c0_13, %c1_14, %c0_15, %c0_16] : memref<4x4x4x4xf32, #tpu.memory_space<vmem>>, vector<1x1x4x4xf32>
    %21 = vector.shape_cast %20 : vector<1x1x4x4xf32> to vector<4x4xf32>
    %cst_17 = arith.constant dense<0.000000e+00> : vector<256x4xf32>
    %22 = tpu.matmul %19, %21, %cst_17 {dimension_numbers = #tpu.dot_dimension_numbers<[1], [0], [0], [1], [0, 0, 1, 1], [], []>} : vector<256x4xf32>, vector<4x4xf32>, vector<256x4xf32> -> vector<256x4xf32>
    %23 = arith.addf %14, %22 : vector<256x4xf32>
    %c1_18 = arith.constant 1 : index
    %c0_19 = arith.constant 0 : index
    %c0_20 = arith.constant 0 : index
    %c0_21 = arith.constant 0 : index
    %24 = vector.load %arg3[%c1_18, %c0_19, %c0_20, %c0_21] : memref<4x4x4x4xf32, #tpu.memory_space<vmem>>, vector<1x1x4x4xf32>
    %25 = vector.shape_cast %24 : vector<1x1x4x4xf32> to vector<4x4xf32>
    %cst_22 = arith.constant dense<0.000000e+00> : vector<256x4xf32>
    %26 = tpu.matmul %19, %25, %cst_22 {dimension_numbers = #tpu.dot_dimension_numbers<[1], [0], [0], [1], [0, 0, 1, 1], [], []>} : vector<256x4xf32>, vector<4x4xf32>, vector<256x4xf32> -> vector<256x4xf32>
    %27 = arith.addf %3, %26 : vector<256x4xf32>
    %c0_i32_23 = arith.constant 0 : i32
    %28 = arith.addi %1, %c0_i32_23 : i32
    %c0_24 = arith.constant 0 : index
    %29 = arith.index_cast %28 : i32 to index
    %c2 = arith.constant 2 : index
    %c0_25 = arith.constant 0 : index
    %30 = vector.load %arg2[%c0_24, %29, %c2, %c0_25] : memref<1x18x18x4xf32, #tpu.memory_space<vmem>>, vector<1x16x16x4xf32>
    %31 = vector.shape_cast %30 : vector<1x16x16x4xf32> to vector<16x16x4xf32>
    %32 = vector.shape_cast %31 : vector<16x16x4xf32> to vector<256x4xf32>
    %c1_26 = arith.constant 1 : index
    %c1_27 = arith.constant 1 : index
    %c0_28 = arith.constant 0 : index
    %c0_29 = arith.constant 0 : index
    %33 = vector.load %arg3[%c1_26, %c1_27, %c0_28, %c0_29] : memref<4x4x4x4xf32, #tpu.memory_space<vmem>>, vector<1x1x4x4xf32>
    %34 = vector.shape_cast %33 : vector<1x1x4x4xf32> to vector<4x4xf32>
    %cst_30 = arith.constant dense<0.000000e+00> : vector<256x4xf32>
    %35 = tpu.matmul %32, %34, %cst_30 {dimension_numbers = #tpu.dot_dimension_numbers<[1], [0], [0], [1], [0, 0, 1, 1], [], []>} : vector<256x4xf32>, vector<4x4xf32>, vector<256x4xf32> -> vector<256x4xf32>
    %36 = arith.addf %27, %35 : vector<256x4xf32>
    %c1_i32 = arith.constant 1 : i32
    %37 = arith.addi %1, %c1_i32 : i32
    %c0_31 = arith.constant 0 : index
    %38 = arith.index_cast %37 : i32 to index
    %c0_32 = arith.constant 0 : index
    %c0_33 = arith.constant 0 : index
    %39 = vector.load %arg2[%c0_31, %38, %c0_32, %c0_33] : memref<1x18x18x4xf32, #tpu.memory_space<vmem>>, vector<1x16x16x4xf32>
    %40 = vector.shape_cast %39 : vector<1x16x16x4xf32> to vector<16x16x4xf32>
    %41 = vector.shape_cast %40 : vector<16x16x4xf32> to vector<256x4xf32>
    %c0_34 = arith.constant 0 : index
    %c2_35 = arith.constant 2 : index
    %c0_36 = arith.constant 0 : index
    %c0_37 = arith.constant 0 : index
    %42 = vector.load %arg3[%c0_34, %c2_35, %c0_36, %c0_37] : memref<4x4x4x4xf32, #tpu.memory_space<vmem>>, vector<1x1x4x4xf32>
    %43 = vector.shape_cast %42 : vector<1x1x4x4xf32> to vector<4x4xf32>
    %cst_38 = arith.constant dense<0.000000e+00> : vector<256x4xf32>
    %44 = tpu.matmul %41, %43, %cst_38 {dimension_numbers = #tpu.dot_dimension_numbers<[1], [0], [0], [1], [0, 0, 1, 1], [], []>} : vector<256x4xf32>, vector<4x4xf32>, vector<256x4xf32> -> vector<256x4xf32>
    %45 = arith.addf %23, %44 : vector<256x4xf32>
    %c2_39 = arith.constant 2 : index
    %c0_40 = arith.constant 0 : index
    %c0_41 = arith.constant 0 : index
    %c0_42 = arith.constant 0 : index
    %46 = vector.load %arg3[%c2_39, %c0_40, %c0_41, %c0_42] : memref<4x4x4x4xf32, #tpu.memory_space<vmem>>, vector<1x1x4x4xf32>
    %47 = vector.shape_cast %46 : vector<1x1x4x4xf32> to vector<4x4xf32>
    %cst_43 = arith.constant dense<0.000000e+00> : vector<256x4xf32>
    %48 = tpu.matmul %41, %47, %cst_43 {dimension_numbers = #tpu.dot_dimension_numbers<[1], [0], [0], [1], [0, 0, 1, 1], [], []>} : vector<256x4xf32>, vector<4x4xf32>, vector<256x4xf32> -> vector<256x4xf32>
    %49 = arith.addf %4, %48 : vector<256x4xf32>
    %c1_i32_44 = arith.constant 1 : i32
    %50 = arith.addi %1, %c1_i32_44 : i32
    %c0_45 = arith.constant 0 : index
    %51 = arith.index_cast %50 : i32 to index
    %c1_46 = arith.constant 1 : index
    %c0_47 = arith.constant 0 : index
    %52 = vector.load %arg2[%c0_45, %51, %c1_46, %c0_47] : memref<1x18x18x4xf32, #tpu.memory_space<vmem>>, vector<1x16x16x4xf32>
    %53 = vector.shape_cast %52 : vector<1x16x16x4xf32> to vector<16x16x4xf32>
    %54 = vector.shape_cast %53 : vector<16x16x4xf32> to vector<256x4xf32>
    %c0_48 = arith.constant 0 : index
    %c3 = arith.constant 3 : index
    %c0_49 = arith.constant 0 : index
    %c0_50 = arith.constant 0 : index
    %55 = vector.load %arg3[%c0_48, %c3, %c0_49, %c0_50] : memref<4x4x4x4xf32, #tpu.memory_space<vmem>>, vector<1x1x4x4xf32>
    %56 = vector.shape_cast %55 : vector<1x1x4x4xf32> to vector<4x4xf32>
    %cst_51 = arith.constant dense<0.000000e+00> : vector<256x4xf32>
    %57 = tpu.matmul %54, %56, %cst_51 {dimension_numbers = #tpu.dot_dimension_numbers<[1], [0], [0], [1], [0, 0, 1, 1], [], []>} : vector<256x4xf32>, vector<4x4xf32>, vector<256x4xf32> -> vector<256x4xf32>
    %58 = arith.addf %45, %57 : vector<256x4xf32>
    %c1_52 = arith.constant 1 : index
    %c2_53 = arith.constant 2 : index
    %c0_54 = arith.constant 0 : index
    %c0_55 = arith.constant 0 : index
    %59 = vector.load %arg3[%c1_52, %c2_53, %c0_54, %c0_55] : memref<4x4x4x4xf32, #tpu.memory_space<vmem>>, vector<1x1x4x4xf32>
    %60 = vector.shape_cast %59 : vector<1x1x4x4xf32> to vector<4x4xf32>
    %cst_56 = arith.constant dense<0.000000e+00> : vector<256x4xf32>
    %61 = tpu.matmul %54, %60, %cst_56 {dimension_numbers = #tpu.dot_dimension_numbers<[1], [0], [0], [1], [0, 0, 1, 1], [], []>} : vector<256x4xf32>, vector<4x4xf32>, vector<256x4xf32> -> vector<256x4xf32>
    %62 = arith.addf %36, %61 : vector<256x4xf32>
    %c2_57 = arith.constant 2 : index
    %c1_58 = arith.constant 1 : index
    %c0_59 = arith.constant 0 : index
    %c0_60 = arith.constant 0 : index
    %63 = vector.load %arg3[%c2_57, %c1_58, %c0_59, %c0_60] : memref<4x4x4x4xf32, #tpu.memory_space<vmem>>, vector<1x1x4x4xf32>
    %64 = vector.shape_cast %63 : vector<1x1x4x4xf32> to vector<4x4xf32>
    %cst_61 = arith.constant dense<0.000000e+00> : vector<256x4xf32>
    %65 = tpu.matmul %54, %64, %cst_61 {dimension_numbers = #tpu.dot_dimension_numbers<[1], [0], [0], [1], [0, 0, 1, 1], [], []>} : vector<256x4xf32>, vector<4x4xf32>, vector<256x4xf32> -> vector<256x4xf32>
    %66 = arith.addf %49, %65 : vector<256x4xf32>
    %c3_62 = arith.constant 3 : index
    %c0_63 = arith.constant 0 : index
    %c0_64 = arith.constant 0 : index
    %c0_65 = arith.constant 0 : index
    %67 = vector.load %arg3[%c3_62, %c0_63, %c0_64, %c0_65] : memref<4x4x4x4xf32, #tpu.memory_space<vmem>>, vector<1x1x4x4xf32>
    %68 = vector.shape_cast %67 : vector<1x1x4x4xf32> to vector<4x4xf32>
    %cst_66 = arith.constant dense<0.000000e+00> : vector<256x4xf32>
    %69 = tpu.matmul %54, %68, %cst_66 {dimension_numbers = #tpu.dot_dimension_numbers<[1], [0], [0], [1], [0, 0, 1, 1], [], []>} : vector<256x4xf32>, vector<4x4xf32>, vector<256x4xf32> -> vector<256x4xf32>
    %70 = arith.addf %5, %69 : vector<256x4xf32>
    %c1_i32_67 = arith.constant 1 : i32
    %71 = arith.addi %1, %c1_i32_67 : i32
    %c0_68 = arith.constant 0 : index
    %72 = arith.index_cast %71 : i32 to index
    %c2_69 = arith.constant 2 : index
    %c0_70 = arith.constant 0 : index
    %73 = vector.load %arg2[%c0_68, %72, %c2_69, %c0_70] : memref<1x18x18x4xf32, #tpu.memory_space<vmem>>, vector<1x16x16x4xf32>
    %74 = vector.shape_cast %73 : vector<1x16x16x4xf32> to vector<16x16x4xf32>
    %75 = vector.shape_cast %74 : vector<16x16x4xf32> to vector<256x4xf32>
    %c1_71 = arith.constant 1 : index
    %c3_72 = arith.constant 3 : index
    %c0_73 = arith.constant 0 : index
    %c0_74 = arith.constant 0 : index
    %76 = vector.load %arg3[%c1_71, %c3_72, %c0_73, %c0_74] : memref<4x4x4x4xf32, #tpu.memory_space<vmem>>, vector<1x1x4x4xf32>
    %77 = vector.shape_cast %76 : vector<1x1x4x4xf32> to vector<4x4xf32>
    %cst_75 = arith.constant dense<0.000000e+00> : vector<256x4xf32>
    %78 = tpu.matmul %75, %77, %cst_75 {dimension_numbers = #tpu.dot_dimension_numbers<[1], [0], [0], [1], [0, 0, 1, 1], [], []>} : vector<256x4xf32>, vector<4x4xf32>, vector<256x4xf32> -> vector<256x4xf32>
    %79 = arith.addf %62, %78 : vector<256x4xf32>
    %c3_76 = arith.constant 3 : index
    %c1_77 = arith.constant 1 : index
    %c0_78 = arith.constant 0 : index
    %c0_79 = arith.constant 0 : index
    %80 = vector.load %arg3[%c3_76, %c1_77, %c0_78, %c0_79] : memref<4x4x4x4xf32, #tpu.memory_space<vmem>>, vector<1x1x4x4xf32>
    %81 = vector.shape_cast %80 : vector<1x1x4x4xf32> to vector<4x4xf32>
    %cst_80 = arith.constant dense<0.000000e+00> : vector<256x4xf32>
    %82 = tpu.matmul %75, %81, %cst_80 {dimension_numbers = #tpu.dot_dimension_numbers<[1], [0], [0], [1], [0, 0, 1, 1], [], []>} : vector<256x4xf32>, vector<4x4xf32>, vector<256x4xf32> -> vector<256x4xf32>
    %83 = arith.addf %70, %82 : vector<256x4xf32>
    %c2_i32 = arith.constant 2 : i32
    %84 = arith.addi %1, %c2_i32 : i32
    %c0_81 = arith.constant 0 : index
    %85 = arith.index_cast %84 : i32 to index
    %c0_82 = arith.constant 0 : index
    %c0_83 = arith.constant 0 : index
    %86 = vector.load %arg2[%c0_81, %85, %c0_82, %c0_83] : memref<1x18x18x4xf32, #tpu.memory_space<vmem>>, vector<1x16x16x4xf32>
    %87 = vector.shape_cast %86 : vector<1x16x16x4xf32> to vector<16x16x4xf32>
    %88 = vector.shape_cast %87 : vector<16x16x4xf32> to vector<256x4xf32>
    %c2_84 = arith.constant 2 : index
    %c2_85 = arith.constant 2 : index
    %c0_86 = arith.constant 0 : index
    %c0_87 = arith.constant 0 : index
    %89 = vector.load %arg3[%c2_84, %c2_85, %c0_86, %c0_87] : memref<4x4x4x4xf32, #tpu.memory_space<vmem>>, vector<1x1x4x4xf32>
    %90 = vector.shape_cast %89 : vector<1x1x4x4xf32> to vector<4x4xf32>
    %cst_88 = arith.constant dense<0.000000e+00> : vector<256x4xf32>
    %91 = tpu.matmul %88, %90, %cst_88 {dimension_numbers = #tpu.dot_dimension_numbers<[1], [0], [0], [1], [0, 0, 1, 1], [], []>} : vector<256x4xf32>, vector<4x4xf32>, vector<256x4xf32> -> vector<256x4xf32>
    %92 = arith.addf %66, %91 : vector<256x4xf32>
    %c2_i32_89 = arith.constant 2 : i32
    %93 = arith.addi %1, %c2_i32_89 : i32
    %c0_90 = arith.constant 0 : index
    %94 = arith.index_cast %93 : i32 to index
    %c1_91 = arith.constant 1 : index
    %c0_92 = arith.constant 0 : index
    %95 = vector.load %arg2[%c0_90, %94, %c1_91, %c0_92] : memref<1x18x18x4xf32, #tpu.memory_space<vmem>>, vector<1x16x16x4xf32>
    %96 = vector.shape_cast %95 : vector<1x16x16x4xf32> to vector<16x16x4xf32>
    %97 = vector.shape_cast %96 : vector<16x16x4xf32> to vector<256x4xf32>
    %c2_93 = arith.constant 2 : index
    %c3_94 = arith.constant 3 : index
    %c0_95 = arith.constant 0 : index
    %c0_96 = arith.constant 0 : index
    %98 = vector.load %arg3[%c2_93, %c3_94, %c0_95, %c0_96] : memref<4x4x4x4xf32, #tpu.memory_space<vmem>>, vector<1x1x4x4xf32>
    %99 = vector.shape_cast %98 : vector<1x1x4x4xf32> to vector<4x4xf32>
    %cst_97 = arith.constant dense<0.000000e+00> : vector<256x4xf32>
    %100 = tpu.matmul %97, %99, %cst_97 {dimension_numbers = #tpu.dot_dimension_numbers<[1], [0], [0], [1], [0, 0, 1, 1], [], []>} : vector<256x4xf32>, vector<4x4xf32>, vector<256x4xf32> -> vector<256x4xf32>
    %101 = arith.addf %92, %100 : vector<256x4xf32>
    %c3_98 = arith.constant 3 : index
    %c2_99 = arith.constant 2 : index
    %c0_100 = arith.constant 0 : index
    %c0_101 = arith.constant 0 : index
    %102 = vector.load %arg3[%c3_98, %c2_99, %c0_100, %c0_101] : memref<4x4x4x4xf32, #tpu.memory_space<vmem>>, vector<1x1x4x4xf32>
    %103 = vector.shape_cast %102 : vector<1x1x4x4xf32> to vector<4x4xf32>
    %cst_102 = arith.constant dense<0.000000e+00> : vector<256x4xf32>
    %104 = tpu.matmul %97, %103, %cst_102 {dimension_numbers = #tpu.dot_dimension_numbers<[1], [0], [0], [1], [0, 0, 1, 1], [], []>} : vector<256x4xf32>, vector<4x4xf32>, vector<256x4xf32> -> vector<256x4xf32>
    %105 = arith.addf %83, %104 : vector<256x4xf32>
    %c2_i32_103 = arith.constant 2 : i32
    %106 = arith.addi %1, %c2_i32_103 : i32
    %c0_104 = arith.constant 0 : index
    %107 = arith.index_cast %106 : i32 to index
    %c2_105 = arith.constant 2 : index
    %c0_106 = arith.constant 0 : index
    %108 = vector.load %arg2[%c0_104, %107, %c2_105, %c0_106] : memref<1x18x18x4xf32, #tpu.memory_space<vmem>>, vector<1x16x16x4xf32>
    %109 = vector.shape_cast %108 : vector<1x16x16x4xf32> to vector<16x16x4xf32>
    %110 = vector.shape_cast %109 : vector<16x16x4xf32> to vector<256x4xf32>
    %c3_107 = arith.constant 3 : index
    %c3_108 = arith.constant 3 : index
    %c0_109 = arith.constant 0 : index
    %c0_110 = arith.constant 0 : index
    %111 = vector.load %arg3[%c3_107, %c3_108, %c0_109, %c0_110] : memref<4x4x4x4xf32, #tpu.memory_space<vmem>>, vector<1x1x4x4xf32>
    %112 = vector.shape_cast %111 : vector<1x1x4x4xf32> to vector<4x4xf32>
    %cst_111 = arith.constant dense<0.000000e+00> : vector<256x4xf32>
    %113 = tpu.matmul %110, %112, %cst_111 {dimension_numbers = #tpu.dot_dimension_numbers<[1], [0], [0], [1], [0, 0, 1, 1], [], []>} : vector<256x4xf32>, vector<4x4xf32>, vector<256x4xf32> -> vector<256x4xf32>
    %114 = arith.addf %105, %113 : vector<256x4xf32>
    %c0_112 = arith.constant 0 : index
    %c0_113 = arith.constant 0 : index
    %115 = vector.load %arg4[%c0_112, %c0_113] : memref<1x4xf32, #tpu.memory_space<vmem>>, vector<1x4xf32>
    %116 = vector.broadcast %115 : vector<1x4xf32> to vector<256x4xf32>
    %117 = arith.addf %58, %116 : vector<256x4xf32>
    %cst_114 = arith.constant 2.000000e-01 : f32
    %118 = vector.broadcast %cst_114 : f32 to vector<256x4xf32>
    %119 = arith.mulf %118, %117 : vector<256x4xf32>
    %120 = arith.maximumf %117, %119 : vector<256x4xf32>
    %c0_115 = arith.constant 0 : index
    %c0_116 = arith.constant 0 : index
    %c0_117 = arith.constant 0 : index
    %c0_118 = arith.constant 0 : index
    %c0_119 = arith.constant 0 : index
    %121 = vector.load %arg5[%c0_115, %c0_116, %c0_117, %c0_118, %c0_119] : memref<1x2x2x256x4xf32, #tpu.memory_space<vmem>>, vector<1x1x1x256x4xf32>
    %122 = vector.shape_cast %121 : vector<1x1x1x256x4xf32> to vector<256x4xf32>
    %123 = vector.shape_cast %120 : vector<256x4xf32> to vector<1x1x1x256x4xf32>
    tpu.vector_store %arg5[%c0_115, %c0_116, %c0_117, %c0_118, %c0_119], %123 {strides = array<i32>} : memref<1x2x2x256x4xf32, #tpu.memory_space<vmem>>, vector<1x1x1x256x4xf32>,
    %124 = vector.broadcast %115 : vector<1x4xf32> to vector<256x4xf32>
    %125 = arith.addf %79, %124 : vector<256x4xf32>
    %cst_120 = arith.constant 2.000000e-01 : f32
    %126 = vector.broadcast %cst_120 : f32 to vector<256x4xf32>
    %127 = arith.mulf %126, %125 : vector<256x4xf32>
    %128 = arith.maximumf %125, %127 : vector<256x4xf32>
    %c0_121 = arith.constant 0 : index
    %c0_122 = arith.constant 0 : index
    %c1_123 = arith.constant 1 : index
    %c0_124 = arith.constant 0 : index
    %c0_125 = arith.constant 0 : index
    %129 = vector.load %arg5[%c0_121, %c0_122, %c1_123, %c0_124, %c0_125] : memref<1x2x2x256x4xf32, #tpu.memory_space<vmem>>, vector<1x1x1x256x4xf32>
    %130 = vector.shape_cast %129 : vector<1x1x1x256x4xf32> to vector<256x4xf32>
    %131 = vector.shape_cast %128 : vector<256x4xf32> to vector<1x1x1x256x4xf32>
    tpu.vector_store %arg5[%c0_121, %c0_122, %c1_123, %c0_124, %c0_125], %131 {strides = array<i32>} : memref<1x2x2x256x4xf32, #tpu.memory_space<vmem>>, vector<1x1x1x256x4xf32>,
    %132 = vector.broadcast %115 : vector<1x4xf32> to vector<256x4xf32>
    %133 = arith.addf %101, %132 : vector<256x4xf32>
    %cst_126 = arith.constant 2.000000e-01 : f32
    %134 = vector.broadcast %cst_126 : f32 to vector<256x4xf32>
    %135 = arith.mulf %134, %133 : vector<256x4xf32>
    %136 = arith.maximumf %133, %135 : vector<256x4xf32>
    %c0_127 = arith.constant 0 : index
    %c1_128 = arith.constant 1 : index
    %c0_129 = arith.constant 0 : index
    %c0_130 = arith.constant 0 : index
    %c0_131 = arith.constant 0 : index
    %137 = vector.load %arg5[%c0_127, %c1_128, %c0_129, %c0_130, %c0_131] : memref<1x2x2x256x4xf32, #tpu.memory_space<vmem>>, vector<1x1x1x256x4xf32>
    %138 = vector.shape_cast %137 : vector<1x1x1x256x4xf32> to vector<256x4xf32>
    %139 = vector.shape_cast %136 : vector<256x4xf32> to vector<1x1x1x256x4xf32>
    tpu.vector_store %arg5[%c0_127, %c1_128, %c0_129, %c0_130, %c0_131], %139 {strides = array<i32>} : memref<1x2x2x256x4xf32, #tpu.memory_space<vmem>>, vector<1x1x1x256x4xf32>,
    %140 = vector.broadcast %115 : vector<1x4xf32> to vector<256x4xf32>
    %141 = arith.addf %114, %140 : vector<256x4xf32>
    %cst_132 = arith.constant 2.000000e-01 : f32
    %142 = vector.broadcast %cst_132 : f32 to vector<256x4xf32>
    %143 = arith.mulf %142, %141 : vector<256x4xf32>
    %144 = arith.maximumf %141, %143 : vector<256x4xf32>
    %c0_133 = arith.constant 0 : index
    %c1_134 = arith.constant 1 : index
    %c1_135 = arith.constant 1 : index
    %c0_136 = arith.constant 0 : index
    %c0_137 = arith.constant 0 : index
    %145 = vector.load %arg5[%c0_133, %c1_134, %c1_135, %c0_136, %c0_137] : memref<1x2x2x256x4xf32, #tpu.memory_space<vmem>>, vector<1x1x1x256x4xf32>
    %146 = vector.shape_cast %145 : vector<1x1x1x256x4xf32> to vector<256x4xf32>
    %147 = vector.shape_cast %144 : vector<256x4xf32> to vector<1x1x1x256x4xf32>
    tpu.vector_store %arg5[%c0_133, %c1_134, %c1_135, %c0_136, %c0_137], %147 {strides = array<i32>} : memref<1x2x2x256x4xf32, #tpu.memory_space<vmem>>, vector<1x1x1x256x4xf32>,
    return
  }
  func.func @transform_0(%arg0: i32, %arg1: i32) -> (i32, i32, i32, i32) {
    %c0_i32 = arith.constant 0 : i32
    %c0_i32_0 = arith.constant 0 : i32
    %c0_i32_1 = arith.constant 0 : i32
    %c0_i32_2 = arith.constant 0 : i32
    return %arg0, %c0_i32, %c0_i32_0, %c0_i32_1 : i32, i32, i32, i32
  }
  func.func @transform_1(%arg0: i32, %arg1: i32) -> (i32, i32, i32, i32) {
    %c0_i32 = arith.constant 0 : i32
    %c0_i32_0 = arith.constant 0 : i32
    %c0_i32_1 = arith.constant 0 : i32
    %c0_i32_2 = arith.constant 0 : i32
    %c0_i32_3 = arith.constant 0 : i32
    return %c0_i32, %c0_i32_0, %c0_i32_1, %c0_i32_2 : i32, i32, i32, i32
  }
  func.func @transform_2(%arg0: i32, %arg1: i32) -> (i32, i32) {
    %c0_i32 = arith.constant 0 : i32
    %c0_i32_0 = arith.constant 0 : i32
    %c0_i32_1 = arith.constant 0 : i32
    return %c0_i32, %c0_i32_0 : i32, i32
  }
  func.func @transform_3(%arg0: i32, %arg1: i32) -> (i32, i32, i32, i32, i32) {
    %c0_i32 = arith.constant 0 : i32
    %c0_i32_0 = arith.constant 0 : i32
    %c0_i32_1 = arith.constant 0 : i32
    %c0_i32_2 = arith.constant 0 : i32
    return %arg0, %c0_i32, %c0_i32_0, %arg1, %c0_i32_1 : i32, i32, i32, i32, i32
  }
}

</mosaic_0001>

<bundles_post_ra>
// kernel: up2x_pallas.1
= control target key start
LH: loop header
LB: loop body
LE: loop exit
PB: predicated region body
PF: predicated region fallthrough
CT: control target
= control target key end

     0   :  { %s8205_s12 = smov 0   ;;  %s8207_s13 = smov 0   ;;  %s10763_s0 = inlined_call_operand.vmem [shape: f32[2,18,18,4], index: 0, kind: input, shape index: {}]   ;;  %s10764_s1 = inlined_call_operand.vmem [shape: f32[4,4,4,4], index: 1, kind: input, shape index: {}]   ;;  %s10765_s2 = inlined_call_operand.vmem [shape: f32[1,4], index: 2, kind: input, shape index: {}]   ;;  %s10766_s3 = inlined_call_operand.vmem [shape: f32[2,2,2,256,4], index: 3, kind: output, shape index: {}]  }
   0x1   :  { %s8209_s14 = smov 0  }
   0x2 LB: > { %s25_s15 = sadd.s32 1, %s8179_s13  ;;  %p5909_p0 = scmp.ge.s32.totalorder %s8183_s14, 1  ;;  %s8183_s14 = sphi %s8209_s14, %s13_s14   ;;  %s8179_s13 = sphi %s8207_s13, %s11099_s13   ;;  %s8175_s12 = sphi %s8205_s12, %s11098_s12  }
   0x3   : > { %p27_p1 = scmp.ge.s32.totalorder %s25_s15, 2  ;;  %p151_p2 = scmp.lt.s32.totalorder %s8183_s14, 3 }
   0x5   : > { %s11101_s15 = smov (%p27_p1, %s25_s15), 0  ;;  %p152_p3 = pnand %p5909_p0, %p151_p2 }
   0x7   : > { %155 = sbr.rel (%p152_p3) target bundleno = 734 (0x2de), region = 32 }
   0xc   : > { %v5913_v0 = vld [vmem:[%s10764_s1 + $0x4] sm:$0xf]  ;;  %vm361_vm0 = vcmask 1043456   ;;  %v229_v1 = vld [vmem:[%s10764_s1] sm:$0xf]  ;;  %p179_p4 = scmp.lt.s32.totalorder %s8175_s12, 1 }
   0xd   : > { %7276 = vmatprep.subr.msk.mxu0 %vm361_vm0, %v5913_v0  ;;  %7326 = vmatprep.subr.msk.mxu1 %vm361_vm0, %v229_v1  ;;  %v5981_v2 = vld [vmem:[%s10764_s1 + $0x14] sm:$0xf]  ;;  %v5980_v3 = vld [vmem:[%s10764_s1 + $0x10] sm:$0xf]  ;;  %vm264_vm1 = vcmask 31744  }
   0xe   : > { %7277 = vmatpush3.msk.msra.mxu0 %vm361_vm0, %v5913_v0  ;;  %s11103_s12 = smov (!%p179_p4, %s8175_s12), 1  ;;  %7327 = vmatpush3.msk.msra.mxu1 %vm361_vm0, %v229_v1  ;;  %v8272_v10 = vld [vmem:[%s10764_s1 + $0x8] sm:$0xf]  ;;  %v8277_v11 = vld [vmem:[%s10764_s1 + $0xc] sm:$0xf] }
   0xf   : > { %7376 = vmatprep.subr.msk.mxu0 %vm361_vm0, %v5981_v2  ;;  %7426 = vmatprep.subr.msk.mxu1 %vm361_vm0, %v5980_v3  ;;  %s8076_s24 = smul.u32 432, %s11103_s12  ;;  %s6747_s5 = sshll.u32 %s11103_s12, 10 }
  0x10   : > { %s9452_s7 = scalar_lea.vmem %s10766_s3, %s6747_s5 }
  0x11   : > { %s8247_s27 = scalar_lea.vmem %s10763_s0, %s8076_s24 }
  0x12   : > { %v8250_v4 = vld [vmem:[%s8247_s27 + $0x1] sm:$0xff]  ;;  %v8254_v6 = vld [vmem:[%s8247_s27 + $0x9] sm:$0xff]  ;;  %v8261_v8 = vld [vmem:[%s8247_s27 + $0x19] sm:$0xff] }
  0x13   : > { %v197_v5 = vld [vmem:[%s8247_s27] sm:$0xff]  ;;  %7278 = vmatprep.mubr.msk.f32.mxu0 %vm264_vm1, %v8250_v4  ;;  %v198_v7 = vld [vmem:[%s8247_s27 + $0x8] sm:$0xff]  ;;  %v8264_v9 = vld [vmem:[%s8247_s27 + $0x18] sm:$0xff] }
  0x14   : > { %7328 = vmatprep.mubr.msk.f32.mxu1 %vm264_vm1, %v197_v5  ;;  %7279 = vmatmul.mubr.msk.f32.vlgmr.msra.gmra.mxu0 %vm264_vm1, %v8254_v6  ;;  %v8282_v12 = vld [vmem:[%s8247_s27 + $0x21] sm:$0xff]  ;;  %v8292_v14 = vld [vmem:[%s8247_s27 + $0x31] sm:$0xff]  ;;  %v8310_v16 = vld [vmem:[%s8247_s27 + $0x39] sm:$0xff] }
  0x15   : > { %7329 = vmatmul.mubr.msk.f32.vlgmr.msra.gmra.mxu1 %vm264_vm1, %v198_v7  ;;  %7377 = vmatpush3.msk.msra.mxu0 %vm361_vm0, %v5981_v2  ;;  %v8285_v13 = vld [vmem:[%s8247_s27 + $0x20] sm:$0xff]  ;;  %v8295_v15 = vld [vmem:[%s8247_s27 + $0x30] sm:$0xff]  ;;  %v8313_v17 = vld [vmem:[%s8247_s27 + $0x38] sm:$0xff] }
  0x16   : > { %7427 = vmatpush3.msk.msra.mxu1 %vm361_vm0, %v5980_v3  ;;  %7281 = vmatprep.mubr.msk.f32.mxu0 %vm264_vm1, %v8261_v8  ;;  %v8316_v18 = vld [vmem:[%s8247_s27 + $0x49] sm:$0xff]  ;;  %v8330_v20 = vld [vmem:[%s8247_s27 + $0x51] sm:$0xff]  ;;  %v8336_v22 = vld [vmem:[%s8247_s27 + $0x61] sm:$0xff] }
  0x17   : > { %7331 = vmatprep.mubr.msk.f32.mxu1 %vm264_vm1, %v8264_v9  ;;  %7476 = vmatprep.subr.msk.mxu0 %vm361_vm0, %v8272_v10  ;;  %v8319_v19 = vld [vmem:[%s8247_s27 + $0x48] sm:$0xff]  ;;  %v8333_v21 = vld [vmem:[%s8247_s27 + $0x50] sm:$0xff]  ;;  %v8339_v23 = vld [vmem:[%s8247_s27 + $0x60] sm:$0xff] }
  0x18   : > { %7526 = vmatprep.subr.msk.mxu1 %vm361_vm0, %v8277_v11  ;;  %7282 = vmatmul.mubr.msk.f32.gmra.mxu0 %vm264_vm1, %v8282_v12  ;;  %v8350_v24 = vld [vmem:[%s8247_s27 + $0x69] sm:$0xff]  ;;  %v8356_v26 = vld [vmem:[%s8247_s27 + $0x79] sm:$0xff]  ;;  %v8370_v28 = vld [vmem:[%s8247_s27 + $0x81] sm:$0xff] }
  0x19   : > { %7332 = vmatmul.mubr.msk.f32.gmra.mxu1 %vm264_vm1, %v8285_v13  ;;  %7284 = vmatprep.mubr.msk.f32.mxu0 %vm264_vm1, %v8292_v14  ;;  %v8353_v25 = vld [vmem:[%s8247_s27 + $0x68] sm:$0xff]  ;;  %v8359_v27 = vld [vmem:[%s8247_s27 + $0x78] sm:$0xff]  ;;  %v8373_v29 = vld [vmem:[%s8247_s27 + $0x80] sm:$0xff] }
  0x1a   : > { %7334 = vmatprep.mubr.msk.f32.mxu1 %vm264_vm1, %v8295_v15  ;;  %v8376_v30 = vld [vmem:[%s8247_s27 + $0x91] sm:$0xff]  ;;  %v8390_v32 = vld [vmem:[%s8247_s27 + $0x99] sm:$0xff]  ;;  %v8396_v34 = vld [vmem:[%s8247_s27 + $0xa9] sm:$0xff] }
  0x1b   : > { %v8379_v31 = vld [vmem:[%s8247_s27 + $0x90] sm:$0xff]  ;;  %v8393_v33 = vld [vmem:[%s8247_s27 + $0x98] sm:$0xff]  ;;  %v8399_v35 = vld [vmem:[%s8247_s27 + $0xa8] sm:$0xff] }
  0x1c   : > { %7285 = vmatmul.mubr.msk.f32.gmra.mxu0 %vm264_vm1, %v8310_v16  ;;  %v8410_v36 = vld [vmem:[%s8247_s27 + $0xb1] sm:$0xff]  ;;  %v8416_v38 = vld [vmem:[%s8247_s27 + $0xc1] sm:$0xff]  ;;  %v8430_v40 = vld [vmem:[%s8247_s27 + $0xc9] sm:$0xff] }
  0x1d   : > { %7335 = vmatmul.mubr.msk.f32.gmra.mxu1 %vm264_vm1, %v8313_v17  ;;  %7287 = vmatprep.mubr.msk.f32.mxu0 %vm264_vm1, %v8316_v18  ;;  %v8413_v37 = vld [vmem:[%s8247_s27 + $0xb0] sm:$0xff]  ;;  %v8419_v39 = vld [vmem:[%s8247_s27 + $0xc0] sm:$0xff]  ;;  %v8433_v41 = vld [vmem:[%s8247_s27 + $0xc8] sm:$0xff] }
  0x1e   : > { %7337 = vmatprep.mubr.msk.f32.mxu1 %vm264_vm1, %v8319_v19  ;;  %v8436_v42 = vld [vmem:[%s8247_s27 + $0xd9] sm:$0xff]  ;;  %v8450_v44 = vld [vmem:[%s8247_s27 + $0xe1] sm:$0xff]  ;;  %v8456_v46 = vld [vmem:[%s8247_s27 + $0xf1] sm:$0xff] }
  0x1f   : > { %v8439_v43 = vld [vmem:[%s8247_s27 + $0xd8] sm:$0xff]  ;;  %v8453_v45 = vld [vmem:[%s8247_s27 + $0xe0] sm:$0xff]  ;;  %v8459_v47 = vld [vmem:[%s8247_s27 + $0xf0] sm:$0xff] }
  0x20   : > { %7288 = vmatmul.mubr.msk.f32.gmra.mxu0 %vm264_vm1, %v8330_v20  ;;  %v8470_v48 = vld [vmem:[%s8247_s27 + $0xf9] sm:$0xff]  ;;  %v8476_v50 = vld [vmem:[%s8247_s27 + $0x109] sm:$0xff]  ;;  %v8490_v52 = vld [vmem:[%s8247_s27 + $0x111] sm:$0xff] }
  0x21   : > { %7338 = vmatmul.mubr.msk.f32.gmra.mxu1 %vm264_vm1, %v8333_v21  ;;  %7290 = vmatprep.mubr.msk.f32.mxu0 %vm264_vm1, %v8336_v22  ;;  %v8473_v49 = vld [vmem:[%s8247_s27 + $0xf8] sm:$0xff]  ;;  %v8479_v51 = vld [vmem:[%s8247_s27 + $0x108] sm:$0xff]  ;;  %v8493_v53 = vld [vmem:[%s8247_s27 + $0x110] sm:$0xff] }
  0x22   : > { %7340 = vmatprep.mubr.msk.f32.mxu1 %vm264_vm1, %v8339_v23  ;;  %v8496_v54 = vld [vmem:[%s8247_s27 + $0x121] sm:$0xff]  ;;  %v8510_v56 = vld [vmem:[%s8247_s27 + $0x129] sm:$0xff]  ;;  %v8516_v58 = vld [vmem:[%s8247_s27 + $0x139] sm:$0xff] }
  0x23   : > { %v8499_v55 = vld [vmem:[%s8247_s27 + $0x120] sm:$0xff]  ;;  %v8513_v57 = vld [vmem:[%s8247_s27 + $0x128] sm:$0xff]  ;;  %v8519_v59 = vld [vmem:[%s8247_s27 + $0x138] sm:$0xff] }
  0x24   : > { %7291 = vmatmul.mubr.msk.f32.gmra.mxu0 %vm264_vm1, %v8350_v24  ;;  %10828 = vst [vmem:[#allocation2_spill] sm:$0xff] %v8499_v55  ;;  %10829 = vst [vmem:[#allocation3_spill] sm:$0xff] %v8513_v57  ;;  %v8530_v60 = vld [vmem:[%s8247_s27 + $0x141] sm:$0xff]  ;;  %v8536_v62 = vld [vmem:[%s8247_s27 + $0x151] sm:$0xff] }
  0x25   : > { %7341 = vmatmul.mubr.msk.f32.gmra.mxu1 %vm264_vm1, %v8353_v25  ;;  %7293 = vmatprep.mubr.msk.f32.mxu0 %vm264_vm1, %v8356_v26  ;;  %10830 = vst [vmem:[#allocation4_spill] sm:$0xff] %v8519_v59  ;;  %v8533_v61 = vld [vmem:[%s8247_s27 + $0x140] sm:$0xff]  ;;  %v8539_v63 = vld [vmem:[%s8247_s27 + $0x150] sm:$0xff]  ;;  %v8553_v1 = vld [vmem:[%s8247_s27 + $0x158] sm:$0xff] }
  0x26   : > { %7343 = vmatprep.mubr.msk.f32.mxu1 %vm264_vm1, %v8359_v27  ;;  %10831 = vst [vmem:[#allocation5_spill] sm:$0xff] %v8533_v61  ;;  %10832 = vst [vmem:[#allocation6_spill] sm:$0xff] %v8539_v63  ;;  %v8550_v0 = vld [vmem:[%s8247_s27 + $0x159] sm:$0xff]  ;;  %v8556_v2 = vld [vmem:[%s8247_s27 + $0x169] sm:$0xff] }
  0x27   : > { %10833 = vst [vmem:[#allocation7_spill] sm:$0xff] %v8553_v1  ;;  %v8559_v3 = vld [vmem:[%s8247_s27 + $0x168] sm:$0xff]  ;;  %v8570_v5 = vld [vmem:[%s8247_s27 + $0x171] sm:$0xff] }
  0x28   : > { %7294 = vmatmul.mubr.msk.f32.gmra.mxu0 %vm264_vm1, %v8370_v28  ;;  %10834 = vst [vmem:[#allocation8_spill] sm:$0xff] %v8559_v3  ;;  %v8573_v7 = vld [vmem:[%s8247_s27 + $0x170] sm:$0xff] }
  0x29   : > { %7344 = vmatmul.mubr.msk.f32.gmra.mxu1 %vm264_vm1, %v8373_v29  ;;  %7296 = vmatprep.mubr.msk.f32.mxu0 %vm264_vm1, %v8376_v30  ;;  %10835 = vst [vmem:[#allocation9_spill] sm:$0xff] %v8573_v7 }
  0x2a   : > { %7346 = vmatprep.mubr.msk.f32.mxu1 %vm264_vm1, %v8379_v31 }
  0x2c   : > { %7297 = vmatmul.mubr.msk.f32.gmra.mxu0 %vm264_vm1, %v8390_v32 }
  0x2d   : > { %7347 = vmatmul.mubr.msk.f32.gmra.mxu1 %vm264_vm1, %v8393_v33  ;;  %7299 = vmatprep.mubr.msk.f32.mxu0 %vm264_vm1, %v8396_v34 }
  0x2e   : > { %7349 = vmatprep.mubr.msk.f32.mxu1 %vm264_vm1, %v8399_v35 }
  0x30   : > { %7300 = vmatmul.mubr.msk.f32.gmra.mxu0 %vm264_vm1, %v8410_v36 }
  0x31   : > { %7350 = vmatmul.mubr.msk.f32.gmra.mxu1 %vm264_vm1, %v8413_v37  ;;  %7302 = vmatprep.mubr.msk.f32.mxu0 %vm264_vm1, %v8416_v38 }
  0x32   : > { %7352 = vmatprep.mubr.msk.f32.mxu1 %vm264_vm1, %v8419_v39 }
  0x34   : > { %7303 = vmatmul.mubr.msk.f32.gmra.mxu0 %vm264_vm1, %v8430_v40 }
  0x35   : > { %7353 = vmatmul.mubr.msk.f32.gmra.mxu1 %vm264_vm1, %v8433_v41  ;;  %7305 = vmatprep.mubr.msk.f32.mxu0 %vm264_vm1, %v8436_v42 }
  0x36   : > { %7355 = vmatprep.mubr.msk.f32.mxu1 %vm264_vm1, %v8439_v43 }
  0x38   : > { %7306 = vmatmul.mubr.msk.f32.gmra.mxu0 %vm264_vm1, %v8450_v44 }
  0x39   : > { %7356 = vmatmul.mubr.msk.f32.gmra.mxu1 %vm264_vm1, %v8453_v45  ;;  %7308 = vmatprep.mubr.msk.f32.mxu0 %vm264_vm1, %v8456_v46 }
  0x3a   : > { %7358 = vmatprep.mubr.msk.f32.mxu1 %vm264_vm1, %v8459_v47 }
  0x3c   : > { %7309 = vmatmul.mubr.msk.f32.gmra.mxu0 %vm264_vm1, %v8470_v48 }
  0x3d   : > { %7359 = vmatmul.mubr.msk.f32.gmra.mxu1 %vm264_vm1, %v8473_v49  ;;  %7311 = vmatprep.mubr.msk.f32.mxu0 %vm264_vm1, %v8476_v50 }
  0x3e   : > { %7361 = vmatprep.mubr.msk.f32.mxu1 %vm264_vm1, %v8479_v51 }
  0x40   : > { %7312 = vmatmul.mubr.msk.f32.gmra.mxu0 %vm264_vm1, %v8490_v52 }
  0x41   : > { %7362 = vmatmul.mubr.msk.f32.gmra.mxu1 %vm264_vm1, %v8493_v53  ;;  %7314 = vmatprep.mubr.msk.f32.mxu0 %vm264_vm1, %v8496_v54 }
  0x42   : > { %7364 = vmatprep.mubr.msk.f32.mxu1 %vm264_vm1, %v8499_v55 }
  0x44   : > { %7315 = vmatmul.mubr.msk.f32.gmra.mxu0 %vm264_vm1, %v8510_v56 }
  0x45   : > { %7365 = vmatmul.mubr.msk.f32.gmra.mxu1 %vm264_vm1, %v8513_v57  ;;  %7317 = vmatprep.mubr.msk.f32.mxu0 %vm264_vm1, %v8516_v58 }
  0x46   : > { %7367 = vmatprep.mubr.msk.f32.mxu1 %vm264_vm1, %v8519_v59 }
  0x48   : > { %7318 = vmatmul.mubr.msk.f32.gmra.mxu0 %vm264_vm1, %v8530_v60 }
  0x49   : > { %7368 = vmatmul.mubr.msk.f32.gmra.mxu1 %vm264_vm1, %v8533_v61  ;;  %7320 = vmatprep.mubr.msk.f32.mxu0 %vm264_vm1, %v8536_v62  ;;  %v8593_v61 = vld [vmem:[%s10764_s1 + $0x18] sm:$0xf] }
  0x4a   : > { %7370 = vmatprep.mubr.msk.f32.mxu1 %vm264_vm1, %v8539_v63  ;;  %v916_v63 = vld [vmem:[%s8247_s27 + $0x2] sm:$0xff] }
  0x4c   : > { %7321 = vmatmul.mubr.msk.f32.gmra.mxu0 %vm264_vm1, %v8550_v0 }
  0x4d   : > { %7371 = vmatmul.mubr.msk.f32.gmra.mxu1 %vm264_vm1, %v8553_v1  ;;  %7323 = vmatprep.mubr.msk.f32.mxu0 %vm264_vm1, %v8556_v2  ;;  %v917_v1 = vld [vmem:[%s8247_s27 + $0xa] sm:$0xff] }
  0x4e   : > { %7373 = vmatprep.mubr.msk.f32.mxu1 %vm264_vm1, %v8559_v3  ;;  %v8585_v3 = vld [vmem:[%s8247_s27 + $0x1a] sm:$0xff] }
  0x50   : > { %7324 = vmatmul.mubr.msk.f32.gmra.mxu0 %vm264_vm1, %v8570_v5 }
  0x51   : > { %7374 = vmatmul.mubr.msk.f32.gmra.mxu1 %vm264_vm1, %v8573_v7  ;;  %7378 = vmatprep.mubr.msk.f32.mxu0 %vm264_vm1, %v916_v63  ;;  %v8598_v63 = vld [vmem:[%s10764_s1 + $0x24] sm:$0xf] }
  0x52   : > { %7428 = vmatprep.mubr.msk.f32.mxu1 %vm264_vm1, %v8250_v4  ;;  %v8605_v4 = vld [vmem:[%s8247_s27 + $0x22] sm:$0xff] }
  0x54   : > { %7379 = vmatmul.mubr.msk.f32.vlgmr.msra.gmra.mxu0 %vm264_vm1, %v917_v1  ;;  %v8641_v1 = vld [vmem:[%s8247_s27 + $0x52] sm:$0xff] }
  0x55   : > { %7429 = vmatmul.mubr.msk.f32.vlgmr.msra.gmra.mxu1 %vm264_vm1, %v8254_v6  ;;  %7477 = vmatpush3.msk.msra.mxu0 %vm361_vm0, %v8272_v10  ;;  %v8612_v6 = vld [vmem:[%s8247_s27 + $0x32] sm:$0xff]  ;;  %v8627_v10 = vld [vmem:[%s8247_s27 + $0x3a] sm:$0xff]  ;;  %10839 = vst [vmem:[#allocation13_spill] sm:$0xff] %v8641_v1 }
  0x56   : > { %7527 = vmatpush3.msk.msra.mxu1 %vm361_vm0, %v8277_v11  ;;  %7381 = vmatprep.mubr.msk.f32.mxu0 %vm264_vm1, %v8585_v3  ;;  %10836 = vst [vmem:[#allocation10_spill] sm:$0xff] %v8612_v6  ;;  %10837 = vst [vmem:[#allocation11_spill] sm:$0xff] %v8627_v10  ;;  %v8630_v11 = vld [vmem:[%s8247_s27 + $0x4a] sm:$0xff] }
  0x57   : > { %7431 = vmatprep.mubr.msk.f32.mxu1 %vm264_vm1, %v8261_v8  ;;  %7576 = vmatprep.subr.msk.mxu0 %vm361_vm0, %v8593_v61  ;;  %10838 = vst [vmem:[#allocation12_spill] sm:$0xff] %v8630_v11 }
  0x58   : > { %7626 = vmatprep.subr.msk.mxu1 %vm361_vm0, %v8598_v63  ;;  %7382 = vmatmul.mubr.msk.f32.gmra.mxu0 %vm264_vm1, %v8605_v4 }
  0x59   : > { %7432 = vmatmul.mubr.msk.f32.gmra.mxu1 %vm264_vm1, %v8282_v12  ;;  %7384 = vmatprep.mubr.msk.f32.mxu0 %vm264_vm1, %v8612_v6  ;;  %v8644_v6 = vld [vmem:[%s8247_s27 + $0x62] sm:$0xff] }
  0x5a   : > { %7434 = vmatprep.mubr.msk.f32.mxu1 %vm264_vm1, %v8292_v14  ;;  %10840 = vst [vmem:[#allocation14_spill] sm:$0xff] %v8644_v6 }
  0x5c   : > { %7385 = vmatmul.mubr.msk.f32.gmra.mxu0 %vm264_vm1, %v8627_v10  ;;  %v8658_v10 = vld [vmem:[%s8247_s27 + $0x7a] sm:$0xff] }
  0x5d   : > { %7435 = vmatmul.mubr.msk.f32.gmra.mxu1 %vm264_vm1, %v8310_v16  ;;  %7387 = vmatprep.mubr.msk.f32.mxu0 %vm264_vm1, %v8630_v11  ;;  %v8655_v11 = vld [vmem:[%s8247_s27 + $0x6a] sm:$0xff]  ;;  %10842 = vst [vmem:[#allocation16_spill] sm:$0xff] %v8658_v10 }
  0x5e   : > { %7437 = vmatprep.mubr.msk.f32.mxu1 %vm264_vm1, %v8316_v18  ;;  %10841 = vst [vmem:[#allocation15_spill] sm:$0xff] %v8655_v11 }
  0x60   : > { %7388 = vmatmul.mubr.msk.f32.gmra.mxu0 %vm264_vm1, %v8641_v1  ;;  %v8672_v1 = vld [vmem:[%s8247_s27 + $0x92] sm:$0xff] }
  0x61   : > { %7438 = vmatmul.mubr.msk.f32.gmra.mxu1 %vm264_vm1, %v8330_v20  ;;  %7390 = vmatprep.mubr.msk.f32.mxu0 %vm264_vm1, %v8644_v6  ;;  %v8669_v6 = vld [vmem:[%s8247_s27 + $0x82] sm:$0xff]  ;;  %10844 = vst [vmem:[#allocation18_spill] sm:$0xff] %v8672_v1 }
  0x62   : > { %7440 = vmatprep.mubr.msk.f32.mxu1 %vm264_vm1, %v8336_v22  ;;  %10843 = vst [vmem:[#allocation17_spill] sm:$0xff] %v8669_v6 }
  0x64   : > { %7391 = vmatmul.mubr.msk.f32.gmra.mxu0 %vm264_vm1, %v8655_v11  ;;  %v8686_v11 = vld [vmem:[%s8247_s27 + $0xaa] sm:$0xff] }
  0x65   : > { %7441 = vmatmul.mubr.msk.f32.gmra.mxu1 %vm264_vm1, %v8350_v24  ;;  %7393 = vmatprep.mubr.msk.f32.mxu0 %vm264_vm1, %v8658_v10  ;;  %v8683_v10 = vld [vmem:[%s8247_s27 + $0x9a] sm:$0xff]  ;;  %10846 = vst [vmem:[#allocation20_spill] sm:$0xff] %v8686_v11 }
  0x66   : > { %7443 = vmatprep.mubr.msk.f32.mxu1 %vm264_vm1, %v8356_v26  ;;  %10845 = vst [vmem:[#allocation19_spill] sm:$0xff] %v8683_v10 }
  0x68   : > { %7394 = vmatmul.mubr.msk.f32.gmra.mxu0 %vm264_vm1, %v8669_v6  ;;  %v8700_v6 = vld [vmem:[%s8247_s27 + $0xc2] sm:$0xff] }
  0x69   : > { %7444 = vmatmul.mubr.msk.f32.gmra.mxu1 %vm264_vm1, %v8370_v28  ;;  %7396 = vmatprep.mubr.msk.f32.mxu0 %vm264_vm1, %v8672_v1  ;;  %v8697_v1 = vld [vmem:[%s8247_s27 + $0xb2] sm:$0xff]  ;;  %10848 = vst [vmem:[#allocation22_spill] sm:$0xff] %v8700_v6 }
  0x6a   : > { %7446 = vmatprep.mubr.msk.f32.mxu1 %vm264_vm1, %v8376_v30  ;;  %10847 = vst [vmem:[#allocation21_spill] sm:$0xff] %v8697_v1 }
  0x6c   : > { %7397 = vmatmul.mubr.msk.f32.gmra.mxu0 %vm264_vm1, %v8683_v10  ;;  %v8714_v10 = vld [vmem:[%s8247_s27 + $0xda] sm:$0xff] }
  0x6d   : > { %7447 = vmatmul.mubr.msk.f32.gmra.mxu1 %vm264_vm1, %v8390_v32  ;;  %7399 = vmatprep.mubr.msk.f32.mxu0 %vm264_vm1, %v8686_v11  ;;  %v8711_v11 = vld [vmem:[%s8247_s27 + $0xca] sm:$0xff]  ;;  %10850 = vst [vmem:[#allocation24_spill] sm:$0xff] %v8714_v10 }
  0x6e   : > { %7449 = vmatprep.mubr.msk.f32.mxu1 %vm264_vm1, %v8396_v34  ;;  %10849 = vst [vmem:[#allocation23_spill] sm:$0xff] %v8711_v11 }
  0x70   : > { %7400 = vmatmul.mubr.msk.f32.gmra.mxu0 %vm264_vm1, %v8697_v1  ;;  %v8728_v1 = vld [vmem:[%s8247_s27 + $0xf2] sm:$0xff] }
  0x71   : > { %7450 = vmatmul.mubr.msk.f32.gmra.mxu1 %vm264_vm1, %v8410_v36  ;;  %7402 = vmatprep.mubr.msk.f32.mxu0 %vm264_vm1, %v8700_v6  ;;  %v8725_v6 = vld [vmem:[%s8247_s27 + $0xe2] sm:$0xff]  ;;  %10852 = vst [vmem:[#allocation26_spill] sm:$0xff] %v8728_v1 }
  0x72   : > { %7452 = vmatprep.mubr.msk.f32.mxu1 %vm264_vm1, %v8416_v38  ;;  %10851 = vst [vmem:[#allocation25_spill] sm:$0xff] %v8725_v6 }
  0x74   : > { %7403 = vmatmul.mubr.msk.f32.gmra.mxu0 %vm264_vm1, %v8711_v11  ;;  %v8742_v11 = vld [vmem:[%s8247_s27 + $0x10a] sm:$0xff] }
  0x75   : > { %7453 = vmatmul.mubr.msk.f32.gmra.mxu1 %vm264_vm1, %v8430_v40  ;;  %7405 = vmatprep.mubr.msk.f32.mxu0 %vm264_vm1, %v8714_v10  ;;  %v8739_v10 = vld [vmem:[%s8247_s27 + $0xfa] sm:$0xff]  ;;  %10854 = vst [vmem:[#allocation28_spill] sm:$0xff] %v8742_v11 }
  0x76   : > { %7455 = vmatprep.mubr.msk.f32.mxu1 %vm264_vm1, %v8436_v42  ;;  %10853 = vst [vmem:[#allocation27_spill] sm:$0xff] %v8739_v10 }
  0x78   : > { %7406 = vmatmul.mubr.msk.f32.gmra.mxu0 %vm264_vm1, %v8725_v6  ;;  %v8756_v6 = vld [vmem:[%s8247_s27 + $0x122] sm:$0xff] }
  0x79   : > { %7456 = vmatmul.mubr.msk.f32.gmra.mxu1 %vm264_vm1, %v8450_v44  ;;  %7408 = vmatprep.mubr.msk.f32.mxu0 %vm264_vm1, %v8728_v1  ;;  %v8753_v1 = vld [vmem:[%s8247_s27 + $0x112] sm:$0xff]  ;;  %10856 = vst [vmem:[#allocation30_spill] sm:$0xff] %v8756_v6 }
  0x7a   : > { %7458 = vmatprep.mubr.msk.f32.mxu1 %vm264_vm1, %v8456_v46  ;;  %10855 = vst [vmem:[#allocation29_spill] sm:$0xff] %v8753_v1 }
  0x7c   : > { %7409 = vmatmul.mubr.msk.f32.gmra.mxu0 %vm264_vm1, %v8739_v10  ;;  %v8770_v10 = vld [vmem:[%s8247_s27 + $0x13a] sm:$0xff] }
  0x7d   : > { %7459 = vmatmul.mubr.msk.f32.gmra.mxu1 %vm264_vm1, %v8470_v48  ;;  %7411 = vmatprep.mubr.msk.f32.mxu0 %vm264_vm1, %v8742_v11  ;;  %v8767_v11 = vld [vmem:[%s8247_s27 + $0x12a] sm:$0xff]  ;;  %10858 = vst [vmem:[#allocation32_spill] sm:$0xff] %v8770_v10 }
  0x7e   : > { %7461 = vmatprep.mubr.msk.f32.mxu1 %vm264_vm1, %v8476_v50  ;;  %10857 = vst [vmem:[#allocation31_spill] sm:$0xff] %v8767_v11 }
  0x80   : > { %7412 = vmatmul.mubr.msk.f32.gmra.mxu0 %vm264_vm1, %v8753_v1  ;;  %v8784_v1 = vld [vmem:[%s8247_s27 + $0x152] sm:$0xff] }
  0x81   : > { %7462 = vmatmul.mubr.msk.f32.gmra.mxu1 %vm264_vm1, %v8490_v52  ;;  %7414 = vmatprep.mubr.msk.f32.mxu0 %vm264_vm1, %v8756_v6  ;;  %v8781_v6 = vld [vmem:[%s8247_s27 + $0x142] sm:$0xff]  ;;  %10860 = vst [vmem:[#allocation34_spill] sm:$0xff] %v8784_v1 }
  0x82   : > { %7464 = vmatprep.mubr.msk.f32.mxu1 %vm264_vm1, %v8496_v54  ;;  %10859 = vst [vmem:[#allocation33_spill] sm:$0xff] %v8781_v6 }
  0x84   : > { %7415 = vmatmul.mubr.msk.f32.gmra.mxu0 %vm264_vm1, %v8767_v11  ;;  %v8798_v11 = vld [vmem:[%s8247_s27 + $0x16a] sm:$0xff] }
  0x85   : > { %7465 = vmatmul.mubr.msk.f32.gmra.mxu1 %vm264_vm1, %v8510_v56  ;;  %7417 = vmatprep.mubr.msk.f32.mxu0 %vm264_vm1, %v8770_v10  ;;  %v8795_v10 = vld [vmem:[%s8247_s27 + $0x15a] sm:$0xff]  ;;  %10862 = vst [vmem:[#allocation36_spill] sm:$0xff] %v8798_v11 }
  0x86   : > { %7467 = vmatprep.mubr.msk.f32.mxu1 %vm264_vm1, %v8516_v58  ;;  %10861 = vst [vmem:[#allocation35_spill] sm:$0xff] %v8795_v10 }
  0x88   : > { %7418 = vmatmul.mubr.msk.f32.gmra.mxu0 %vm264_vm1, %v8781_v6  ;;  %v10867_v6 = vld [vmem:[#allocation8_spill] sm:$0xff] }
  0x89   : > { %7468 = vmatmul.mubr.msk.f32.gmra.mxu1 %vm264_vm1, %v8530_v60  ;;  %7420 = vmatprep.mubr.msk.f32.mxu0 %vm264_vm1, %v8784_v1  ;;  %v8809_v1 = vld [vmem:[%s8247_s27 + $0x172] sm:$0xff] }
  0x8a   : > { %7470 = vmatprep.mubr.msk.f32.mxu1 %vm264_vm1, %v8536_v62  ;;  %10863 = vst [vmem:[#allocation37_spill] sm:$0xff] %v8809_v1 }
  0x8c   : > { %7421 = vmatmul.mubr.msk.f32.gmra.mxu0 %vm264_vm1, %v8795_v10  ;;  %v10866_v10 = vld [vmem:[#allocation7_spill] sm:$0xff] }
  0x8d   : > { %7471 = vmatmul.mubr.msk.f32.gmra.mxu1 %vm264_vm1, %v8550_v0  ;;  %7423 = vmatprep.mubr.msk.f32.mxu0 %vm264_vm1, %v8798_v11  ;;  %v8826_v11 = vld [vmem:[%s10764_s1 + $0x20] sm:$0xf] }
  0x8e   : > { %7473 = vmatprep.mubr.msk.f32.mxu1 %vm264_vm1, %v8556_v2 }
  0x90   : > { %7424 = vmatmul.mubr.msk.f32.gmra.mxu0 %vm264_vm1, %v8809_v1  ;;  %v8831_v1 = vld [vmem:[%s10764_s1 + $0x1c] sm:$0xf] }
  0x91   : > { %7474 = vmatmul.mubr.msk.f32.gmra.mxu1 %vm264_vm1, %v8570_v5  ;;  %7478 = vmatprep.mubr.msk.f32.mxu0 %vm264_vm1, %v8264_v9 }
  0x92   : > { %7528 = vmatprep.mubr.msk.f32.mxu1 %vm264_vm1, %v8261_v8 }
  0x94   : > { %7479 = vmatmul.mubr.msk.f32.vlgmr.msra.gmra.mxu0 %vm264_vm1, %v8285_v13 }
  0x95   : > { %7529 = vmatmul.mubr.msk.f32.vlgmr.msra.gmra.mxu1 %vm264_vm1, %v8282_v12  ;;  %7577 = vmatpush3.msk.msra.mxu0 %vm361_vm0, %v8593_v61  ;;  %v10864_v61 = vld [vmem:[#allocation5_spill] sm:$0xff] }
  0x96   : > { %7627 = vmatpush3.msk.msra.mxu1 %vm361_vm0, %v8598_v63  ;;  %7481 = vmatprep.mubr.msk.f32.mxu0 %vm264_vm1, %v8295_v15  ;;  %v10865_v63 = vld [vmem:[#allocation6_spill] sm:$0xff] }
  0x97   : > { %7531 = vmatprep.mubr.msk.f32.mxu1 %vm264_vm1, %v8292_v14  ;;  %7676 = vmatprep.subr.msk.mxu0 %vm361_vm0, %v8826_v11 }
  0x98   : > { %7726 = vmatprep.subr.msk.mxu1 %vm361_vm0, %v8831_v1  ;;  %7482 = vmatmul.mubr.msk.f32.gmra.mxu0 %vm264_vm1, %v8313_v17 }
  0x99   : > { %7532 = vmatmul.mubr.msk.f32.gmra.mxu1 %vm264_vm1, %v8310_v16  ;;  %7484 = vmatprep.mubr.msk.f32.mxu0 %vm264_vm1, %v8319_v19 }
  0x9a   : > { %7534 = vmatprep.mubr.msk.f32.mxu1 %vm264_vm1, %v8316_v18 }
  0x9c   : > { %7485 = vmatmul.mubr.msk.f32.gmra.mxu0 %vm264_vm1, %v8333_v21 }
  0x9d   : > { %7535 = vmatmul.mubr.msk.f32.gmra.mxu1 %vm264_vm1, %v8330_v20  ;;  %7487 = vmatprep.mubr.msk.f32.mxu0 %vm264_vm1, %v8339_v23 }
  0x9e   : > { %7537 = vmatprep.mubr.msk.f32.mxu1 %vm264_vm1, %v8336_v22 }
  0xa0   : > { %7488 = vmatmul.mubr.msk.f32.gmra.mxu0 %vm264_vm1, %v8353_v25 }
  0xa1   : > { %7538 = vmatmul.mubr.msk.f32.gmra.mxu1 %vm264_vm1, %v8350_v24  ;;  %7490 = vmatprep.mubr.msk.f32.mxu0 %vm264_vm1, %v8359_v27 }
  0xa2   : > { %7540 = vmatprep.mubr.msk.f32.mxu1 %vm264_vm1, %v8356_v26 }
  0xa4   : > { %7491 = vmatmul.mubr.msk.f32.gmra.mxu0 %vm264_vm1, %v8373_v29 }
  0xa5   : > { %7541 = vmatmul.mubr.msk.f32.gmra.mxu1 %vm264_vm1, %v8370_v28  ;;  %7493 = vmatprep.mubr.msk.f32.mxu0 %vm264_vm1, %v8379_v31 }
  0xa6   : > { %7543 = vmatprep.mubr.msk.f32.mxu1 %vm264_vm1, %v8376_v30 }
  0xa8   : > { %7494 = vmatmul.mubr.msk.f32.gmra.mxu0 %vm264_vm1, %v8393_v33 }
  0xa9   : > { %7544 = vmatmul.mubr.msk.f32.gmra.mxu1 %vm264_vm1, %v8390_v32  ;;  %7496 = vmatprep.mubr.msk.f32.mxu0 %vm264_vm1, %v8399_v35 }
  0xaa   : > { %7546 = vmatprep.mubr.msk.f32.mxu1 %vm264_vm1, %v8396_v34 }
  0xac   : > { %7497 = vmatmul.mubr.msk.f32.gmra.mxu0 %vm264_vm1, %v8413_v37 }
  0xad   : > { %7547 = vmatmul.mubr.msk.f32.gmra.mxu1 %vm264_vm1, %v8410_v36  ;;  %7499 = vmatprep.mubr.msk.f32.mxu0 %vm264_vm1, %v8419_v39 }
  0xae   : > { %7549 = vmatprep.mubr.msk.f32.mxu1 %vm264_vm1, %v8416_v38 }
  0xb0   : > { %7500 = vmatmul.mubr.msk.f32.gmra.mxu0 %vm264_vm1, %v8433_v41 }
  0xb1   : > { %7550 = vmatmul.mubr.msk.f32.gmra.mxu1 %vm264_vm1, %v8430_v40  ;;  %7502 = vmatprep.mubr.msk.f32.mxu0 %vm264_vm1, %v8439_v43 }
  0xb2   : > { %7552 = vmatprep.mubr.msk.f32.mxu1 %vm264_vm1, %v8436_v42 }
  0xb4   : > { %7503 = vmatmul.mubr.msk.f32.gmra.mxu0 %vm264_vm1, %v8453_v45 }
  0xb5   : > { %7553 = vmatmul.mubr.msk.f32.gmra.mxu1 %vm264_vm1, %v8450_v44  ;;  %7505 = vmatprep.mubr.msk.f32.mxu0 %vm264_vm1, %v8459_v47 }
  0xb6   : > { %7555 = vmatprep.mubr.msk.f32.mxu1 %vm264_vm1, %v8456_v46 }
  0xb8   : > { %7506 = vmatmul.mubr.msk.f32.gmra.mxu0 %vm264_vm1, %v8473_v49 }
  0xb9   : > { %7556 = vmatmul.mubr.msk.f32.gmra.mxu1 %vm264_vm1, %v8470_v48  ;;  %7508 = vmatprep.mubr.msk.f32.mxu0 %vm264_vm1, %v8479_v51 }
  0xba   : > { %7558 = vmatprep.mubr.msk.f32.mxu1 %vm264_vm1, %v8476_v50 }
  0xbc   : > { %7509 = vmatmul.mubr.msk.f32.gmra.mxu0 %vm264_vm1, %v8493_v53 }
  0xbd   : > { %7559 = vmatmul.mubr.msk.f32.gmra.mxu1 %vm264_vm1, %v8490_v52  ;;  %7511 = vmatprep.mubr.msk.f32.mxu0 %vm264_vm1, %v8499_v55 }
  0xbe   : > { %7561 = vmatprep.mubr.msk.f32.mxu1 %vm264_vm1, %v8496_v54 }
  0xc0   : > { %7512 = vmatmul.mubr.msk.f32.gmra.mxu0 %vm264_vm1, %v8513_v57 }
  0xc1   : > { %7562 = vmatmul.mubr.msk.f32.gmra.mxu1 %vm264_vm1, %v8510_v56  ;;  %7514 = vmatprep.mubr.msk.f32.mxu0 %vm264_vm1, %v8519_v59  ;;  %v8953_v59 = vld [vmem:[%s8247_s27 + $0x181] sm:$0xff] }
  0xc2   : > { %7564 = vmatprep.mubr.msk.f32.mxu1 %vm264_vm1, %v8516_v58 }
  0xc4   : > { %7515 = vmatmul.mubr.msk.f32.gmra.mxu0 %vm264_vm1, %v10864_v61  ;;  %v8950_v61 = vld [vmem:[%s8247_s27 + $0x180] sm:$0xff] }
  0xc5   : > { %7565 = vmatmul.mubr.msk.f32.gmra.mxu1 %vm264_vm1, %v8530_v60  ;;  %7517 = vmatprep.mubr.msk.f32.mxu0 %vm264_vm1, %v10865_v63  ;;  %10868 = vst [vmem:[#allocation38_spill] sm:$0xff] %v8950_v61  ;;  %v8989_v63 = vld [vmem:[%s10764_s1 + $0x30] sm:$0xf] }
  0xc6   : > { %7567 = vmatprep.mubr.msk.f32.mxu1 %vm264_vm1, %v8536_v62 }
  0xc8   : > { %7518 = vmatmul.mubr.msk.f32.gmra.mxu0 %vm264_vm1, %v10866_v10  ;;  %v8967_v10 = vld [vmem:[%s8247_s27 + $0x189] sm:$0xff] }
  0xc9   : > { %7568 = vmatmul.mubr.msk.f32.gmra.mxu1 %vm264_vm1, %v8550_v0  ;;  %7520 = vmatprep.mubr.msk.f32.mxu0 %vm264_vm1, %v10867_v6  ;;  %v8964_v6 = vld [vmem:[%s8247_s27 + $0x188] sm:$0xff] }
  0xca   : > { %7570 = vmatprep.mubr.msk.f32.mxu1 %vm264_vm1, %v8556_v2  ;;  %10869 = vst [vmem:[#allocation39_spill] sm:$0xff] %v8964_v6 }
  0xcc   : > { %7521 = vmatmul.mubr.msk.f32.gmra.mxu0 %vm264_vm1, %v8573_v7 }
  0xcd   : > { %7571 = vmatmul.mubr.msk.f32.gmra.mxu1 %vm264_vm1, %v8570_v5  ;;  %7523 = vmatprep.mubr.msk.f32.mxu0 %vm264_vm1, %v8950_v61 }
  0xce   : > { %7573 = vmatprep.mubr.msk.f32.mxu1 %vm264_vm1, %v8953_v59 }
  0xd0   : > { %7524 = vmatmul.mubr.msk.f32.gmra.mxu0 %vm264_vm1, %v8964_v6  ;;  %v8984_v6 = vld [vmem:[%s10764_s1 + $0x34] sm:$0xf] }
  0xd1   : > { %7574 = vmatmul.mubr.msk.f32.gmra.mxu1 %vm264_vm1, %v8967_v10  ;;  %7578 = vmatprep.mubr.msk.f32.mxu0 %vm264_vm1, %v8261_v8 }
  0xd2   : > { %7628 = vmatprep.mubr.msk.f32.mxu1 %vm264_vm1, %v8261_v8 }
  0xd4   : > { %v7280_v61 = vpop.f32.mrf.mxu0  ;;  %7579 = vmatmul.mubr.msk.f32.vlgmr.msra.gmra.mxu0 %vm264_vm1, %v8282_v12 }
  0xd5   : > { %v7330_v7 = vpop.f32.mrf.mxu1  ;;  %7629 = vmatmul.mubr.msk.f32.vlgmr.msra.gmra.mxu1 %vm264_vm1, %v8282_v12  ;;  %7677 = vmatpush3.msk.msra.mxu0 %vm361_vm0, %v8826_v11 }
  0xd6   : > { %v8991_v57 = vadd.f32 %v7330_v7, %v7280_v61  ;;  %7727 = vmatpush3.msk.msra.mxu1 %vm361_vm0, %v8831_v1  ;;  %v431_v8 = vpop.f32.mrf.mxu0  ;;  %7581 = vmatprep.mubr.msk.f32.mxu0 %vm264_vm1, %v8292_v14 }
  0xd7   : > { %v755_v12 = vpop.f32.mrf.mxu1  ;;  %7631 = vmatprep.mubr.msk.f32.mxu1 %vm264_vm1, %v8292_v14  ;;  %7776 = vmatprep.subr.msk.mxu0 %vm361_vm0, %v8984_v6 }
  0xd8   : > { %v9001_v55 = vadd.f32 %v755_v12, %v431_v8  ;;  %7826 = vmatprep.subr.msk.mxu1 %vm361_vm0, %v8989_v63  ;;  %v7283_v7 = vpop.f32.mrf.mxu0  ;;  %7582 = vmatmul.mubr.msk.f32.gmra.mxu0 %vm264_vm1, %v8310_v16 }
  0xd9   : > { %v7333_v11 = vpop.f32.mrf.mxu1  ;;  %7632 = vmatmul.mubr.msk.f32.gmra.mxu1 %vm264_vm1, %v8310_v16  ;;  %7584 = vmatprep.mubr.msk.f32.mxu0 %vm264_vm1, %v8316_v18 }
  0xda   : > { %10870 = vst [vmem:[#allocation40_spill] sm:$0xff] %v9001_v55  ;;  %v9011_v1 = vadd.f32 %v7333_v11, %v7283_v7  ;;  %7634 = vmatprep.mubr.msk.f32.mxu1 %vm264_vm1, %v8316_v18  ;;  %v441_v14 = vpop.f32.mrf.mxu0 }
  0xdb   : > { %v765_v61 = vpop.f32.mrf.mxu1 }
  0xdc   : > { %v9017_v8 = vadd.f32 %v765_v61, %v441_v14  ;;  %v7286_v12 = vpop.f32.mrf.mxu0  ;;  %7585 = vmatmul.mubr.msk.f32.gmra.mxu0 %vm264_vm1, %v8330_v20 }
  0xdd   : > { %v7336_v55 = vpop.f32.mrf.mxu1  ;;  %7635 = vmatmul.mubr.msk.f32.gmra.mxu1 %vm264_vm1, %v8330_v20  ;;  %7587 = vmatprep.mubr.msk.f32.mxu0 %vm264_vm1, %v8336_v22 }
  0xde   : > { %v9023_v16 = vadd.f32 %v7336_v55, %v7286_v12  ;;  %7637 = vmatprep.mubr.msk.f32.mxu1 %vm264_vm1, %v8336_v22  ;;  %v451_v18 = vpop.f32.mrf.mxu0 }
  0xdf   : > { %v775_v7 = vpop.f32.mrf.mxu1 }
  0xe0   : > { %v9029_v11 = vadd.f32 %v775_v7, %v451_v18  ;;  %v7289_v14 = vpop.f32.mrf.mxu0  ;;  %7588 = vmatmul.mubr.msk.f32.gmra.mxu0 %vm264_vm1, %v8350_v24 }
  0xe1   : > { %v7339_v61 = vpop.f32.mrf.mxu1  ;;  %7638 = vmatmul.mubr.msk.f32.gmra.mxu1 %vm264_vm1, %v8350_v24  ;;  %7590 = vmatprep.mubr.msk.f32.mxu0 %vm264_vm1, %v8356_v26 }
  0xe2   : > { %v9035_v20 = vadd.f32 %v7339_v61, %v7289_v14  ;;  %7640 = vmatprep.mubr.msk.f32.mxu1 %vm264_vm1, %v8356_v26  ;;  %v461_v22 = vpop.f32.mrf.mxu0 }
  0xe3   : > { %v785_v55 = vpop.f32.mrf.mxu1 }
  0xe4   : > { %v9041_v12 = vadd.f32 %v785_v55, %v461_v22  ;;  %v7292_v18 = vpop.f32.mrf.mxu0  ;;  %7591 = vmatmul.mubr.msk.f32.gmra.mxu0 %vm264_vm1, %v8370_v28 }
  0xe5   : > { %v7342_v7 = vpop.f32.mrf.mxu1  ;;  %7641 = vmatmul.mubr.msk.f32.gmra.mxu1 %vm264_vm1, %v8370_v28  ;;  %7593 = vmatprep.mubr.msk.f32.mxu0 %vm264_vm1, %v8376_v30 }
  0xe6   : > { %v9047_v24 = vadd.f32 %v7342_v7, %v7292_v18  ;;  %7643 = vmatprep.mubr.msk.f32.mxu1 %vm264_vm1, %v8376_v30  ;;  %v471_v26 = vpop.f32.mrf.mxu0 }
  0xe7   : > { %v795_v14 = vpop.f32.mrf.mxu1 }
  0xe8   : > { %v9053_v61 = vadd.f32 %v795_v14, %v471_v26  ;;  %v7295_v22 = vpop.f32.mrf.mxu0  ;;  %7594 = vmatmul.mubr.msk.f32.gmra.mxu0 %vm264_vm1, %v8390_v32 }
  0xe9   : > { %v7345_v55 = vpop.f32.mrf.mxu1  ;;  %7644 = vmatmul.mubr.msk.f32.gmra.mxu1 %vm264_vm1, %v8390_v32  ;;  %7596 = vmatprep.mubr.msk.f32.mxu0 %vm264_vm1, %v8396_v34 }
  0xea   : > { %v9059_v28 = vadd.f32 %v7345_v55, %v7295_v22  ;;  %7646 = vmatprep.mubr.msk.f32.mxu1 %vm264_vm1, %v8396_v34  ;;  %v481_v30 = vpop.f32.mrf.mxu0 }
  0xeb   : > { %v805_v18 = vpop.f32.mrf.mxu1 }
  0xec   : > { %v9065_v7 = vadd.f32 %v805_v18, %v481_v30  ;;  %v7298_v26 = vpop.f32.mrf.mxu0  ;;  %7597 = vmatmul.mubr.msk.f32.gmra.mxu0 %vm264_vm1, %v8410_v36 }
  0xed   : > { %v7348_v14 = vpop.f32.mrf.mxu1  ;;  %7647 = vmatmul.mubr.msk.f32.gmra.mxu1 %vm264_vm1, %v8410_v36  ;;  %7599 = vmatprep.mubr.msk.f32.mxu0 %vm264_vm1, %v8416_v38 }
  0xee   : > { %v9071_v32 = vadd.f32 %v7348_v14, %v7298_v26  ;;  %7649 = vmatprep.mubr.msk.f32.mxu1 %vm264_vm1, %v8416_v38  ;;  %v491_v34 = vpop.f32.mrf.mxu0 }
  0xef   : > { %v815_v22 = vpop.f32.mrf.mxu1 }
  0xf0   : > { %v9077_v55 = vadd.f32 %v815_v22, %v491_v34  ;;  %v7301_v30 = vpop.f32.mrf.mxu0  ;;  %7600 = vmatmul.mubr.msk.f32.gmra.mxu0 %vm264_vm1, %v8430_v40 }
  0xf1   : > { %v7351_v18 = vpop.f32.mrf.mxu1  ;;  %7650 = vmatmul.mubr.msk.f32.gmra.mxu1 %vm264_vm1, %v8430_v40  ;;  %7602 = vmatprep.mubr.msk.f32.mxu0 %vm264_vm1, %v8436_v42 }
  0xf2   : > { %v9083_v36 = vadd.f32 %v7351_v18, %v7301_v30  ;;  %7652 = vmatprep.mubr.msk.f32.mxu1 %vm264_vm1, %v8436_v42  ;;  %v501_v38 = vpop.f32.mrf.mxu0 }
  0xf3   : > { %v825_v26 = vpop.f32.mrf.mxu1 }
  0xf4   : > { %v9089_v14 = vadd.f32 %v825_v26, %v501_v38  ;;  %v7304_v34 = vpop.f32.mrf.mxu0  ;;  %7603 = vmatmul.mubr.msk.f32.gmra.mxu0 %vm264_vm1, %v8450_v44 }
  0xf5   : > { %v7354_v22 = vpop.f32.mrf.mxu1  ;;  %7653 = vmatmul.mubr.msk.f32.gmra.mxu1 %vm264_vm1, %v8450_v44  ;;  %7605 = vmatprep.mubr.msk.f32.mxu0 %vm264_vm1, %v8456_v46 }
  0xf6   : > { %v9095_v40 = vadd.f32 %v7354_v22, %v7304_v34  ;;  %7655 = vmatprep.mubr.msk.f32.mxu1 %vm264_vm1, %v8456_v46  ;;  %v511_v42 = vpop.f32.mrf.mxu0 }
  0xf7   : > { %v835_v30 = vpop.f32.mrf.mxu1 }
  0xf8   : > { %v9101_v18 = vadd.f32 %v835_v30, %v511_v42  ;;  %v7307_v38 = vpop.f32.mrf.mxu0  ;;  %7606 = vmatmul.mubr.msk.f32.gmra.mxu0 %vm264_vm1, %v8470_v48 }
  0xf9   : > { %v7357_v26 = vpop.f32.mrf.mxu1  ;;  %7656 = vmatmul.mubr.msk.f32.gmra.mxu1 %vm264_vm1, %v8470_v48  ;;  %7608 = vmatprep.mubr.msk.f32.mxu0 %vm264_vm1, %v8476_v50 }
  0xfa   : > { %v9107_v44 = vadd.f32 %v7357_v26, %v7307_v38  ;;  %7658 = vmatprep.mubr.msk.f32.mxu1 %vm264_vm1, %v8476_v50  ;;  %v521_v46 = vpop.f32.mrf.mxu0 }
  0xfb   : > { %v845_v34 = vpop.f32.mrf.mxu1 }
  0xfc   : > { %v9113_v22 = vadd.f32 %v845_v34, %v521_v46  ;;  %v7310_v42 = vpop.f32.mrf.mxu0  ;;  %7609 = vmatmul.mubr.msk.f32.gmra.mxu0 %vm264_vm1, %v8490_v52 }
  0xfd   : > { %v7360_v30 = vpop.f32.mrf.mxu1  ;;  %7659 = vmatmul.mubr.msk.f32.gmra.mxu1 %vm264_vm1, %v8490_v52  ;;  %7611 = vmatprep.mubr.msk.f32.mxu0 %vm264_vm1, %v8496_v54 }
  0xfe   : > { %v9119_v48 = vadd.f32 %v7360_v30, %v7310_v42  ;;  %7661 = vmatprep.mubr.msk.f32.mxu1 %vm264_vm1, %v8496_v54  ;;  %v531_v50 = vpop.f32.mrf.mxu0 }
  0xff   : > { %v855_v38 = vpop.f32.mrf.mxu1 }
 0x100   : > { %v9125_v26 = vadd.f32 %v855_v38, %v531_v50  ;;  %v7313_v46 = vpop.f32.mrf.mxu0  ;;  %7612 = vmatmul.mubr.msk.f32.gmra.mxu0 %vm264_vm1, %v8510_v56 }
 0x101   : > { %v7363_v34 = vpop.f32.mrf.mxu1  ;;  %7662 = vmatmul.mubr.msk.f32.gmra.mxu1 %vm264_vm1, %v8510_v56  ;;  %7614 = vmatprep.mubr.msk.f32.mxu0 %vm264_vm1, %v8516_v58 }
 0x102   : > { %v9131_v52 = vadd.f32 %v7363_v34, %v7313_v46  ;;  %7664 = vmatprep.mubr.msk.f32.mxu1 %vm264_vm1, %v8516_v58  ;;  %v541_v54 = vpop.f32.mrf.mxu0 }
 0x103   : > { %v865_v42 = vpop.f32.mrf.mxu1 }
 0x104   : > { %v9137_v30 = vadd.f32 %v865_v42, %v541_v54  ;;  %v7316_v50 = vpop.f32.mrf.mxu0  ;;  %7615 = vmatmul.mubr.msk.f32.gmra.mxu0 %vm264_vm1, %v8530_v60 }
 0x105   : > { %v7366_v38 = vpop.f32.mrf.mxu1  ;;  %7665 = vmatmul.mubr.msk.f32.gmra.mxu1 %vm264_vm1, %v8530_v60  ;;  %7617 = vmatprep.mubr.msk.f32.mxu0 %vm264_vm1, %v8536_v62 }
 0x106   : > { %v9143_v56 = vadd.f32 %v7366_v38, %v7316_v50  ;;  %7667 = vmatprep.mubr.msk.f32.mxu1 %vm264_vm1, %v8536_v62  ;;  %v551_v58 = vpop.f32.mrf.mxu0 }
 0x107   : > { %v875_v46 = vpop.f32.mrf.mxu1 }
 0x108   : > { %v9149_v34 = vadd.f32 %v875_v46, %v551_v58  ;;  %v7319_v54 = vpop.f32.mrf.mxu0  ;;  %7618 = vmatmul.mubr.msk.f32.gmra.mxu0 %vm264_vm1, %v8550_v0 }
 0x109   : > { %v7369_v42 = vpop.f32.mrf.mxu1  ;;  %7668 = vmatmul.mubr.msk.f32.gmra.mxu1 %vm264_vm1, %v8550_v0  ;;  %7620 = vmatprep.mubr.msk.f32.mxu0 %vm264_vm1, %v8556_v2 }
 0x10a   : > { %v9155_v60 = vadd.f32 %v7369_v42, %v7319_v54  ;;  %7670 = vmatprep.mubr.msk.f32.mxu1 %vm264_vm1, %v8556_v2  ;;  %v561_v62 = vpop.f32.mrf.mxu0 }
 0x10b   : > { %v885_v50 = vpop.f32.mrf.mxu1 }
 0x10c   : > { %v9161_v38 = vadd.f32 %v885_v50, %v561_v62  ;;  %v7322_v58 = vpop.f32.mrf.mxu0  ;;  %7621 = vmatmul.mubr.msk.f32.gmra.mxu0 %vm264_vm1, %v8570_v5 }
 0x10d   : > { %v7372_v46 = vpop.f32.mrf.mxu1  ;;  %7671 = vmatmul.mubr.msk.f32.gmra.mxu1 %vm264_vm1, %v8570_v5  ;;  %7623 = vmatprep.mubr.msk.f32.mxu0 %vm264_vm1, %v8953_v59 }
 0x10e   : > { %v9167_v0 = vadd.f32 %v7372_v46, %v7322_v58  ;;  %7673 = vmatprep.mubr.msk.f32.mxu1 %vm264_vm1, %v8953_v59  ;;  %v571_v2 = vpop.f32.mrf.mxu0 }
 0x10f   : > { %v895_v54 = vpop.f32.mrf.mxu1 }
 0x110   : > { %v9173_v42 = vadd.f32 %v895_v54, %v571_v2  ;;  %v7325_v62 = vpop.f32.mrf.mxu0  ;;  %7624 = vmatmul.mubr.msk.f32.gmra.mxu0 %vm264_vm1, %v8967_v10 }
 0x111   : > { %v7375_v50 = vpop.f32.mrf.mxu1  ;;  %7674 = vmatmul.mubr.msk.f32.gmra.mxu1 %vm264_vm1, %v8967_v10  ;;  %7678 = vmatprep.mubr.msk.f32.mxu0 %vm264_vm1, %v8264_v9  ;;  %v9194_v10 = vld [vmem:[%s10764_s1 + $0x28] sm:$0xf]  ;;  %v9199_v9 = vld [vmem:[%s10764_s1 + $0x2c] sm:$0xf] }
 0x112   : > { %v9179_v5 = vadd.f32 %v7375_v50, %v7325_v62  ;;  %7728 = vmatprep.mubr.msk.f32.mxu1 %vm264_vm1, %v8585_v3  ;;  %v581_v59 = vpop.f32.mrf.mxu0 }
 0x113   : > { %v905_v58 = vpop.f32.mrf.mxu1 }
 0x114   : > { %v9185_v46 = vadd.f32 %v905_v58, %v581_v59  ;;  %v7380_v2 = vpop.f32.mrf.mxu0  ;;  %7679 = vmatmul.mubr.msk.f32.vlgmr.msra.gmra.mxu0 %vm264_vm1, %v8285_v13  ;;  %v10873_v59 = vld [vmem:[#allocation10_spill] sm:$0xff] }
 0x115   : > { %v7430_v54 = vpop.f32.mrf.mxu1  ;;  %7729 = vmatmul.mubr.msk.f32.vlgmr.msra.gmra.mxu1 %vm264_vm1, %v8605_v4  ;;  %7777 = vmatpush3.msk.msra.mxu0 %vm361_vm0, %v8984_v6 }
 0x116   : > { %10871 = vst [vmem:[#allocation41_spill] sm:$0xff] %v9185_v46  ;;  %v9201_v62 = vadd.f32 %v7430_v54, %v7380_v2  ;;  %7827 = vmatpush3.msk.msra.mxu1 %vm361_vm0, %v8989_v63  ;;  %v1115_v13 = vpop.f32.mrf.mxu0  ;;  %7681 = vmatprep.mubr.msk.f32.mxu0 %vm264_vm1, %v8295_v15  ;;  %v10875_v63 = vld [vmem:[#allocation11_spill] sm:$0xff]  ;;  %v10876_v54 = vld [vmem:[#allocation12_spill] sm:$0xff] }
 0x117   : > { %v1343_v50 = vpop.f32.mrf.mxu1  ;;  %7731 = vmatprep.mubr.msk.f32.mxu1 %vm264_vm1, %v10873_v59  ;;  %7876 = vmatprep.subr.msk.mxu0 %vm361_vm0, %v9194_v10 }
 0x118   : > { %10872 = vst [vmem:[#allocation42_spill] sm:$0xff] %v9201_v62  ;;  %v9211_v58 = vadd.f32 %v1343_v50, %v1115_v13  ;;  %7926 = vmatprep.subr.msk.mxu1 %vm361_vm0, %v9199_v9  ;;  %v7383_v6 = vpop.f32.mrf.mxu0  ;;  %7682 = vmatmul.mubr.msk.f32.gmra.mxu0 %vm264_vm1, %v8313_v17  ;;  %v10878_v17 = vld [vmem:[#allocation13_spill] sm:$0xff] }
 0x119   : > { %v7433_v2 = vpop.f32.mrf.mxu1  ;;  %7732 = vmatmul.mubr.msk.f32.gmra.mxu1 %vm264_vm1, %v10875_v63  ;;  %7684 = vmatprep.mubr.msk.f32.mxu0 %vm264_vm1, %v8319_v19  ;;  %v10879_v19 = vld [vmem:[#allocation14_spill] sm:$0xff] }
 0x11a   : > { %10874 = vst [vmem:[#allocation10_spill] sm:$0xff] %v9211_v58  ;;  %v9221_v15 = vadd.f32 %v7433_v2, %v7383_v6  ;;  %7734 = vmatprep.mubr.msk.f32.mxu1 %vm264_vm1, %v10876_v54  ;;  %v1125_v13 = vpop.f32.mrf.mxu0 }
 0x11b   : > { %v1353_v50 = vpop.f32.mrf.mxu1 }
 0x11c   : > { %v9227_v58 = vadd.f32 %v1353_v50, %v1125_v13  ;;  %v7386_v62 = vpop.f32.mrf.mxu0  ;;  %7685 = vmatmul.mubr.msk.f32.gmra.mxu0 %vm264_vm1, %v8333_v21  ;;  %v10880_v21 = vld [vmem:[#allocation15_spill] sm:$0xff] }
 0x11d   : > { %v7436_v46 = vpop.f32.mrf.mxu1  ;;  %7735 = vmatmul.mubr.msk.f32.gmra.mxu1 %vm264_vm1, %v10878_v17  ;;  %7687 = vmatprep.mubr.msk.f32.mxu0 %vm264_vm1, %v8339_v23  ;;  %v10881_v23 = vld [vmem:[#allocation16_spill] sm:$0xff] }
 0x11e   : > { %10877 = vst [vmem:[#allocation11_spill] sm:$0xff] %v9227_v58  ;;  %v9233_v6 = vadd.f32 %v7436_v46, %v7386_v62  ;;  %7737 = vmatprep.mubr.msk.f32.mxu1 %vm264_vm1, %v10879_v19  ;;  %v1135_v2 = vpop.f32.mrf.mxu0 }
 0x11f   : > { %v1363_v54 = vpop.f32.mrf.mxu1 }
 0x120   : > { %v9239_v13 = vadd.f32 %v1363_v54, %v1135_v2  ;;  %v7389_v50 = vpop.f32.mrf.mxu0  ;;  %7688 = vmatmul.mubr.msk.f32.gmra.mxu0 %vm264_vm1, %v8353_v25  ;;  %v10882_v25 = vld [vmem:[#allocation17_spill] sm:$0xff] }
 0x121   : > { %v7439_v58 = vpop.f32.mrf.mxu1  ;;  %7738 = vmatmul.mubr.msk.f32.gmra.mxu1 %vm264_vm1, %v10880_v21  ;;  %7690 = vmatprep.mubr.msk.f32.mxu0 %vm264_vm1, %v8359_v27  ;;  %v10883_v27 = vld [vmem:[#allocation18_spill] sm:$0xff] }
 0x122   : > { %v9245_v46 = vadd.f32 %v7439_v58, %v7389_v50  ;;  %7740 = vmatprep.mubr.msk.f32.mxu1 %vm264_vm1, %v10881_v23  ;;  %v1145_v62 = vpop.f32.mrf.mxu0 }
 0x123   : > { %v1373_v17 = vpop.f32.mrf.mxu1 }
 0x124   : > { %v9251_v19 = vadd.f32 %v1373_v17, %v1145_v62  ;;  %v7392_v2 = vpop.f32.mrf.mxu0  ;;  %7691 = vmatmul.mubr.msk.f32.gmra.mxu0 %vm264_vm1, %v8373_v29  ;;  %v10884_v29 = vld [vmem:[#allocation19_spill] sm:$0xff] }
 0x125   : > { %v7442_v54 = vpop.f32.mrf.mxu1  ;;  %7741 = vmatmul.mubr.msk.f32.gmra.mxu1 %vm264_vm1, %v10882_v25  ;;  %7693 = vmatprep.mubr.msk.f32.mxu0 %vm264_vm1, %v8379_v31  ;;  %v10885_v31 = vld [vmem:[#allocation20_spill] sm:$0xff] }
 0x126   : > { %v9257_v58 = vadd.f32 %v7442_v54, %v7392_v2  ;;  %7743 = vmatprep.mubr.msk.f32.mxu1 %vm264_vm1, %v10883_v27  ;;  %v1155_v50 = vpop.f32.mrf.mxu0 }
 0x127   : > { %v1383_v21 = vpop.f32.mrf.mxu1 }
 0x128   : > { %v9263_v23 = vadd.f32 %v1383_v21, %v1155_v50  ;;  %v7395_v62 = vpop.f32.mrf.mxu0  ;;  %7694 = vmatmul.mubr.msk.f32.gmra.mxu0 %vm264_vm1, %v8393_v33  ;;  %v10886_v33 = vld [vmem:[#allocation21_spill] sm:$0xff] }
 0x129   : > { %v7445_v17 = vpop.f32.mrf.mxu1  ;;  %7744 = vmatmul.mubr.msk.f32.gmra.mxu1 %vm264_vm1, %v10884_v29  ;;  %7696 = vmatprep.mubr.msk.f32.mxu0 %vm264_vm1, %v8399_v35  ;;  %v10887_v35 = vld [vmem:[#allocation22_spill] sm:$0xff] }
 0x12a   : > { %v9269_v2 = vadd.f32 %v7445_v17, %v7395_v62  ;;  %7746 = vmatprep.mubr.msk.f32.mxu1 %vm264_vm1, %v10885_v31  ;;  %v1165_v54 = vpop.f32.mrf.mxu0 }
 0x12b   : > { %v1393_v25 = vpop.f32.mrf.mxu1 }
 0x12c   : > { %v9275_v27 = vadd.f32 %v1393_v25, %v1165_v54  ;;  %v7398_v50 = vpop.f32.mrf.mxu0  ;;  %7697 = vmatmul.mubr.msk.f32.gmra.mxu0 %vm264_vm1, %v8413_v37  ;;  %v10888_v37 = vld [vmem:[#allocation23_spill] sm:$0xff] }
 0x12d   : > { %v7448_v21 = vpop.f32.mrf.mxu1  ;;  %7747 = vmatmul.mubr.msk.f32.gmra.mxu1 %vm264_vm1, %v10886_v33  ;;  %7699 = vmatprep.mubr.msk.f32.mxu0 %vm264_vm1, %v8419_v39  ;;  %v10890_v39 = vld [vmem:[#allocation24_spill] sm:$0xff] }
 0x12e   : > { %v9281_v62 = vadd.f32 %v7448_v21, %v7398_v50  ;;  %7749 = vmatprep.mubr.msk.f32.mxu1 %vm264_vm1, %v10887_v35  ;;  %v1175_v17 = vpop.f32.mrf.mxu0 }
 0x12f   : > { %v1403_v29 = vpop.f32.mrf.mxu1 }
 0x130   : > { %v9287_v31 = vadd.f32 %v1403_v29, %v1175_v17  ;;  %v7401_v54 = vpop.f32.mrf.mxu0  ;;  %7700 = vmatmul.mubr.msk.f32.gmra.mxu0 %vm264_vm1, %v8433_v41  ;;  %v10892_v41 = vld [vmem:[#allocation25_spill] sm:$0xff] }
 0x131   : > { %v7451_v25 = vpop.f32.mrf.mxu1  ;;  %7750 = vmatmul.mubr.msk.f32.gmra.mxu1 %vm264_vm1, %v10888_v37  ;;  %7702 = vmatprep.mubr.msk.f32.mxu0 %vm264_vm1, %v8439_v43  ;;  %v10894_v43 = vld [vmem:[#allocation26_spill] sm:$0xff] }
 0x132   : > { %v9293_v50 = vadd.f32 %v7451_v25, %v7401_v54  ;;  %7752 = vmatprep.mubr.msk.f32.mxu1 %vm264_vm1, %v10890_v39  ;;  %v1185_v21 = vpop.f32.mrf.mxu0 }
 0x133   : > { %v1413_v33 = vpop.f32.mrf.mxu1 }
 0x134   : > { %10889 = vst [vmem:[#allocation12_spill] sm:$0xff] %v9293_v50  ;;  %v9299_v35 = vadd.f32 %v1413_v33, %v1185_v21  ;;  %v7404_v17 = vpop.f32.mrf.mxu0  ;;  %7703 = vmatmul.mubr.msk.f32.gmra.mxu0 %vm264_vm1, %v8453_v45  ;;  %v10896_v45 = vld [vmem:[#allocation27_spill] sm:$0xff] }
 0x135   : > { %v7454_v29 = vpop.f32.mrf.mxu1  ;;  %7753 = vmatmul.mubr.msk.f32.gmra.mxu1 %vm264_vm1, %v10892_v41  ;;  %7705 = vmatprep.mubr.msk.f32.mxu0 %vm264_vm1, %v8459_v47  ;;  %v10898_v47 = vld [vmem:[#allocation28_spill] sm:$0xff]  ;;  %v6586_v50 = vld [vmem:[%s8247_s27 + $0x62] sm:$0xff] }
 0x136   : > { %10891 = vst [vmem:[#allocation13_spill] sm:$0xff] %v9299_v35  ;;  %v9305_v54 = vadd.f32 %v7454_v29, %v7404_v17  ;;  %7755 = vmatprep.mubr.msk.f32.mxu1 %vm264_vm1, %v10894_v43  ;;  %v1195_v25 = vpop.f32.mrf.mxu0 }
 0x137   : > { %v1423_v37 = vpop.f32.mrf.mxu1 }
 0x138   : > { %10893 = vst [vmem:[#allocation14_spill] sm:$0xff] %v9305_v54  ;;  %v9311_v39 = vadd.f32 %v1423_v37, %v1195_v25  ;;  %v7407_v21 = vpop.f32.mrf.mxu0  ;;  %7706 = vmatmul.mubr.msk.f32.gmra.mxu0 %vm264_vm1, %v8473_v49  ;;  %v10900_v49 = vld [vmem:[#allocation29_spill] sm:$0xff]  ;;  %v8111_v54 = vld [vmem:[%s8247_s27 + $0x6a] sm:$0xff] }
 0x139   : > { %v7457_v33 = vpop.f32.mrf.mxu1  ;;  %7756 = vmatmul.mubr.msk.f32.gmra.mxu1 %vm264_vm1, %v10896_v45  ;;  %7708 = vmatprep.mubr.msk.f32.mxu0 %vm264_vm1, %v8479_v51  ;;  %v10903_v51 = vld [vmem:[#allocation30_spill] sm:$0xff] }
 0x13a   : > { %10895 = vst [vmem:[#allocation15_spill] sm:$0xff] %v9311_v39  ;;  %v9317_v17 = vadd.f32 %v7457_v33, %v7407_v21  ;;  %7758 = vmatprep.mubr.msk.f32.mxu1 %vm264_vm1, %v10898_v47  ;;  %v1205_v29 = vpop.f32.mrf.mxu0  ;;  %v10902_v33 = vld [vmem:[#allocation2_spill] sm:$0xff] }
 0x13b   : > { %v1433_v41 = vpop.f32.mrf.mxu1 }
 0x13c   : > { %10897 = vst [vmem:[#allocation16_spill] sm:$0xff] %v9317_v17  ;;  %v9323_v43 = vadd.f32 %v1433_v41, %v1205_v29  ;;  %v7410_v25 = vpop.f32.mrf.mxu0  ;;  %7709 = vmatmul.mubr.msk.f32.gmra.mxu0 %vm264_vm1, %v8493_v53  ;;  %v10905_v17 = vld [vmem:[#allocation3_spill] sm:$0xff] }
 0x13d   : > { %v7460_v37 = vpop.f32.mrf.mxu1  ;;  %7759 = vmatmul.mubr.msk.f32.gmra.mxu1 %vm264_vm1, %v10900_v49  ;;  %7711 = vmatprep.mubr.msk.f32.mxu0 %vm264_vm1, %v10902_v33  ;;  %v10906_v53 = vld [vmem:[#allocation31_spill] sm:$0xff]  ;;  %v10909_v49 = vld [vmem:[#allocation32_spill] sm:$0xff] }
 0x13e   : > { %10899 = vst [vmem:[#allocation17_spill] sm:$0xff] %v9323_v43  ;;  %v9329_v21 = vadd.f32 %v7460_v37, %v7410_v25  ;;  %7761 = vmatprep.mubr.msk.f32.mxu1 %vm264_vm1, %v10903_v51  ;;  %v1215_v45 = vpop.f32.mrf.mxu0  ;;  %v10908_v37 = vld [vmem:[#allocation4_spill] sm:$0xff] }
 0x13f   : > { %v1443_v47 = vpop.f32.mrf.mxu1 }
 0x140   : > { %10901 = vst [vmem:[#allocation18_spill] sm:$0xff] %v9329_v21  ;;  %v9335_v29 = vadd.f32 %v1443_v47, %v1215_v45  ;;  %v7413_v41 = vpop.f32.mrf.mxu0  ;;  %7712 = vmatmul.mubr.msk.f32.gmra.mxu0 %vm264_vm1, %v10905_v17  ;;  %v10911_v21 = vld [vmem:[#allocation5_spill] sm:$0xff] }
 0x141   : > { %v7463_v43 = vpop.f32.mrf.mxu1  ;;  %7762 = vmatmul.mubr.msk.f32.gmra.mxu1 %vm264_vm1, %v10906_v53  ;;  %7714 = vmatprep.mubr.msk.f32.mxu0 %vm264_vm1, %v10908_v37  ;;  %v10912_v17 = vld [vmem:[#allocation33_spill] sm:$0xff]  ;;  %v10915_v53 = vld [vmem:[#allocation34_spill] sm:$0xff] }
 0x142   : > { %10904 = vst [vmem:[#allocation19_spill] sm:$0xff] %v9335_v29  ;;  %v9341_v25 = vadd.f32 %v7463_v43, %v7413_v41  ;;  %7764 = vmatprep.mubr.msk.f32.mxu1 %vm264_vm1, %v10909_v49  ;;  %v1225_v33 = vpop.f32.mrf.mxu0  ;;  %v10914_v41 = vld [vmem:[#allocation6_spill] sm:$0xff] }
 0x143   : > { %v1453_v51 = vpop.f32.mrf.mxu1 }
 0x144   : > { %10907 = vst [vmem:[#allocation20_spill] sm:$0xff] %v9341_v25  ;;  %v9347_v45 = vadd.f32 %v1453_v51, %v1225_v33  ;;  %v7416_v47 = vpop.f32.mrf.mxu0  ;;  %7715 = vmatmul.mubr.msk.f32.gmra.mxu0 %vm264_vm1, %v10911_v21  ;;  %v10917_v25 = vld [vmem:[#allocation7_spill] sm:$0xff] }
 0x145   : > { %v7466_v29 = vpop.f32.mrf.mxu1  ;;  %7765 = vmatmul.mubr.msk.f32.gmra.mxu1 %vm264_vm1, %v10912_v17  ;;  %7717 = vmatprep.mubr.msk.f32.mxu0 %vm264_vm1, %v10914_v41  ;;  %v10918_v21 = vld [vmem:[#allocation35_spill] sm:$0xff]  ;;  %v10921_v17 = vld [vmem:[#allocation36_spill] sm:$0xff] }
 0x146   : > { %10910 = vst [vmem:[#allocation21_spill] sm:$0xff] %v9347_v45  ;;  %v9353_v43 = vadd.f32 %v7466_v29, %v7416_v47  ;;  %7767 = vmatprep.mubr.msk.f32.mxu1 %vm264_vm1, %v10915_v53  ;;  %v1235_v37 = vpop.f32.mrf.mxu0  ;;  %v10920_v47 = vld [vmem:[#allocation8_spill] sm:$0xff] }
 0x147   : > { %v1463_v49 = vpop.f32.mrf.mxu1 }
 0x148   : > { %10913 = vst [vmem:[#allocation22_spill] sm:$0xff] %v9353_v43  ;;  %v9359_v33 = vadd.f32 %v1463_v49, %v1235_v37  ;;  %v7419_v51 = vpop.f32.mrf.mxu0  ;;  %7718 = vmatmul.mubr.msk.f32.gmra.mxu0 %vm264_vm1, %v10917_v25  ;;  %v9372_v37 = vld [vmem:[%s8247_s27 + $0x182] sm:$0xff]  ;;  %v10923_v43 = vld [vmem:[#allocation9_spill] sm:$0xff] }
 0x149   : > { %v7469_v45 = vpop.f32.mrf.mxu1  ;;  %7768 = vmatmul.mubr.msk.f32.gmra.mxu1 %vm264_vm1, %v10918_v21  ;;  %7720 = vmatprep.mubr.msk.f32.mxu0 %vm264_vm1, %v10920_v47  ;;  %v10926_v21 = vld [vmem:[#allocation38_spill] sm:$0xff]  ;;  %v9387_v47 = vld [vmem:[%s8247_s27 + $0x18a] sm:$0xff] }
 0x14a   : > { %10916 = vst [vmem:[#allocation23_spill] sm:$0xff] %v9359_v33  ;;  %v9365_v29 = vadd.f32 %v7469_v45, %v7419_v51  ;;  %7770 = vmatprep.mubr.msk.f32.mxu1 %vm264_vm1, %v10921_v17  ;;  %v1245_v41 = vpop.f32.mrf.mxu0  ;;  %v10924_v45 = vld [vmem:[#allocation37_spill] sm:$0xff] }
 0x14b   : > { %v1473_v53 = vpop.f32.mrf.mxu1 }
 0x14c   : > { %10919 = vst [vmem:[#allocation24_spill] sm:$0xff] %v9365_v29  ;;  %v9374_v49 = vadd.f32 %v1473_v53, %v1245_v41  ;;  %v7422_v33 = vpop.f32.mrf.mxu0  ;;  %7721 = vmatmul.mubr.msk.f32.gmra.mxu0 %vm264_vm1, %v10923_v43  ;;  %v10928_v29 = vld [vmem:[#allocation39_spill] sm:$0xff] }
 0x14d   : > { %v7472_v25 = vpop.f32.mrf.mxu1  ;;  %7771 = vmatmul.mubr.msk.f32.gmra.mxu1 %vm264_vm1, %v10924_v45  ;;  %7723 = vmatprep.mubr.msk.f32.mxu0 %vm264_vm1, %v10926_v21 }
 0x14e   : > { %10922 = vst [vmem:[#allocation25_spill] sm:$0xff] %v9374_v49  ;;  %v9380_v51 = vadd.f32 %v7472_v25, %v7422_v33  ;;  %7773 = vmatprep.mubr.msk.f32.mxu1 %vm264_vm1, %v9372_v37  ;;  %v1255_v17 = vpop.f32.mrf.mxu0  ;;  %v8101_v25 = vld [vmem:[%s8247_s27 + $0x19] sm:$0xff] }
 0x14f   : > { %v1483_v41 = vpop.f32.mrf.mxu1 }
 0x150   : > { %10925 = vst [vmem:[#allocation26_spill] sm:$0xff] %v9380_v51  ;;  %v9389_v53 = vadd.f32 %v1483_v41, %v1255_v17  ;;  %v7425_v49 = vpop.f32.mrf.mxu0  ;;  %7724 = vmatmul.mubr.msk.f32.gmra.mxu0 %vm264_vm1, %v10928_v29  ;;  %v8102_v29 = vld [vmem:[%s8247_s27 + $0x21] sm:$0xff] }
 0x151   : > { %v7475_v43 = vpop.f32.mrf.mxu1  ;;  %7774 = vmatmul.mubr.msk.f32.gmra.mxu1 %vm264_vm1, %v9387_v47  ;;  %7778 = vmatprep.mubr.msk.f32.mxu0 %vm264_vm1, %v8585_v3  ;;  %v9410_v3 = vld [vmem:[%s10764_s1 + $0x38] sm:$0xf] }
 0x152   : > { %10927 = vst [vmem:[#allocation27_spill] sm:$0xff] %v9389_v53  ;;  %v9395_v33 = vadd.f32 %v7475_v43, %v7425_v49  ;;  %7828 = vmatprep.mubr.msk.f32.mxu1 %vm264_vm1, %v8101_v25  ;;  %v1265_v45 = vpop.f32.mrf.mxu0  ;;  %v9415_v49 = vld [vmem:[%s10764_s1 + $0x3c] sm:$0xf] }
 0x153   : > { %v1493_v21 = vpop.f32.mrf.mxu1 }
 0x154   : > { %10929 = vst [vmem:[#allocation28_spill] sm:$0xff] %v9395_v33  ;;  %v9401_v17 = vadd.f32 %v1493_v21, %v1265_v45  ;;  %v7480_v41 = vpop.f32.mrf.mxu0  ;;  %7779 = vmatmul.mubr.msk.f32.vlgmr.msra.gmra.mxu0 %vm264_vm1, %v8605_v4  ;;  %v9425_v4 = vld [vmem:[%s10765_s2] ss:$0 sm:$0xff]  ;;  %v10931_v21 = vld [vmem:[#allocation40_spill] sm:$0xff] }
 0x155   : > { %v7530_v53 = vpop.f32.mrf.mxu1  ;;  %7829 = vmatmul.mubr.msk.f32.vlgmr.msra.gmra.mxu1 %vm264_vm1, %v8102_v29  ;;  %v1864_v43 = vadd.f32 %v7480_v41, %v8991_v57  ;;  %7877 = vmatpush3.msk.msra.mxu0 %vm361_vm0, %v9194_v10  ;;  %v8103_v57 = vld [vmem:[%s8247_s27 + $0x31] sm:$0xff] }
 0x156   : > { %10930 = vst [vmem:[#allocation29_spill] sm:$0xff] %v9401_v17  ;;  %7927 = vmatpush3.msk.msra.mxu1 %vm361_vm0, %v9199_v9  ;;  %v1704_v25 = vpop.f32.mrf.mxu0  ;;  %7781 = vmatprep.mubr.msk.f32.mxu0 %vm264_vm1, %v10873_v59  ;;  %v8104_v59 = vld [vmem:[%s8247_s27 + $0x39] sm:$0xff] }
 0x157   : > { %v2096_v45 = vpop.f32.mrf.mxu1  ;;  %7831 = vmatprep.mubr.msk.f32.mxu1 %vm264_vm1, %v8103_v57  ;;  %v2256_v10 = vadd.f32 %v7530_v53, %v1864_v43  ;;  %v1863_v41 = vadd.f32 %v1704_v25, %v10931_v21  ;;  %7976 = vmatprep.subr.msk.mxu0 %vm361_vm0, %v9410_v3  ;;  %v8105_v25 = vld [vmem:[%s8247_s27 + $0x4a] sm:$0xff] }
 0x158   : > { %8026 = vmatprep.subr.msk.mxu1 %vm361_vm0, %v9415_v49  ;;  %v7483_v9 = vpop.f32.mrf.mxu0  ;;  %7782 = vmatmul.mubr.msk.f32.gmra.mxu0 %vm264_vm1, %v10875_v63  ;;  %v8106_v21 = vld [vmem:[%s8247_s27 + $0x49] sm:$0xff] }
 0x159   : > { %v7533_v29 = vpop.f32.mrf.mxu1  ;;  %7832 = vmatmul.mubr.msk.f32.gmra.mxu1 %vm264_vm1, %v8104_v59  ;;  %v5300_v57 = vadd.f32 %v9425_v4, %v2256_v10  ;;  %v2255_v53 = vadd.f32 %v2096_v45, %v1863_v41  ;;  %v1866_v43 = vadd.f32 %v7483_v9, %v9011_v1  ;;  %7784 = vmatprep.mubr.msk.f32.mxu0 %vm264_vm1, %v8105_v25  ;;  %v8107_v41 = vld [vmem:[%s8247_s27 + $0x52] sm:$0xff] }
 0x15a   : > { %7834 = vmatprep.mubr.msk.f32.mxu1 %vm264_vm1, %v8106_v21  ;;  %v1714_v17 = vpop.f32.mrf.mxu0  ;;  %v8108_v9 = vld [vmem:[%s8247_s27 + $0x51] sm:$0xff] }
 0x15b   : > { %v2106_v33 = vpop.f32.mrf.mxu1  ;;  %v5332_v63 = vmul.f32 0.2, %v5300_v57  ;;  %v5299_v59 = vadd.f32 %v9425_v4, %v2255_v53  ;;  %v2258_v51 = vadd.f32 %v7533_v29, %v1866_v43  ;;  %v1865_v10 = vadd.f32 %v1714_v17, %v9017_v8  ;;  %v8109_v8 = vld [vmem:[%s8247_s27 + $0x62] sm:$0xff] }
 0x15c   : > { %v7486_v1 = vpop.f32.mrf.mxu0  ;;  %7785 = vmatmul.mubr.msk.f32.gmra.mxu0 %vm264_vm1, %v8107_v41  ;;  %v8110_v17 = vld [vmem:[%s8247_s27 + $0x61] sm:$0xff] }
 0x15d   : > { %v7536_v45 = vpop.f32.mrf.mxu1  ;;  %7835 = vmatmul.mubr.msk.f32.gmra.mxu1 %vm264_vm1, %v8108_v9  ;;  %v5364_v25 = vmax.f32 %v5300_v57, %v5332_v63  ;;  %v5331_v53 = vmul.f32 0.2, %v5299_v59  ;;  %v5302_v29 = vadd.f32 %v9425_v4, %v2258_v51  ;;  %v2257_v43 = vadd.f32 %v2106_v33, %v1865_v10  ;;  %7787 = vmatprep.mubr.msk.f32.mxu0 %vm264_vm1, %v8109_v8 }
 0x15e   : > { %7837 = vmatprep.mubr.msk.f32.mxu1 %vm264_vm1, %v8110_v17  ;;  %v1868_v21 = vadd.f32 %v7486_v1, %v9023_v16  ;;  %v1724_v41 = vpop.f32.mrf.mxu0  ;;  %v8112_v16 = vld [vmem:[%s8247_s27 + $0x69] sm:$0xff] }
 0x15f   : > { %v2116_v39 = vpop.f32.mrf.mxu1  ;;  %5396 = vst.msk [vmem:[%s9452_s7 + $0x8] sm:$0xff] %vm264_vm1, %v5364_v25  ;;  %v5363_v57 = vmax.f32 %v5299_v59, %v5331_v53  ;;  %v5334_v63 = vmul.f32 0.2, %v5302_v29  ;;  %v5301_v51 = vadd.f32 %v9425_v4, %v2257_v43  ;;  %v1867_v33 = vadd.f32 %v1724_v41, %v9029_v11  ;;  %v8113_v43 = vld [vmem:[%s8247_s27 + $0x7a] sm:$0xff] }
 0x160   : > { %v2260_v10 = vadd.f32 %v7536_v45, %v1868_v21  ;;  %v7489_v9 = vpop.f32.mrf.mxu0  ;;  %7788 = vmatmul.mubr.msk.f32.gmra.mxu0 %vm264_vm1, %v8111_v54  ;;  %v8114_v11 = vld [vmem:[%s8247_s27 + $0x79] sm:$0xff] }
 0x161   : > { %v7539_v8 = vpop.f32.mrf.mxu1  ;;  %7838 = vmatmul.mubr.msk.f32.gmra.mxu1 %vm264_vm1, %v8112_v16  ;;  %5395 = vst.msk [vmem:[%s9452_s7] sm:$0xff] %vm264_vm1, %v5363_v57  ;;  %v5366_v59 = vmax.f32 %v5302_v29, %v5334_v63  ;;  %v5333_v1 = vmul.f32 0.2, %v5301_v51  ;;  %v2259_v25 = vadd.f32 %v2116_v39, %v1867_v33  ;;  %v1870_v53 = vadd.f32 %v7489_v9, %v9035_v20  ;;  %v8115_v33 = vld [vmem:[%s8247_s27 + $0x82] sm:$0xff] }
 0x162   : > { %7790 = vmatprep.mubr.msk.f32.mxu0 %vm264_vm1, %v8113_v43  ;;  %7840 = vmatprep.mubr.msk.f32.mxu1 %vm264_vm1, %v8114_v11  ;;  %v5304_v54 = vadd.f32 %v9425_v4, %v2260_v10  ;;  %v1734_v45 = vpop.f32.mrf.mxu0  ;;  %v8116_v9 = vld [vmem:[%s8247_s27 + $0x81] sm:$0xff] }
 0x163   : > { %v2126_v17 = vpop.f32.mrf.mxu1  ;;  %5398 = vst.msk [vmem:[%s9452_s7 + $0x18] sm:$0xff] %vm264_vm1, %v5366_v59  ;;  %v5365_v29 = vmax.f32 %v5301_v51, %v5333_v1  ;;  %v5303_v39 = vadd.f32 %v9425_v4, %v2259_v25  ;;  %v2262_v20 = vadd.f32 %v7539_v8, %v1870_v53  ;;  %v1869_v21 = vadd.f32 %v1734_v45, %v9041_v12  ;;  %v8117_v12 = vld [vmem:[%s8247_s27 + $0x92] sm:$0xff] }
 0x164   : > { %v5336_v41 = vmul.f32 0.2, %v5304_v54  ;;  %v7492_v57 = vpop.f32.mrf.mxu0  ;;  %7791 = vmatmul.mubr.msk.f32.gmra.mxu0 %vm264_vm1, %v8115_v33  ;;  %v8118_v59 = vld [vmem:[%s8247_s27 + $0x91] sm:$0xff] }
 0x165   : > { %v7542_v63 = vpop.f32.mrf.mxu1  ;;  %7841 = vmatmul.mubr.msk.f32.gmra.mxu1 %vm264_vm1, %v8116_v9  ;;  %5397 = vst.msk [vmem:[%s9452_s7 + $0x10] sm:$0xff] %vm264_vm1, %v5365_v29  ;;  %v5335_v51 = vmul.f32 0.2, %v5303_v39  ;;  %v5306_v10 = vadd.f32 %v9425_v4, %v2262_v20  ;;  %v2261_v16 = vadd.f32 %v2126_v17, %v1869_v21  ;;  %v1872_v8 = vadd.f32 %v7492_v57, %v9047_v24  ;;  %v8119_v21 = vld [vmem:[%s8247_s27 + $0x9a] sm:$0xff]  ;;  %v8121_v33 = vld [vmem:[%s8247_s27 + $0xaa] sm:$0xff] }
 0x166   : > { %7793 = vmatprep.mubr.msk.f32.mxu0 %vm264_vm1, %v8117_v12  ;;  %7843 = vmatprep.mubr.msk.f32.mxu1 %vm264_vm1, %v8118_v59  ;;  %v5368_v1 = vmax.f32 %v5304_v54, %v5336_v41  ;;  %v1744_v25 = vpop.f32.mrf.mxu0  ;;  %v8120_v54 = vld [vmem:[%s8247_s27 + $0x99] sm:$0xff] }
 0x167   : > { %v2136_v53 = vpop.f32.mrf.mxu1  ;;  %v5367_v43 = vmax.f32 %v5303_v39, %v5335_v51  ;;  %v5338_v11 = vmul.f32 0.2, %v5306_v10  ;;  %v5305_v45 = vadd.f32 %v9425_v4, %v2261_v16  ;;  %v2264_v17 = vadd.f32 %v7542_v63, %v1872_v8 }
 0x168   : > { %5400 = vst.msk [vmem:[%s9452_s7 + $0x28] sm:$0xff] %vm264_vm1, %v5368_v1  ;;  %v1871_v24 = vadd.f32 %v1744_v25, %v9053_v61  ;;  %v7495_v29 = vpop.f32.mrf.mxu0  ;;  %7794 = vmatmul.mubr.msk.f32.gmra.mxu0 %vm264_vm1, %v8119_v21  ;;  %v8122_v61 = vld [vmem:[%s8247_s27 + $0xa9] sm:$0xff] }
 0x169   : > { %v7545_v20 = vpop.f32.mrf.mxu1  ;;  %7844 = vmatmul.mubr.msk.f32.gmra.mxu1 %vm264_vm1, %v8120_v54  ;;  %5399 = vst.msk [vmem:[%s9452_s7 + $0x20] sm:$0xff] %vm264_vm1, %v5367_v43  ;;  %v5370_v39 = vmax.f32 %v5306_v10, %v5338_v11  ;;  %v5337_v41 = vmul.f32 0.2, %v5305_v45  ;;  %v5308_v57 = vadd.f32 %v9425_v4, %v2264_v17  ;;  %v1874_v63 = vadd.f32 %v7495_v29, %v9059_v28  ;;  %v8123_v43 = vld [vmem:[%s8247_s27 + $0xb2] sm:$0xff]  ;;  %v8126_v54 = vld [vmem:[%s8247_s27 + $0xc1] sm:$0xff] }
 0x16a   : > { %7796 = vmatprep.mubr.msk.f32.mxu0 %vm264_vm1, %v8121_v33  ;;  %7846 = vmatprep.mubr.msk.f32.mxu1 %vm264_vm1, %v8122_v61  ;;  %v2263_v9 = vadd.f32 %v2136_v53, %v1871_v24  ;;  %v1754_v51 = vpop.f32.mrf.mxu0  ;;  %v8124_v53 = vld [vmem:[%s8247_s27 + $0xb1] sm:$0xff]  ;;  %v8125_v24 = vld [vmem:[%s8247_s27 + $0xc2] sm:$0xff] }
 0x16b   : > { %v2146_v16 = vpop.f32.mrf.mxu1  ;;  %5402 = vst.msk [vmem:[%s9452_s7 + $0x38] sm:$0xff] %vm264_vm1, %v5370_v39  ;;  %v5369_v10 = vmax.f32 %v5305_v45, %v5337_v41  ;;  %v5340_v8 = vmul.f32 0.2, %v5308_v57  ;;  %v2266_v12 = vadd.f32 %v7545_v20, %v1874_v63  ;;  %v1873_v28 = vadd.f32 %v1754_v51, %v9065_v7  ;;  %v8128_v51 = vld [vmem:[%s8247_s27 + $0xc9] sm:$0xff] }
 0x16c   : > { %v5307_v59 = vadd.f32 %v9425_v4, %v2263_v9  ;;  %v7498_v1 = vpop.f32.mrf.mxu0  ;;  %7797 = vmatmul.mubr.msk.f32.gmra.mxu0 %vm264_vm1, %v8123_v43  ;;  %v8127_v9 = vld [vmem:[%s8247_s27 + $0xca] sm:$0xff] }
 0x16d   : > { %v7548_v25 = vpop.f32.mrf.mxu1  ;;  %7847 = vmatmul.mubr.msk.f32.gmra.mxu1 %vm264_vm1, %v8124_v53  ;;  %5401 = vst.msk [vmem:[%s9452_s7 + $0x30] sm:$0xff] %vm264_vm1, %v5369_v10  ;;  %v5372_v11 = vmax.f32 %v5308_v57, %v5340_v8  ;;  %v5310_v45 = vadd.f32 %v9425_v4, %v2266_v12  ;;  %v2265_v17 = vadd.f32 %v2146_v16, %v1873_v28  ;;  %v8129_v28 = vld [vmem:[%s8247_s27 + $0xda] sm:$0xff] }
 0x16e   : > { %v1876_v7 = vadd.f32 %v7498_v1, %v9071_v32  ;;  %7799 = vmatprep.mubr.msk.f32.mxu0 %vm264_vm1, %v8125_v24  ;;  %v5339_v29 = vmul.f32 0.2, %v5307_v59  ;;  %v1764_v20 = vpop.f32.mrf.mxu0  ;;  %7849 = vmatprep.mubr.msk.f32.mxu1 %vm264_vm1, %v8126_v54 }
 0x16f   : > { %v2156_v21 = vpop.f32.mrf.mxu1  ;;  %5404 = vst.msk [vmem:[%s9452_s7 + $0x48] sm:$0xff] %vm264_vm1, %v5372_v11  ;;  %v5342_v39 = vmul.f32 0.2, %v5310_v45  ;;  %v5309_v41 = vadd.f32 %v9425_v4, %v2265_v17  ;;  %v1875_v32 = vadd.f32 %v1764_v20, %v9077_v55  ;;  %v8130_v55 = vld [vmem:[%s8247_s27 + $0xd9] sm:$0xff] }
 0x170   : > { %v2268_v57 = vadd.f32 %v7548_v25, %v1876_v7  ;;  %v5371_v63 = vmax.f32 %v5307_v59, %v5339_v29  ;;  %v7501_v33 = vpop.f32.mrf.mxu0  ;;  %7800 = vmatmul.mubr.msk.f32.gmra.mxu0 %vm264_vm1, %v8127_v9  ;;  %v8131_v29 = vld [vmem:[%s8247_s27 + $0xe2] sm:$0xff] }
 0x171   : > { %v7551_v61 = vpop.f32.mrf.mxu1  ;;  %7850 = vmatmul.mubr.msk.f32.gmra.mxu1 %vm264_vm1, %v8128_v51  ;;  %v5374_v16 = vmax.f32 %v5310_v45, %v5342_v39  ;;  %v5341_v10 = vmul.f32 0.2, %v5309_v41  ;;  %v2267_v12 = vadd.f32 %v2156_v21, %v1875_v32  ;;  %7802 = vmatprep.mubr.msk.f32.mxu0 %vm264_vm1, %v8129_v28  ;;  %v1878_v59 = vadd.f32 %v7501_v33, %v9083_v36  ;;  %v8132_v36 = vld [vmem:[%s8247_s27 + $0xe1] sm:$0xff] }
 0x172   : > { %v5312_v8 = vadd.f32 %v9425_v4, %v2268_v57  ;;  %7852 = vmatprep.mubr.msk.f32.mxu1 %vm264_vm1, %v8130_v55  ;;  %5403 = vst.msk [vmem:[%s9452_s7 + $0x40] sm:$0xff] %vm264_vm1, %v5371_v63  ;;  %v1774_v1 = vpop.f32.mrf.mxu0 }
 0x173   : > { %v2166_v25 = vpop.f32.mrf.mxu1  ;;  %5406 = vst.msk [vmem:[%s9452_s7 + $0x58] sm:$0xff] %vm264_vm1, %v5374_v16  ;;  %v5373_v43 = vmax.f32 %v5309_v41, %v5341_v10  ;;  %v5311_v11 = vadd.f32 %v9425_v4, %v2267_v12  ;;  %v1877_v45 = vadd.f32 %v1774_v1, %v9089_v14  ;;  %v2270_v17 = vadd.f32 %v7551_v61, %v1878_v59  ;;  %v8133_v41 = vld [vmem:[%s8247_s27 + $0xf2] sm:$0xff] }
 0x174   : > { %v5344_v53 = vmul.f32 0.2, %v5312_v8  ;;  %v7504_v7 = vpop.f32.mrf.mxu0  ;;  %7803 = vmatmul.mubr.msk.f32.gmra.mxu0 %vm264_vm1, %v8131_v29  ;;  %v8134_v14 = vld [vmem:[%s8247_s27 + $0xf1] sm:$0xff]  ;;  %v8136_v12 = vld [vmem:[%s8247_s27 + $0xf9] sm:$0xff] }
 0x175   : > { %v7554_v24 = vpop.f32.mrf.mxu1  ;;  %7853 = vmatmul.mubr.msk.f32.gmra.mxu1 %vm264_vm1, %v8132_v36  ;;  %5405 = vst.msk [vmem:[%s9452_s7 + $0x50] sm:$0xff] %vm264_vm1, %v5373_v43  ;;  %v5343_v21 = vmul.f32 0.2, %v5311_v11  ;;  %v2269_v54 = vadd.f32 %v2166_v25, %v1877_v45  ;;  %v1880_v39 = vadd.f32 %v7504_v7, %v9095_v40  ;;  %7805 = vmatprep.mubr.msk.f32.mxu0 %vm264_vm1, %v8133_v41  ;;  %v8138_v25 = vld [vmem:[%s8247_s27 + $0x109] sm:$0xff] }
 0x176   : > { %v5376_v20 = vmax.f32 %v5312_v8, %v5344_v53  ;;  %7855 = vmatprep.mubr.msk.f32.mxu1 %vm264_vm1, %v8134_v14  ;;  %v5314_v57 = vadd.f32 %v9425_v4, %v2270_v17  ;;  %v1784_v32 = vpop.f32.mrf.mxu0  ;;  %v8135_v8 = vld [vmem:[%s8247_s27 + $0xfa] sm:$0xff] }
 0x177   : > { %v2176_v63 = vpop.f32.mrf.mxu1  ;;  %v5375_v33 = vmax.f32 %v5311_v11, %v5343_v21  ;;  %v5313_v61 = vadd.f32 %v9425_v4, %v2269_v54  ;;  %v2272_v40 = vadd.f32 %v7554_v24, %v1880_v39  ;;  %v1879_v9 = vadd.f32 %v1784_v32, %v9101_v18  ;;  %v8137_v18 = vld [vmem:[%s8247_s27 + $0x10a] sm:$0xff] }
 0x178   : > { %5408 = vst.msk [vmem:[%s9452_s7 + $0x68] sm:$0xff] %vm264_vm1, %v5376_v20  ;;  %v5346_v51 = vmul.f32 0.2, %v5314_v57  ;;  %v7507_v16 = vpop.f32.mrf.mxu0  ;;  %7806 = vmatmul.mubr.msk.f32.gmra.mxu0 %vm264_vm1, %v8135_v8  ;;  %v8139_v20 = vld [vmem:[%s8247_s27 + $0x112] sm:$0xff]  ;;  %v8143_v8 = vld [vmem:[%s8247_s27 + $0x12a] sm:$0xff] }
 0x179   : > { %v7557_v10 = vpop.f32.mrf.mxu1  ;;  %7856 = vmatmul.mubr.msk.f32.gmra.mxu1 %vm264_vm1, %v8136_v12  ;;  %5407 = vst.msk [vmem:[%s9452_s7 + $0x60] sm:$0xff] %vm264_vm1, %v5375_v33  ;;  %v5345_v28 = vmul.f32 0.2, %v5313_v61  ;;  %v5316_v55 = vadd.f32 %v9425_v4, %v2272_v40  ;;  %v2271_v59 = vadd.f32 %v2176_v63, %v1879_v9  ;;  %v1882_v1 = vadd.f32 %v7507_v16, %v9107_v44  ;;  %v8140_v21 = vld [vmem:[%s8247_s27 + $0x111] sm:$0xff]  ;;  %v8144_v12 = vld [vmem:[%s8247_s27 + $0x129] sm:$0xff] }
 0x17a   : > { %7808 = vmatprep.mubr.msk.f32.mxu0 %vm264_vm1, %v8137_v18  ;;  %7858 = vmatprep.mubr.msk.f32.mxu1 %vm264_vm1, %v8138_v25  ;;  %v5378_v43 = vmax.f32 %v5314_v57, %v5346_v51  ;;  %v1794_v53 = vpop.f32.mrf.mxu0  ;;  %v8141_v57 = vld [vmem:[%s8247_s27 + $0x122] sm:$0xff] }
 0x17b   : > { %v2186_v11 = vpop.f32.mrf.mxu1  ;;  %v5377_v45 = vmax.f32 %v5313_v61, %v5345_v28  ;;  %v5348_v17 = vmul.f32 0.2, %v5316_v55  ;;  %v5315_v7 = vadd.f32 %v9425_v4, %v2271_v59  ;;  %v2274_v24 = vadd.f32 %v7557_v10, %v1882_v1  ;;  %v8145_v1 = vld [vmem:[%s8247_s27 + $0x13a] sm:$0xff] }
 0x17c   : > { %5410 = vst.msk [vmem:[%s9452_s7 + $0x78] sm:$0xff] %vm264_vm1, %v5378_v43  ;;  %v1881_v44 = vadd.f32 %v1794_v53, %v9113_v22  ;;  %v7510_v29 = vpop.f32.mrf.mxu0  ;;  %7809 = vmatmul.mubr.msk.f32.gmra.mxu0 %vm264_vm1, %v8139_v20  ;;  %v8142_v22 = vld [vmem:[%s8247_s27 + $0x121] sm:$0xff]  ;;  %v8146_v53 = vld [vmem:[%s8247_s27 + $0x139] sm:$0xff] }
 0x17d   : > { %v7560_v36 = vpop.f32.mrf.mxu1  ;;  %7859 = vmatmul.mubr.msk.f32.gmra.mxu1 %vm264_vm1, %v8140_v21  ;;  %5409 = vst.msk [vmem:[%s9452_s7 + $0x70] sm:$0xff] %vm264_vm1, %v5377_v45  ;;  %v5380_v54 = vmax.f32 %v5316_v55, %v5348_v17  ;;  %v5347_v39 = vmul.f32 0.2, %v5315_v7  ;;  %v5318_v41 = vadd.f32 %v9425_v4, %v2274_v24  ;;  %v1884_v14 = vadd.f32 %v7510_v29, %v9119_v48  ;;  %v8147_v29 = vld [vmem:[%s8247_s27 + $0x142] sm:$0xff] }
 0x17e   : > { %7811 = vmatprep.mubr.msk.f32.mxu0 %vm264_vm1, %v8141_v57  ;;  %7861 = vmatprep.mubr.msk.f32.mxu1 %vm264_vm1, %v8142_v22  ;;  %v2273_v32 = vadd.f32 %v2186_v11, %v1881_v44  ;;  %v1804_v63 = vpop.f32.mrf.mxu0 }
 0x17f   : > { %v2196_v33 = vpop.f32.mrf.mxu1  ;;  %5412 = vst.msk [vmem:[%s9452_s7 + $0x88] sm:$0xff] %vm264_vm1, %v5380_v54  ;;  %v5379_v61 = vmax.f32 %v5315_v7, %v5347_v39  ;;  %v5350_v40 = vmul.f32 0.2, %v5318_v41  ;;  %v2276_v9 = vadd.f32 %v7560_v36, %v1884_v14  ;;  %v1883_v48 = vadd.f32 %v1804_v63, %v9125_v26  ;;  %v8148_v36 = vld [vmem:[%s8247_s27 + $0x141] sm:$0xff] }
 0x180   : > { %v5317_v51 = vadd.f32 %v9425_v4, %v2273_v32  ;;  %v7513_v16 = vpop.f32.mrf.mxu0  ;;  %7812 = vmatmul.mubr.msk.f32.gmra.mxu0 %vm264_vm1, %v8143_v8 }
 0x181   : > { %v7563_v10 = vpop.f32.mrf.mxu1  ;;  %7862 = vmatmul.mubr.msk.f32.gmra.mxu1 %vm264_vm1, %v8144_v12  ;;  %5411 = vst.msk [vmem:[%s9452_s7 + $0x80] sm:$0xff] %vm264_vm1, %v5379_v61  ;;  %v5382_v28 = vmax.f32 %v5318_v41, %v5350_v40  ;;  %v5320_v55 = vadd.f32 %v9425_v4, %v2276_v9  ;;  %v2275_v59 = vadd.f32 %v2196_v33, %v1883_v48  ;;  %v8149_v41 = vld [vmem:[%s8247_s27 + $0x152] sm:$0xff] }
 0x182   : > { %v1886_v26 = vadd.f32 %v7513_v16, %v9131_v52  ;;  %7814 = vmatprep.mubr.msk.f32.mxu0 %vm264_vm1, %v8145_v1  ;;  %v5349_v18 = vmul.f32 0.2, %v5317_v51  ;;  %v1814_v25 = vpop.f32.mrf.mxu0  ;;  %7864 = vmatprep.mubr.msk.f32.mxu1 %vm264_vm1, %v8146_v53 }
 0x183   : > { %v2206_v43 = vpop.f32.mrf.mxu1  ;;  %5414 = vst.msk [vmem:[%s9452_s7 + $0x98] sm:$0xff] %vm264_vm1, %v5382_v28  ;;  %v5352_v11 = vmul.f32 0.2, %v5320_v55  ;;  %v5319_v45 = vadd.f32 %v9425_v4, %v2275_v59  ;;  %v1885_v52 = vadd.f32 %v1814_v25, %v9137_v30  ;;  %v8150_v30 = vld [vmem:[%s8247_s27 + $0x151] sm:$0xff] }
 0x184   : > { %v2278_v17 = vadd.f32 %v7563_v10, %v1886_v26  ;;  %v5381_v7 = vmax.f32 %v5317_v51, %v5349_v18  ;;  %v7516_v24 = vpop.f32.mrf.mxu0  ;;  %7815 = vmatmul.mubr.msk.f32.gmra.mxu0 %vm264_vm1, %v8147_v29  ;;  %v8151_v51 = vld [vmem:[%s8247_s27 + $0x15a] sm:$0xff]  ;;  %v8153_v28 = vld [vmem:[%s8247_s27 + $0x16a] sm:$0xff] }
 0x185   : > { %v7566_v44 = vpop.f32.mrf.mxu1  ;;  %7865 = vmatmul.mubr.msk.f32.gmra.mxu1 %vm264_vm1, %v8148_v36  ;;  %v5384_v20 = vmax.f32 %v5320_v55, %v5352_v11  ;;  %v5351_v21 = vmul.f32 0.2, %v5319_v45  ;;  %v2277_v39 = vadd.f32 %v2206_v43, %v1885_v52  ;;  %7817 = vmatprep.mubr.msk.f32.mxu0 %vm264_vm1, %v8149_v41  ;;  %v1888_v14 = vadd.f32 %v7516_v24, %v9143_v56  ;;  %v8152_v56 = vld [vmem:[%s8247_s27 + $0x159] sm:$0xff] }
 0x186   : > { %v5322_v54 = vadd.f32 %v9425_v4, %v2278_v17  ;;  %7867 = vmatprep.mubr.msk.f32.mxu1 %vm264_vm1, %v8150_v30  ;;  %5413 = vst.msk [vmem:[%s9452_s7 + $0x90] sm:$0xff] %vm264_vm1, %v5381_v7  ;;  %v1824_v57 = vpop.f32.mrf.mxu0  ;;  %v8156_v17 = vld [vmem:[%s8247_s27 + $0x171] sm:$0xff] }
 0x187   : > { %v2216_v22 = vpop.f32.mrf.mxu1  ;;  %5416 = vst.msk [vmem:[%s9452_s7 + $0xa8] sm:$0xff] %vm264_vm1, %v5384_v20  ;;  %v5383_v32 = vmax.f32 %v5319_v45, %v5351_v21  ;;  %v5321_v33 = vadd.f32 %v9425_v4, %v2277_v39  ;;  %v1887_v61 = vadd.f32 %v1824_v57, %v9149_v34  ;;  %v2280_v40 = vadd.f32 %v7566_v44, %v1888_v14  ;;  %v8154_v34 = vld [vmem:[%s8247_s27 + $0x169] sm:$0xff]  ;;  %v8155_v45 = vld [vmem:[%s8247_s27 + $0x172] sm:$0xff]  ;;  %v8157_v44 = vld [vmem:[%s8247_s27 + $0x181] sm:$0xff] }
 0x188   : > { %v5354_v63 = vmul.f32 0.2, %v5322_v54  ;;  %v7519_v9 = vpop.f32.mrf.mxu0  ;;  %7818 = vmatmul.mubr.msk.f32.gmra.mxu0 %vm264_vm1, %v8151_v51  ;;  %v6416_v21 = vld [vmem:[%s8247_s27 + $0x30] sm:$0xff] }
 0x189   : > { %v7569_v48 = vpop.f32.mrf.mxu1  ;;  %7868 = vmatmul.mubr.msk.f32.gmra.mxu1 %vm264_vm1, %v8152_v56  ;;  %5415 = vst.msk [vmem:[%s9452_s7 + $0xa0] sm:$0xff] %vm264_vm1, %v5383_v32  ;;  %v5353_v10 = vmul.f32 0.2, %v5321_v33  ;;  %v2279_v8 = vadd.f32 %v2216_v22, %v1887_v61  ;;  %v1890_v12 = vadd.f32 %v7519_v9, %v9155_v60  ;;  %7820 = vmatprep.mubr.msk.f32.mxu0 %vm264_vm1, %v8153_v28  ;;  %v8158_v22 = vld [vmem:[%s8247_s27 + $0x189] sm:$0xff] }
 0x18a   : > { %v5386_v16 = vmax.f32 %v5322_v54, %v5354_v63  ;;  %7870 = vmatprep.mubr.msk.f32.mxu1 %vm264_vm1, %v8154_v34  ;;  %v5324_v55 = vadd.f32 %v9425_v4, %v2280_v40  ;;  %v1834_v59 = vpop.f32.mrf.mxu0  ;;  %v9658_v54 = vld [vmem:[%s8247_s27 + $0x31] sm:$0xff] }
 0x18b   : > { %v2226_v26 = vpop.f32.mrf.mxu1  ;;  %v5385_v1 = vmax.f32 %v5321_v33, %v5353_v10  ;;  %v5323_v18 = vadd.f32 %v9425_v4, %v2279_v8  ;;  %v2282_v60 = vadd.f32 %v7569_v48, %v1890_v12  ;;  %v1889_v25 = vadd.f32 %v1834_v59, %v9161_v38  ;;  %v6418_v8 = vld [vmem:[%s8247_s27 + $0x48] sm:$0xff] }
 0x18c   : > { %5418 = vst.msk [vmem:[%s9452_s7 + $0xb8] sm:$0xff] %vm264_vm1, %v5386_v16  ;;  %v5356_v43 = vmul.f32 0.2, %v5324_v55  ;;  %v7522_v53 = vpop.f32.mrf.mxu0  ;;  %7821 = vmatmul.mubr.msk.f32.gmra.mxu0 %vm264_vm1, %v8155_v45  ;;  %v10932_v16 = vld [vmem:[#allocation41_spill] sm:$0xff]  ;;  %v9712_v45 = vld [vmem:[%s8247_s27 + $0x61] sm:$0xff] }
 0x18d   : > { %v7572_v11 = vpop.f32.mrf.mxu1  ;;  %7871 = vmatmul.mubr.msk.f32.gmra.mxu1 %vm264_vm1, %v8156_v17  ;;  %5417 = vst.msk [vmem:[%s9452_s7 + $0xb0] sm:$0xff] %vm264_vm1, %v5385_v1  ;;  %v5355_v52 = vmul.f32 0.2, %v5323_v18  ;;  %v5326_v7 = vadd.f32 %v9425_v4, %v2282_v60  ;;  %v2281_v24 = vadd.f32 %v2226_v26, %v1889_v25  ;;  %v1892_v38 = vadd.f32 %v7522_v53, %v9167_v0  ;;  %v9701_v60 = vld [vmem:[%s8247_s27 + $0x51] sm:$0xff] }
 0x18e   : > { %7823 = vmatprep.mubr.msk.f32.mxu0 %vm264_vm1, %v9372_v37  ;;  %7873 = vmatprep.mubr.msk.f32.mxu1 %vm264_vm1, %v8157_v44  ;;  %v5388_v29 = vmax.f32 %v5324_v55, %v5356_v43  ;;  %v1844_v36 = vpop.f32.mrf.mxu0  ;;  %v9692_v55 = vld [vmem:[%s8247_s27 + $0x49] sm:$0xff] }
 0x18f   : > { %v2236_v20 = vpop.f32.mrf.mxu1  ;;  %v5387_v39 = vmax.f32 %v5323_v18, %v5355_v52  ;;  %v5358_v41 = vmul.f32 0.2, %v5326_v7  ;;  %v5325_v30 = vadd.f32 %v9425_v4, %v2281_v24  ;;  %v2284_v0 = vadd.f32 %v7572_v11, %v1892_v38  ;;  %v6419_v18 = vld [vmem:[%s8247_s27 + $0x50] sm:$0xff]  ;;  %v6420_v11 = vld [vmem:[%s8247_s27 + $0x60] sm:$0xff] }
 0x190   : > { %5420 = vst.msk [vmem:[%s9452_s7 + $0xc8] sm:$0xff] %vm264_vm1, %v5388_v29  ;;  %v1891_v37 = vadd.f32 %v1844_v36, %v9173_v42  ;;  %v7525_v14 = vpop.f32.mrf.mxu0  ;;  %7824 = vmatmul.mubr.msk.f32.gmra.mxu0 %vm264_vm1, %v9387_v47  ;;  %v6417_v42 = vld [vmem:[%s8247_s27 + $0x38] sm:$0xff]  ;;  %v9731_v44 = vld [vmem:[%s8247_s27 + $0x69] sm:$0xff] }
 0x191   : > { %v7575_v57 = vpop.f32.mrf.mxu1  ;;  %7874 = vmatmul.mubr.msk.f32.gmra.mxu1 %vm264_vm1, %v8158_v22  ;;  %5419 = vst.msk [vmem:[%s9452_s7 + $0xc0] sm:$0xff] %vm264_vm1, %v5387_v39  ;;  %v5390_v32 = vmax.f32 %v5326_v7, %v5358_v41  ;;  %v5357_v63 = vmul.f32 0.2, %v5325_v30  ;;  %v5328_v33 = vadd.f32 %v9425_v4, %v2284_v0  ;;  %v1894_v61 = vadd.f32 %v7525_v14, %v9179_v5  ;;  %v9677_v47 = vld [vmem:[%s8247_s27 + $0x39] sm:$0xff]  ;;  %v6424_v22 = vld [vmem:[%s8247_s27 + $0x90] sm:$0xff] }
 0x192   : > { %7878 = vmatprep.mubr.msk.f32.mxu0 %vm264_vm1, %v6416_v21  ;;  %7928 = vmatprep.mubr.msk.f32.mxu1 %vm264_vm1, %v9658_v54  ;;  %v2283_v40 = vadd.f32 %v2236_v20, %v1891_v37  ;;  %v1854_v9 = vpop.f32.mrf.mxu0  ;;  %v6422_v20 = vld [vmem:[%s8247_s27 + $0x78] sm:$0xff]  ;;  %v6423_v0 = vld [vmem:[%s8247_s27 + $0x80] sm:$0xff] }
 0x193   : > { %v2246_v48 = vpop.f32.mrf.mxu1  ;;  %5422 = vst.msk [vmem:[%s9452_s7 + $0xd8] sm:$0xff] %vm264_vm1, %v5390_v32  ;;  %v5389_v51 = vmax.f32 %v5325_v30, %v5357_v63  ;;  %v5360_v56 = vmul.f32 0.2, %v5328_v33  ;;  %v2286_v5 = vadd.f32 %v7575_v57, %v1894_v61  ;;  %v1893_v10 = vadd.f32 %v1854_v9, %v10932_v16  ;;  %v9741_v21 = vld [vmem:[%s8247_s27 + $0x79] sm:$0xff]  ;;  %v9759_v37 = vld [vmem:[%s8247_s27 + $0x81] sm:$0xff]  ;;  %v9767_v32 = vld [vmem:[%s8247_s27 + $0x91] sm:$0xff] }
 0x194   : > { %v5327_v12 = vadd.f32 %v9425_v4, %v2283_v40  ;;  %v9684_v28 = vpop.f32.mrf.mxu0  ;;  %7879 = vmatmul.mubr.msk.f32.vlgmr.msra.gmra.mxu0 %vm264_vm1, %v6417_v42  ;;  %v6425_v61 = vld [vmem:[%s8247_s27 + $0x98] sm:$0xff]  ;;  %v6427_v16 = vld [vmem:[%s8247_s27 + $0xb0] sm:$0xff] }
 0x195   : > { %v9686_v34 = vpop.f32.mrf.mxu1  ;;  %7929 = vmatmul.mubr.msk.f32.vlgmr.msra.gmra.mxu1 %vm264_vm1, %v9677_v47  ;;  %5421 = vst.msk [vmem:[%s9452_s7 + $0xd0] sm:$0xff] %vm264_vm1, %v5389_v51  ;;  %v5392_v59 = vmax.f32 %v5328_v33, %v5360_v56  ;;  %v5330_v26 = vadd.f32 %v9425_v4, %v2286_v5  ;;  %v2285_v1 = vadd.f32 %v2246_v48, %v1893_v10  ;;  %v9781_v42 = vld [vmem:[%s8247_s27 + $0x99] sm:$0xff]  ;;  %v6426_v48 = vld [vmem:[%s8247_s27 + $0xa8] sm:$0xff]  ;;  %v9803_v10 = vld [vmem:[%s8247_s27 + $0xb1] sm:$0xff] }
 0x196   : > { %7977 = vmatpush3.msk.msra.mxu0 %vm361_vm0, %v9410_v3  ;;  %v5359_v25 = vmul.f32 0.2, %v5327_v12  ;;  %v9703_v43 = vpop.f32.mrf.mxu0  ;;  %8027 = vmatpush3.msk.msra.mxu1 %vm361_vm0, %v9415_v49  ;;  %v9789_v51 = vld [vmem:[%s8247_s27 + $0xa9] sm:$0xff] }
 0x197   : > { %v9705_v53 = vpop.f32.mrf.mxu1  ;;  %7881 = vmatprep.mubr.msk.f32.mxu0 %vm264_vm1, %v6418_v8  ;;  %5424 = vst.msk [vmem:[%s9452_s7 + $0xe8] sm:$0xff] %vm264_vm1, %v5392_v59  ;;  %v5362_v3 = vmul.f32 0.2, %v5330_v26  ;;  %v5329_v17 = vadd.f32 %v9425_v4, %v2285_v1  ;;  %7931 = vmatprep.mubr.msk.f32.mxu1 %vm264_vm1, %v9692_v55  ;;  %v6421_v4 = vld [vmem:[%s8247_s27 + $0x68] sm:$0xff]  ;;  %v6428_v59 = vld [vmem:[%s8247_s27 + $0xc0] sm:$0xff] }
 0x198   : > { %v5391_v52 = vmax.f32 %v5327_v12, %v5359_v25  ;;  %v9719_v49 = vpop.f32.mrf.mxu0  ;;  %7882 = vmatmul.mubr.msk.f32.gmra.mxu0 %vm264_vm1, %v6419_v18  ;;  %v6429_v25 = vld [vmem:[%s8247_s27 + $0xc8] sm:$0xff] }
 0x199   : > { %v9721_v7 = vpop.f32.mrf.mxu1  ;;  %7932 = vmatmul.mubr.msk.f32.gmra.mxu1 %vm264_vm1, %v9701_v60  ;;  %v5394_v24 = vmax.f32 %v5330_v26, %v5362_v3  ;;  %v5361_v38 = vmul.f32 0.2, %v5329_v17  ;;  %7884 = vmatprep.mubr.msk.f32.mxu0 %vm264_vm1, %v6420_v11  ;;  %v9811_v26 = vld [vmem:[%s8247_s27 + $0xc1] sm:$0xff]  ;;  %v9825_v11 = vld [vmem:[%s8247_s27 + $0xc9] sm:$0xff] }
 0x19a   : > { %7934 = vmatprep.mubr.msk.f32.mxu1 %vm264_vm1, %v9712_v45  ;;  %5423 = vst.msk [vmem:[%s9452_s7 + $0xe0] sm:$0xff] %vm264_vm1, %v5391_v52  ;;  %v9735_v29 = vpop.f32.mrf.mxu0  ;;  %v6430_v52 = vld [vmem:[%s8247_s27 + $0xd8] sm:$0xff] }
 0x19b   : > { %v9737_v36 = vpop.f32.mrf.mxu1  ;;  %5426 = vst.msk [vmem:[%s9452_s7 + $0xf8] sm:$0xff] %vm264_vm1, %v5394_v24  ;;  %v5393_v39 = vmax.f32 %v5329_v17, %v5361_v38  ;;  %v9833_v24 = vld [vmem:[%s8247_s27 + $0xd9] sm:$0xff] }
 0x19c   : > { %v9745_v41 = vpop.f32.mrf.mxu0  ;;  %7885 = vmatmul.mubr.msk.f32.gmra.mxu0 %vm264_vm1, %v6421_v4 }
 0x19d   : > { %v9747_v30 = vpop.f32.mrf.mxu1  ;;  %7935 = vmatmul.mubr.msk.f32.gmra.mxu1 %vm264_vm1, %v9731_v44  ;;  %5425 = vst.msk [vmem:[%s9452_s7 + $0xf0] sm:$0xff] %vm264_vm1, %v5393_v39  ;;  %7887 = vmatprep.mubr.msk.f32.mxu0 %vm264_vm1, %v6422_v20  ;;  %v6431_v20 = vld [vmem:[%s8247_s27 + $0xe0] sm:$0xff] }
 0x19e   : > { %7937 = vmatprep.mubr.msk.f32.mxu1 %vm264_vm1, %v9741_v21  ;;  %v9761_v14 = vpop.f32.mrf.mxu0  ;;  %v9847_v39 = vld [vmem:[%s8247_s27 + $0xe1] sm:$0xff] }
 0x19f   : > { %v9763_v57 = vpop.f32.mrf.mxu1  ;;  %10933 = vst [vmem:[#allocation2_spill] sm:$0xff] %v9847_v39 }
 0x1a0   : > { %v9769_v63 = vpop.f32.mrf.mxu0  ;;  %7888 = vmatmul.mubr.msk.f32.gmra.mxu0 %vm264_vm1, %v6423_v0 }
 0x1a1   : > { %v9771_v33 = vpop.f32.mrf.mxu1  ;;  %7938 = vmatmul.mubr.msk.f32.gmra.mxu1 %vm264_vm1, %v9759_v37  ;;  %7890 = vmatprep.mubr.msk.f32.mxu0 %vm264_vm1, %v6424_v22 }
 0x1a2   : > { %7940 = vmatprep.mubr.msk.f32.mxu1 %vm264_vm1, %v9767_v32  ;;  %v9783_v40 = vpop.f32.mrf.mxu0 }
 0x1a3   : > { %v9785_v9 = vpop.f32.mrf.mxu1 }
 0x1a4   : > { %v9791_v56 = vpop.f32.mrf.mxu0  ;;  %7891 = vmatmul.mubr.msk.f32.gmra.mxu0 %vm264_vm1, %v6425_v61  ;;  %v6432_v61 = vld [vmem:[%s8247_s27 + $0xf0] sm:$0xff] }
 0x1a5   : > { %v9793_v5 = vpop.f32.mrf.mxu1  ;;  %7941 = vmatmul.mubr.msk.f32.gmra.mxu1 %vm264_vm1, %v9781_v42  ;;  %7893 = vmatprep.mubr.msk.f32.mxu0 %vm264_vm1, %v6426_v48  ;;  %v9855_v48 = vld [vmem:[%s8247_s27 + $0xf1] sm:$0xff] }
 0x1a6   : > { %7943 = vmatprep.mubr.msk.f32.mxu1 %vm264_vm1, %v9789_v51  ;;  %v9805_v8 = vpop.f32.mrf.mxu0  ;;  %10935 = vst [vmem:[#allocation3_spill] sm:$0xff] %v9855_v48 }
 0x1a7   : > { %v9807_v12 = vpop.f32.mrf.mxu1 }
 0x1a8   : > { %v9813_v1 = vpop.f32.mrf.mxu0  ;;  %7894 = vmatmul.mubr.msk.f32.gmra.mxu0 %vm264_vm1, %v6427_v16 }
 0x1a9   : > { %v9815_v18 = vpop.f32.mrf.mxu1  ;;  %7944 = vmatmul.mubr.msk.f32.gmra.mxu1 %vm264_vm1, %v9803_v10  ;;  %7896 = vmatprep.mubr.msk.f32.mxu0 %vm264_vm1, %v6428_v59 }
 0x1aa   : > { %7946 = vmatprep.mubr.msk.f32.mxu1 %vm264_vm1, %v9811_v26  ;;  %v9827_v3 = vpop.f32.mrf.mxu0 }
 0x1ab   : > { %v9829_v17 = vpop.f32.mrf.mxu1 }
 0x1ac   : > { %v9835_v38 = vpop.f32.mrf.mxu0  ;;  %7897 = vmatmul.mubr.msk.f32.gmra.mxu0 %vm264_vm1, %v6429_v25  ;;  %v6433_v25 = vld [vmem:[%s8247_s27 + $0xf8] sm:$0xff] }
 0x1ad   : > { %v9837_v4 = vpop.f32.mrf.mxu1  ;;  %7947 = vmatmul.mubr.msk.f32.gmra.mxu1 %vm264_vm1, %v9825_v11  ;;  %7899 = vmatprep.mubr.msk.f32.mxu0 %vm264_vm1, %v6430_v52  ;;  %v9869_v52 = vld [vmem:[%s8247_s27 + $0xf9] sm:$0xff] }
 0x1ae   : > { %7949 = vmatprep.mubr.msk.f32.mxu1 %vm264_vm1, %v9833_v24  ;;  %v9849_v0 = vpop.f32.mrf.mxu0  ;;  %10938 = vst [vmem:[#allocation32_spill] sm:$0xff] %v9869_v52 }
 0x1af   : > { %v9851_v22 = vpop.f32.mrf.mxu1 }
 0x1b0   : > { %10934 = vst [vmem:[#allocation30_spill] sm:$0xff] %v9851_v22  ;;  %v9857_v16 = vpop.f32.mrf.mxu0  ;;  %7900 = vmatmul.mubr.msk.f32.gmra.mxu0 %vm264_vm1, %v6431_v20  ;;  %v6434_v20 = vld [vmem:[%s8247_s27 + $0x108] sm:$0xff] }
 0x1b1   : > { %10936 = vst [vmem:[#allocation31_spill] sm:$0xff] %v9857_v16  ;;  %v9859_v59 = vpop.f32.mrf.mxu1  ;;  %7950 = vmatmul.mubr.msk.f32.gmra.mxu1 %vm264_vm1, %v9847_v39  ;;  %7902 = vmatprep.mubr.msk.f32.mxu0 %vm264_vm1, %v6432_v61  ;;  %v9877_v22 = vld [vmem:[%s8247_s27 + $0x109] sm:$0xff] }
 0x1b2   : > { %10937 = vst [vmem:[#allocation4_spill] sm:$0xff] %v9859_v59  ;;  %7952 = vmatprep.mubr.msk.f32.mxu1 %vm264_vm1, %v9855_v48  ;;  %v9871_v35 = vpop.f32.mrf.mxu0  ;;  %10941 = vst [vmem:[#allocation6_spill] sm:$0xff] %v9877_v22  ;;  %v6435_v61 = vld [vmem:[%s8247_s27 + $0x110] sm:$0xff] }
 0x1b3   : > { %10939 = vst [vmem:[#allocation5_spill] sm:$0xff] %v9871_v35  ;;  %v9873_v59 = vpop.f32.mrf.mxu1  ;;  %v9899_v35 = vld [vmem:[%s8247_s27 + $0x121] sm:$0xff] }
 0x1b4   : > { %10940 = vst [vmem:[#allocation33_spill] sm:$0xff] %v9873_v59  ;;  %v9879_v16 = vpop.f32.mrf.mxu0  ;;  %7903 = vmatmul.mubr.msk.f32.gmra.mxu0 %vm264_vm1, %v6433_v25  ;;  %v9891_v59 = vld [vmem:[%s8247_s27 + $0x111] sm:$0xff]  ;;  %v6436_v25 = vld [vmem:[%s8247_s27 + $0x120] sm:$0xff]  ;;  %10947 = vst [vmem:[#allocation9_spill] sm:$0xff] %v9899_v35 }
 0x1b5   : > { %10942 = vst [vmem:[#allocation34_spill] sm:$0xff] %v9879_v16  ;;  %v9881_v39 = vpop.f32.mrf.mxu1  ;;  %7953 = vmatmul.mubr.msk.f32.gmra.mxu1 %vm264_vm1, %v9869_v52  ;;  %7905 = vmatprep.mubr.msk.f32.mxu0 %vm264_vm1, %v6434_v20  ;;  %10944 = vst [vmem:[#allocation35_spill] sm:$0xff] %v9891_v59  ;;  %v6437_v20 = vld [vmem:[%s8247_s27 + $0x128] sm:$0xff] }
 0x1b6   : > { %10943 = vst [vmem:[#allocation7_spill] sm:$0xff] %v9881_v39  ;;  %7955 = vmatprep.mubr.msk.f32.mxu1 %vm264_vm1, %v9877_v22  ;;  %v9893_v16 = vpop.f32.mrf.mxu0  ;;  %v9921_v22 = vld [vmem:[%s8247_s27 + $0x139] sm:$0xff] }
 0x1b7   : > { %10945 = vst [vmem:[#allocation8_spill] sm:$0xff] %v9893_v16  ;;  %v9895_v39 = vpop.f32.mrf.mxu1  ;;  %10953 = vst [vmem:[#allocation43_spill] sm:$0xff] %v9921_v22 }
 0x1b8   : > { %10946 = vst [vmem:[#allocation36_spill] sm:$0xff] %v9895_v39  ;;  %v9901_v48 = vpop.f32.mrf.mxu0  ;;  %7906 = vmatmul.mubr.msk.f32.gmra.mxu0 %vm264_vm1, %v6435_v61  ;;  %v9913_v39 = vld [vmem:[%s8247_s27 + $0x129] sm:$0xff]  ;;  %v6438_v61 = vld [vmem:[%s8247_s27 + $0x138] sm:$0xff] }
 0x1b9   : > { %10948 = vst [vmem:[#allocation37_spill] sm:$0xff] %v9901_v48  ;;  %v9903_v52 = vpop.f32.mrf.mxu1  ;;  %7956 = vmatmul.mubr.msk.f32.gmra.mxu1 %vm264_vm1, %v9891_v59  ;;  %7908 = vmatprep.mubr.msk.f32.mxu0 %vm264_vm1, %v6436_v25  ;;  %10950 = vst [vmem:[#allocation39_spill] sm:$0xff] %v9913_v39  ;;  %v6439_v25 = vld [vmem:[%s8247_s27 + $0x140] sm:$0xff] }
 0x1ba   : > { %10949 = vst [vmem:[#allocation38_spill] sm:$0xff] %v9903_v52  ;;  %7958 = vmatprep.mubr.msk.f32.mxu1 %vm264_vm1, %v9899_v35  ;;  %v9915_v48 = vpop.f32.mrf.mxu0 }
 0x1bb   : > { %10951 = vst [vmem:[#allocation40_spill] sm:$0xff] %v9915_v48  ;;  %v9917_v52 = vpop.f32.mrf.mxu1  ;;  %v9943_v48 = vld [vmem:[%s8247_s27 + $0x151] sm:$0xff] }
 0x1bc   : > { %10952 = vst [vmem:[#allocation41_spill] sm:$0xff] %v9917_v52  ;;  %v9923_v16 = vpop.f32.mrf.mxu0  ;;  %7909 = vmatmul.mubr.msk.f32.gmra.mxu0 %vm264_vm1, %v6437_v20  ;;  %v9935_v52 = vld [vmem:[%s8247_s27 + $0x141] sm:$0xff]  ;;  %v6440_v20 = vld [vmem:[%s8247_s27 + $0x150] sm:$0xff]  ;;  %10959 = vst [vmem:[#allocation49_spill] sm:$0xff] %v9943_v48 }
 0x1bd   : > { %10954 = vst [vmem:[#allocation44_spill] sm:$0xff] %v9923_v16  ;;  %v9925_v59 = vpop.f32.mrf.mxu1  ;;  %7959 = vmatmul.mubr.msk.f32.gmra.mxu1 %vm264_vm1, %v9913_v39  ;;  %7911 = vmatprep.mubr.msk.f32.mxu0 %vm264_vm1, %v6438_v61  ;;  %10956 = vst [vmem:[#allocation46_spill] sm:$0xff] %v9935_v52  ;;  %v6441_v61 = vld [vmem:[%s8247_s27 + $0x158] sm:$0xff] }
 0x1be   : > { %10955 = vst [vmem:[#allocation45_spill] sm:$0xff] %v9925_v59  ;;  %7961 = vmatprep.mubr.msk.f32.mxu1 %vm264_vm1, %v9921_v22  ;;  %v9937_v16 = vpop.f32.mrf.mxu0  ;;  %v9965_v22 = vld [vmem:[%s8247_s27 + $0x169] sm:$0xff] }
 0x1bf   : > { %10957 = vst [vmem:[#allocation47_spill] sm:$0xff] %v9937_v16  ;;  %v9939_v59 = vpop.f32.mrf.mxu1  ;;  %10965 = vst [vmem:[#allocation55_spill] sm:$0xff] %v9965_v22 }
 0x1c0   : > { %10958 = vst [vmem:[#allocation48_spill] sm:$0xff] %v9939_v59  ;;  %v9945_v35 = vpop.f32.mrf.mxu0  ;;  %7912 = vmatmul.mubr.msk.f32.gmra.mxu0 %vm264_vm1, %v6439_v25  ;;  %v9957_v59 = vld [vmem:[%s8247_s27 + $0x159] sm:$0xff]  ;;  %v6442_v25 = vld [vmem:[%s8247_s27 + $0x168] sm:$0xff] }
 0x1c1   : > { %10960 = vst [vmem:[#allocation50_spill] sm:$0xff] %v9945_v35  ;;  %v9947_v39 = vpop.f32.mrf.mxu1  ;;  %7962 = vmatmul.mubr.msk.f32.gmra.mxu1 %vm264_vm1, %v9935_v52  ;;  %7914 = vmatprep.mubr.msk.f32.mxu0 %vm264_vm1, %v6440_v20  ;;  %10962 = vst [vmem:[#allocation52_spill] sm:$0xff] %v9957_v59  ;;  %v6443_v20 = vld [vmem:[%s8247_s27 + $0x170] sm:$0xff] }
 0x1c2   : > { %10961 = vst [vmem:[#allocation51_spill] sm:$0xff] %v9947_v39  ;;  %7964 = vmatprep.mubr.msk.f32.mxu1 %vm264_vm1, %v9943_v48  ;;  %v9959_v35 = vpop.f32.mrf.mxu0 }
 0x1c3   : > { %10963 = vst [vmem:[#allocation53_spill] sm:$0xff] %v9959_v35  ;;  %v9961_v39 = vpop.f32.mrf.mxu1  ;;  %v9987_v35 = vld [vmem:[%s8247_s27 + $0x181] sm:$0xff] }
 0x1c4   : > { %10964 = vst [vmem:[#allocation54_spill] sm:$0xff] %v9961_v39  ;;  %v9967_v16 = vpop.f32.mrf.mxu0  ;;  %7915 = vmatmul.mubr.msk.f32.gmra.mxu0 %vm264_vm1, %v6441_v61  ;;  %v9979_v39 = vld [vmem:[%s8247_s27 + $0x171] sm:$0xff]  ;;  %v6444_v61 = vld [vmem:[%s8247_s27 + $0x180] sm:$0xff]  ;;  %10971 = vst [vmem:[#allocation61_spill] sm:$0xff] %v9987_v35 }
 0x1c5   : > { %10966 = vst [vmem:[#allocation56_spill] sm:$0xff] %v9967_v16  ;;  %v9969_v52 = vpop.f32.mrf.mxu1  ;;  %7965 = vmatmul.mubr.msk.f32.gmra.mxu1 %vm264_vm1, %v9957_v59  ;;  %7917 = vmatprep.mubr.msk.f32.mxu0 %vm264_vm1, %v6442_v25  ;;  %10968 = vst [vmem:[#allocation58_spill] sm:$0xff] %v9979_v39  ;;  %v6445_v25 = vld [vmem:[%s8247_s27 + $0x188] sm:$0xff] }
 0x1c6   : > { %10967 = vst [vmem:[#allocation57_spill] sm:$0xff] %v9969_v52  ;;  %7967 = vmatprep.mubr.msk.f32.mxu1 %vm264_vm1, %v9965_v22  ;;  %v9981_v16 = vpop.f32.mrf.mxu0 }
 0x1c7   : > { %10969 = vst [vmem:[#allocation59_spill] sm:$0xff] %v9981_v16  ;;  %v9983_v52 = vpop.f32.mrf.mxu1 }
 0x1c8   : > { %10970 = vst [vmem:[#allocation60_spill] sm:$0xff] %v9983_v52  ;;  %v9989_v48 = vpop.f32.mrf.mxu0  ;;  %7918 = vmatmul.mubr.msk.f32.gmra.mxu0 %vm264_vm1, %v6443_v20  ;;  %v10001_v52 = vld [vmem:[%s8247_s27 + $0x189] sm:$0xff]  ;;  %v10009_v20 = vld [vmem:[%s8247_s27 + $0x199] sm:$0xff] }
 0x1c9   : > { %10972 = vst [vmem:[#allocation62_spill] sm:$0xff] %v9989_v48  ;;  %v9991_v59 = vpop.f32.mrf.mxu1  ;;  %7968 = vmatmul.mubr.msk.f32.gmra.mxu1 %vm264_vm1, %v9979_v39  ;;  %7920 = vmatprep.mubr.msk.f32.mxu0 %vm264_vm1, %v6444_v61  ;;  %10974 = vst [vmem:[#allocation64_spill] sm:$0xff] %v10001_v52  ;;  %v6447_v61 = vld [vmem:[%s8247_s27 + $0x1a0] sm:$0xff] }
 0x1ca   : > { %10973 = vst [vmem:[#allocation63_spill] sm:$0xff] %v9991_v59  ;;  %7970 = vmatprep.mubr.msk.f32.mxu1 %vm264_vm1, %v9987_v35  ;;  %v10003_v22 = vpop.f32.mrf.mxu0  ;;  %v6446_v59 = vld [vmem:[%s8247_s27 + $0x198] sm:$0xff]  ;;  %10977 = vst [vmem:[#allocation67_spill] sm:$0xff] %v10009_v20 }
 0x1cb   : > { %10975 = vst [vmem:[#allocation65_spill] sm:$0xff] %v10003_v22  ;;  %v10005_v48 = vpop.f32.mrf.mxu1 }
 0x1cc   : > { %10976 = vst [vmem:[#allocation66_spill] sm:$0xff] %v10005_v48  ;;  %v10011_v16 = vpop.f32.mrf.mxu0  ;;  %7921 = vmatmul.mubr.msk.f32.gmra.mxu0 %vm264_vm1, %v6445_v25  ;;  %v10023_v48 = vld [vmem:[%s8247_s27 + $0x1a1] sm:$0xff] }
 0x1cd   : > { %10978 = vst [vmem:[#allocation68_spill] sm:$0xff] %v10011_v16  ;;  %v10013_v39 = vpop.f32.mrf.mxu1  ;;  %7971 = vmatmul.mubr.msk.f32.gmra.mxu1 %vm264_vm1, %v10001_v52  ;;  %7923 = vmatprep.mubr.msk.f32.mxu0 %vm264_vm1, %v6446_v59  ;;  %10980 = vst [vmem:[#allocation70_spill] sm:$0xff] %v10023_v48  ;;  %v6583_v59 = vld [vmem:[%s8247_s27 + $0x3a] sm:$0xff] }
 0x1ce   : > { %10979 = vst [vmem:[#allocation69_spill] sm:$0xff] %v10013_v39  ;;  %7973 = vmatprep.mubr.msk.f32.mxu1 %vm264_vm1, %v10009_v20  ;;  %v10025_v22 = vpop.f32.mrf.mxu0  ;;  %v6582_v39 = vld [vmem:[%s8247_s27 + $0x32] sm:$0xff]  ;;  %v10987_v52 = vld [vmem:[#allocation42_spill] sm:$0xff] }
 0x1cf   : > { %10981 = vst [vmem:[#allocation71_spill] sm:$0xff] %v10025_v22  ;;  %v10027_v16 = vpop.f32.mrf.mxu1 }
 0x1d0   : > { %10982 = vst [vmem:[#allocation72_spill] sm:$0xff] %v10027_v16  ;;  %v10030_v35 = vpop.f32.mrf.mxu0  ;;  %7924 = vmatmul.mubr.msk.f32.gmra.mxu0 %vm264_vm1, %v6447_v61 }
 0x1d1   : > { %10983 = vst [vmem:[#allocation73_spill] sm:$0xff] %v10030_v35  ;;  %v10032_v25 = vpop.f32.mrf.mxu1  ;;  %7974 = vmatmul.mubr.msk.f32.gmra.mxu1 %vm264_vm1, %v10023_v48  ;;  %7978 = vmatprep.mubr.msk.f32.mxu0 %vm264_vm1, %v9658_v54  ;;  %v6584_v35 = vld [vmem:[%s8247_s27 + $0x4a] sm:$0xff]  ;;  %v10988_v54 = vld [vmem:[#allocation10_spill] sm:$0xff] }
 0x1d2   : > { %10984 = vst [vmem:[#allocation74_spill] sm:$0xff] %v10032_v25  ;;  %8028 = vmatprep.mubr.msk.f32.mxu1 %vm264_vm1, %v6582_v39  ;;  %v10041_v20 = vpop.f32.mrf.mxu0  ;;  %v2518_v25 = vadd.f32 %v9684_v28, %v10987_v52  ;;  %v2517_v39 = vadd.f32 %v9703_v43, %v10988_v54  ;;  %v6585_v28 = vld [vmem:[%s8247_s27 + $0x52] sm:$0xff]  ;;  %v10066_v43 = vld [vmem:[%s10765_s2] ss:$0 sm:$0xff] }
 0x1d3   : > { %10985 = vst [vmem:[#allocation75_spill] sm:$0xff] %v10041_v20  ;;  %v10043_v16 = vpop.f32.mrf.mxu1 }
 0x1d4   : > { %10986 = vst [vmem:[#allocation76_spill] sm:$0xff] %v10043_v16  ;;  %v7680_v61 = vpop.f32.mrf.mxu0  ;;  %7979 = vmatmul.mubr.msk.f32.vlgmr.msra.gmra.mxu0 %vm264_vm1, %v9677_v47  ;;  %v2520_v47 = vadd.f32 %v9719_v49, %v9221_v15 }
 0x1d5   : > { %v7730_v22 = vpop.f32.mrf.mxu1  ;;  %8029 = vmatmul.mubr.msk.f32.vlgmr.msra.gmra.mxu1 %vm264_vm1, %v6583_v59  ;;  %v10054_v48 = vadd.f32 %v7680_v61, %v9686_v34  ;;  %7981 = vmatprep.mubr.msk.f32.mxu0 %vm264_vm1, %v9692_v55 }
 0x1d6   : > { %v3368_v20 = vadd.f32 %v7730_v22, %v2518_v25  ;;  %8031 = vmatprep.mubr.msk.f32.mxu1 %vm264_vm1, %v6584_v35  ;;  %v2848_v52 = vpop.f32.mrf.mxu0 }
 0x1d7   : > { %v3208_v16 = vpop.f32.mrf.mxu1  ;;  %v10070_v22 = vadd.f32 %v2848_v52, %v9705_v53  ;;  %v6587_v53 = vld [vmem:[%s8247_s27 + $0x6a] sm:$0xff] }
 0x1d8   : > { %v5428_v34 = vadd.f32 %v10066_v43, %v3368_v20  ;;  %v3367_v55 = vadd.f32 %v3208_v16, %v2517_v39  ;;  %v7683_v35 = vpop.f32.mrf.mxu0  ;;  %7982 = vmatmul.mubr.msk.f32.gmra.mxu0 %vm264_vm1, %v9701_v60  ;;  %v10989_v16 = vld [vmem:[#allocation11_spill] sm:$0xff]  ;;  %v2522_v60 = vadd.f32 %v9745_v41, %v9233_v6 }
 0x1d9   : > { %v7733_v25 = vpop.f32.mrf.mxu1  ;;  %8032 = vmatmul.mubr.msk.f32.gmra.mxu1 %vm264_vm1, %v6585_v28  ;;  %v10077_v59 = vadd.f32 %v7683_v35, %v9721_v7  ;;  %7984 = vmatprep.mubr.msk.f32.mxu0 %vm264_vm1, %v9712_v45  ;;  %v2519_v20 = vadd.f32 %v9735_v29, %v10989_v16  ;;  %v6588_v28 = vld [vmem:[%s8247_s27 + $0x7a] sm:$0xff] }
 0x1da   : > { %v5460_v15 = vmul.f32 0.2, %v5428_v34  ;;  %v5427_v49 = vadd.f32 %v10066_v43, %v3367_v55  ;;  %v3370_v61 = vadd.f32 %v7733_v25, %v2520_v47  ;;  %8034 = vmatprep.mubr.msk.f32.mxu1 %vm264_vm1, %v6586_v50  ;;  %v2858_v54 = vpop.f32.mrf.mxu0  ;;  %v2521_v50 = vadd.f32 %v9761_v14, %v9239_v13  ;;  %v6589_v13 = vld [vmem:[%s8247_s27 + $0x82] sm:$0xff] }
 0x1db   : > { %v3218_v39 = vpop.f32.mrf.mxu1  ;;  %v10090_v45 = vadd.f32 %v2858_v54, %v9737_v36 }
 0x1dc   : > { %v5492_v52 = vmax.f32 %v5428_v34, %v5460_v15  ;;  %v5459_v7 = vmul.f32 0.2, %v5427_v49  ;;  %v5430_v47 = vadd.f32 %v10066_v43, %v3370_v61  ;;  %v3369_v55 = vadd.f32 %v3218_v39, %v2519_v20  ;;  %v7686_v35 = vpop.f32.mrf.mxu0  ;;  %7985 = vmatmul.mubr.msk.f32.gmra.mxu0 %vm264_vm1, %v9731_v44  ;;  %v6591_v39 = vld [vmem:[%s8247_s27 + $0x9a] sm:$0xff] }
 0x1dd   : > { %v7736_v29 = vpop.f32.mrf.mxu1  ;;  %8035 = vmatmul.mubr.msk.f32.gmra.mxu1 %vm264_vm1, %v6587_v53  ;;  %v10100_v36 = vadd.f32 %v7686_v35, %v9747_v30  ;;  %7987 = vmatprep.mubr.msk.f32.mxu0 %vm264_vm1, %v9741_v21  ;;  %v2524_v44 = vadd.f32 %v9769_v63, %v9245_v46 }
 0x1de   : > { %6650 = vst.msk [vmem:[%s9452_s7 + $0x108] sm:$0xff] %vm264_vm1, %v5492_v52  ;;  %v5491_v6 = vmax.f32 %v5427_v49, %v5459_v7  ;;  %v5462_v41 = vmul.f32 0.2, %v5430_v47  ;;  %v3372_v34 = vadd.f32 %v7736_v29, %v2522_v60  ;;  %8037 = vmatprep.mubr.msk.f32.mxu1 %vm264_vm1, %v6588_v28  ;;  %v5429_v14 = vadd.f32 %v10066_v43, %v3369_v55  ;;  %v2868_v25 = vpop.f32.mrf.mxu0  ;;  %v6590_v49 = vld [vmem:[%s8247_s27 + $0x92] sm:$0xff] }
 0x1df   : > { %v3228_v15 = vpop.f32.mrf.mxu1  ;;  %v10114_v21 = vadd.f32 %v2868_v25, %v9763_v57  ;;  %v2526_v28 = vadd.f32 %v9791_v56, %v9257_v58  ;;  %v2525_v29 = vadd.f32 %v9805_v8, %v9263_v23  ;;  %v6593_v8 = vld [vmem:[%s8247_s27 + $0xb2] sm:$0xff] }
 0x1e0   : > { %6649 = vst.msk [vmem:[%s9452_s7 + $0x100] sm:$0xff] %vm264_vm1, %v5491_v6  ;;  %v5494_v30 = vmax.f32 %v5430_v47, %v5462_v41  ;;  %v5432_v61 = vadd.f32 %v10066_v43, %v3372_v34  ;;  %v3371_v53 = vadd.f32 %v3228_v15, %v2521_v50  ;;  %v5461_v16 = vmul.f32 0.2, %v5429_v14  ;;  %v7689_v20 = vpop.f32.mrf.mxu0  ;;  %7988 = vmatmul.mubr.msk.f32.gmra.mxu0 %vm264_vm1, %v9759_v37 }
 0x1e1   : > { %v7739_v60 = vpop.f32.mrf.mxu1  ;;  %8038 = vmatmul.mubr.msk.f32.gmra.mxu1 %vm264_vm1, %v6589_v13  ;;  %v10123_v54 = vadd.f32 %v7689_v20, %v9771_v33  ;;  %7990 = vmatprep.mubr.msk.f32.mxu0 %vm264_vm1, %v9767_v32  ;;  %v2523_v37 = vadd.f32 %v9783_v40, %v9251_v19  ;;  %v6592_v33 = vld [vmem:[%s8247_s27 + $0xaa] sm:$0xff] }
 0x1e2   : > { %6652 = vst.msk [vmem:[%s9452_s7 + $0x118] sm:$0xff] %vm264_vm1, %v5494_v30  ;;  %v5464_v46 = vmul.f32 0.2, %v5432_v61  ;;  %v5431_v63 = vadd.f32 %v10066_v43, %v3371_v53  ;;  %v3374_v57 = vadd.f32 %v7739_v60, %v2524_v44  ;;  %8040 = vmatprep.mubr.msk.f32.mxu1 %vm264_vm1, %v6590_v49  ;;  %v5493_v52 = vmax.f32 %v5429_v14, %v5461_v16  ;;  %v2878_v7 = vpop.f32.mrf.mxu0  ;;  %v6594_v44 = vld [vmem:[%s8247_s27 + $0xc2] sm:$0xff]  ;;  %v6595_v53 = vld [vmem:[%s8247_s27 + $0xca] sm:$0xff] }
 0x1e3   : > { %v3238_v47 = vpop.f32.mrf.mxu1  ;;  %v10136_v32 = vadd.f32 %v2878_v7, %v9785_v9  ;;  %v2530_v16 = vadd.f32 %v9835_v38, %v9281_v62  ;;  %v10991_v7 = vld [vmem:[#allocation31_spill] sm:$0xff] }
 0x1e4   : > { %v5496_v50 = vmax.f32 %v5432_v61, %v5464_v46  ;;  %v5463_v55 = vmul.f32 0.2, %v5431_v63  ;;  %v5434_v35 = vadd.f32 %v10066_v43, %v3374_v57  ;;  %6651 = vst.msk [vmem:[%s9452_s7 + $0x110] sm:$0xff] %vm264_vm1, %v5493_v52  ;;  %v3373_v19 = vadd.f32 %v3238_v47, %v2523_v37  ;;  %v7692_v58 = vpop.f32.mrf.mxu0  ;;  %7991 = vmatmul.mubr.msk.f32.gmra.mxu0 %vm264_vm1, %v9781_v42  ;;  %v10990_v52 = vld [vmem:[#allocation12_spill] sm:$0xff] }
 0x1e5   : > { %v7742_v40 = vpop.f32.mrf.mxu1  ;;  %8041 = vmatmul.mubr.msk.f32.gmra.mxu1 %vm264_vm1, %v6591_v39  ;;  %v10148_v6 = vadd.f32 %v7692_v58, %v9793_v5  ;;  %7993 = vmatprep.mubr.msk.f32.mxu0 %vm264_vm1, %v9789_v51  ;;  %v2528_v42 = vadd.f32 %v9813_v1, %v9269_v2  ;;  %v2529_v37 = vadd.f32 %v9849_v0, %v9287_v31  ;;  %v6597_v0 = vld [vmem:[%s8247_s27 + $0xe2] sm:$0xff] }
 0x1e6   : > { %6654 = vst.msk [vmem:[%s9452_s7 + $0x128] sm:$0xff] %vm264_vm1, %v5496_v50  ;;  %v5495_v56 = vmax.f32 %v5431_v63, %v5463_v55  ;;  %v5466_v9 = vmul.f32 0.2, %v5434_v35  ;;  %v3376_v23 = vadd.f32 %v7742_v40, %v2526_v28  ;;  %8043 = vmatprep.mubr.msk.f32.mxu1 %vm264_vm1, %v6592_v33  ;;  %v5433_v41 = vadd.f32 %v10066_v43, %v3373_v19  ;;  %v2888_v34 = vpop.f32.mrf.mxu0  ;;  %v6598_v55 = vld [vmem:[%s8247_s27 + $0xf2] sm:$0xff] }
 0x1e7   : > { %v3248_v13 = vpop.f32.mrf.mxu1  ;;  %v10162_v51 = vadd.f32 %v2888_v34, %v9807_v12 }
 0x1e8   : > { %6653 = vst.msk [vmem:[%s9452_s7 + $0x120] sm:$0xff] %vm264_vm1, %v5495_v56  ;;  %v5498_v5 = vmax.f32 %v5434_v35, %v5466_v9  ;;  %v5436_v14 = vadd.f32 %v10066_v43, %v3376_v23  ;;  %v3375_v25 = vadd.f32 %v3248_v13, %v2525_v29  ;;  %v5465_v15 = vmul.f32 0.2, %v5433_v41  ;;  %v7695_v49 = vpop.f32.mrf.mxu0  ;;  %7994 = vmatmul.mubr.msk.f32.gmra.mxu0 %vm264_vm1, %v9803_v10  ;;  %v10992_v29 = vld [vmem:[#allocation30_spill] sm:$0xff]  ;;  %v10995_v13 = vld [vmem:[#allocation3_spill] sm:$0xff] }
 0x1e9   : > { %v7745_v30 = vpop.f32.mrf.mxu1  ;;  %8044 = vmatmul.mubr.msk.f32.gmra.mxu1 %vm264_vm1, %v6593_v8  ;;  %v10171_v61 = vadd.f32 %v7695_v49, %v9815_v18  ;;  %7996 = vmatprep.mubr.msk.f32.mxu0 %vm264_vm1, %v9811_v26  ;;  %v2527_v10 = vadd.f32 %v9827_v3, %v9275_v27  ;;  %v6596_v18 = vld [vmem:[%s8247_s27 + $0xda] sm:$0xff] }
 0x1ea   : > { %6656 = vst.msk [vmem:[%s9452_s7 + $0x138] sm:$0xff] %vm264_vm1, %v5498_v5  ;;  %v5468_v2 = vmul.f32 0.2, %v5436_v14  ;;  %v5435_v1 = vadd.f32 %v10066_v43, %v3375_v25  ;;  %v3378_v12 = vadd.f32 %v7745_v30, %v2528_v42  ;;  %8046 = vmatprep.mubr.msk.f32.mxu1 %vm264_vm1, %v6594_v44  ;;  %v5497_v20 = vmax.f32 %v5433_v41, %v5465_v15  ;;  %v2898_v60 = vpop.f32.mrf.mxu0  ;;  %v10993_v9 = vld [vmem:[#allocation2_spill] sm:$0xff]  ;;  %v10994_v42 = vld [vmem:[#allocation4_spill] sm:$0xff]  ;;  %v10996_v5 = vld [vmem:[#allocation13_spill] sm:$0xff] }
 0x1eb   : > { %v3258_v46 = vpop.f32.mrf.mxu1  ;;  %v10184_v26 = vadd.f32 %v2898_v60, %v9829_v17  ;;  %v6599_v44 = vld [vmem:[%s8247_s27 + $0xfa] sm:$0xff] }
 0x1ec   : > { %v5500_v63 = vmax.f32 %v5436_v14, %v5468_v2  ;;  %v5467_v57 = vmul.f32 0.2, %v5435_v1  ;;  %v5438_v39 = vadd.f32 %v10066_v43, %v3378_v12  ;;  %6655 = vst.msk [vmem:[%s9452_s7 + $0x130] sm:$0xff] %vm264_vm1, %v5497_v20  ;;  %v3377_v27 = vadd.f32 %v3258_v46, %v2527_v10  ;;  %v7698_v62 = vpop.f32.mrf.mxu0  ;;  %7997 = vmatmul.mubr.msk.f32.gmra.mxu0 %vm264_vm1, %v9825_v11  ;;  %v10997_v14 = vld [vmem:[#allocation5_spill] sm:$0xff]  ;;  %v10998_v15 = vld [vmem:[#allocation14_spill] sm:$0xff] }
 0x1ed   : > { %v7748_v3 = vpop.f32.mrf.mxu1  ;;  %8047 = vmatmul.mubr.msk.f32.gmra.mxu1 %vm264_vm1, %v6595_v53  ;;  %v10196_v28 = vadd.f32 %v7698_v62, %v9837_v4  ;;  %7999 = vmatprep.mubr.msk.f32.mxu0 %vm264_vm1, %v9833_v24  ;;  %v2532_v11 = vadd.f32 %v10991_v7, %v10990_v52  ;;  %v2531_v25 = vadd.f32 %v10997_v14, %v10996_v5  ;;  %v10999_v49 = vld [vmem:[#allocation34_spill] sm:$0xff]  ;;  %v6600_v53 = vld [vmem:[%s8247_s27 + $0x10a] sm:$0xff]  ;;  %v11000_v60 = vld [vmem:[#allocation33_spill] sm:$0xff] }
 0x1ee   : > { %6658 = vst.msk [vmem:[%s9452_s7 + $0x148] sm:$0xff] %vm264_vm1, %v5500_v63  ;;  %v5499_v38 = vmax.f32 %v5435_v1, %v5467_v57  ;;  %v5470_v17 = vmul.f32 0.2, %v5438_v39  ;;  %v3380_v31 = vadd.f32 %v7748_v3, %v2530_v16  ;;  %8049 = vmatprep.mubr.msk.f32.mxu1 %vm264_vm1, %v6596_v18  ;;  %v5437_v47 = vadd.f32 %v10066_v43, %v3377_v27  ;;  %v2908_v33 = vpop.f32.mrf.mxu0  ;;  %v11001_v18 = vld [vmem:[#allocation15_spill] sm:$0xff]  ;;  %v11002_v63 = vld [vmem:[#allocation8_spill] sm:$0xff]  ;;  %v11005_v52 = vld [vmem:[#allocation6_spill] sm:$0xff] }
 0x1ef   : > { %v3268_v50 = vpop.f32.mrf.mxu1  ;;  %v10210_v24 = vadd.f32 %v2908_v33, %v10992_v29  ;;  %v2534_v30 = vadd.f32 %v10999_v49, %v10998_v15  ;;  %v2533_v57 = vadd.f32 %v11002_v63, %v11001_v18  ;;  %v11003_v62 = vld [vmem:[#allocation32_spill] sm:$0xff]  ;;  %v11012_v49 = vld [vmem:[#allocation17_spill] sm:$0xff] }
 0x1f0   : > { %6657 = vst.msk [vmem:[%s9452_s7 + $0x140] sm:$0xff] %vm264_vm1, %v5499_v38  ;;  %v5502_v4 = vmax.f32 %v5438_v39, %v5470_v17  ;;  %v5440_v35 = vadd.f32 %v10066_v43, %v3380_v31  ;;  %v3379_v19 = vadd.f32 %v3268_v50, %v2529_v37  ;;  %v5469_v58 = vmul.f32 0.2, %v5437_v47  ;;  %v7701_v40 = vpop.f32.mrf.mxu0  ;;  %8000 = vmatmul.mubr.msk.f32.gmra.mxu0 %vm264_vm1, %v10993_v9  ;;  %v11004_v17 = vld [vmem:[#allocation7_spill] sm:$0xff]  ;;  %v6601_v7 = vld [vmem:[%s8247_s27 + $0x112] sm:$0xff] }
 0x1f1   : > { %v7751_v56 = vpop.f32.mrf.mxu1  ;;  %8050 = vmatmul.mubr.msk.f32.gmra.mxu1 %vm264_vm1, %v6597_v0  ;;  %v10219_v41 = vadd.f32 %v7701_v40, %v10994_v42  ;;  %8002 = vmatprep.mubr.msk.f32.mxu0 %vm264_vm1, %v10995_v13  ;;  %v11009_v42 = vld [vmem:[#allocation35_spill] sm:$0xff] }
 0x1f2   : > { %6660 = vst.msk [vmem:[%s9452_s7 + $0x158] sm:$0xff] %vm264_vm1, %v5502_v4  ;;  %v5472_v23 = vmul.f32 0.2, %v5440_v35  ;;  %v5439_v8 = vadd.f32 %v10066_v43, %v3379_v19  ;;  %v3382_v34 = vadd.f32 %v7751_v56, %v2532_v11  ;;  %8052 = vmatprep.mubr.msk.f32.mxu1 %vm264_vm1, %v6598_v55  ;;  %v5501_v2 = vmax.f32 %v5437_v47, %v5469_v58  ;;  %v2918_v1 = vpop.f32.mrf.mxu0  ;;  %v11006_v11 = vld [vmem:[#allocation16_spill] sm:$0xff]  ;;  %v11007_v47 = vld [vmem:[#allocation37_spill] sm:$0xff] }
 0x1f3   : > { %v3278_v12 = vpop.f32.mrf.mxu1  ;;  %v10232_v46 = vadd.f32 %v2918_v1, %v11000_v60  ;;  %v2536_v33 = vadd.f32 %v11007_v47, %v11006_v11  ;;  %v11008_v58 = vld [vmem:[#allocation36_spill] sm:$0xff]  ;;  %v11014_v1 = vld [vmem:[#allocation18_spill] sm:$0xff]  ;;  %v11020_v47 = vld [vmem:[#allocation45_spill] sm:$0xff] }
 0x1f4   : > { %v5504_v10 = vmax.f32 %v5440_v35, %v5472_v23  ;;  %v5471_v16 = vmul.f32 0.2, %v5439_v8  ;;  %v5442_v20 = vadd.f32 %v10066_v43, %v3382_v34  ;;  %6659 = vst.msk [vmem:[%s9452_s7 + $0x150] sm:$0xff] %vm264_vm1, %v5501_v2  ;;  %v3381_v39 = vadd.f32 %v3278_v12, %v2531_v25  ;;  %v7704_v37 = vpop.f32.mrf.mxu0  ;;  %8003 = vmatmul.mubr.msk.f32.gmra.mxu0 %vm264_vm1, %v11003_v62  ;;  %v6602_v35 = vld [vmem:[%s8247_s27 + $0x122] sm:$0xff]  ;;  %v11011_v25 = vld [vmem:[#allocation9_spill] sm:$0xff]  ;;  %v6603_v15 = vld [vmem:[%s8247_s27 + $0x12a] sm:$0xff] }
 0x1f5   : > { %v7754_v27 = vpop.f32.mrf.mxu1  ;;  %8053 = vmatmul.mubr.msk.f32.gmra.mxu1 %vm264_vm1, %v6599_v44  ;;  %v10244_v31 = vadd.f32 %v7704_v37, %v11004_v17  ;;  %8005 = vmatprep.mubr.msk.f32.mxu0 %vm264_vm1, %v11005_v52  ;;  %v11010_v44 = vld [vmem:[#allocation38_spill] sm:$0xff]  ;;  %v11015_v12 = vld [vmem:[#allocation44_spill] sm:$0xff]  ;;  %v11018_v62 = vld [vmem:[#allocation47_spill] sm:$0xff] }
 0x1f6   : > { %6662 = vst.msk [vmem:[%s9452_s7 + $0x168] sm:$0xff] %vm264_vm1, %v5504_v10  ;;  %v5503_v3 = vmax.f32 %v5439_v8, %v5471_v16  ;;  %v5474_v38 = vmul.f32 0.2, %v5442_v20  ;;  %v3384_v0 = vadd.f32 %v7754_v27, %v2534_v30  ;;  %8055 = vmatprep.mubr.msk.f32.mxu1 %vm264_vm1, %v6600_v53  ;;  %v5441_v50 = vadd.f32 %v10066_v43, %v3381_v39  ;;  %v2928_v55 = vpop.f32.mrf.mxu0  ;;  %v11013_v30 = vld [vmem:[#allocation40_spill] sm:$0xff]  ;;  %v6604_v60 = vld [vmem:[%s8247_s27 + $0x13a] sm:$0xff]  ;;  %v11017_v27 = vld [vmem:[#allocation19_spill] sm:$0xff] }
 0x1f7   : > { %v3288_v4 = vpop.f32.mrf.mxu1  ;;  %v10258_v40 = vadd.f32 %v2928_v55, %v11008_v58  ;;  %v2535_v2 = vadd.f32 %v11013_v30, %v11012_v49  ;;  %v2538_v53 = vadd.f32 %v11015_v12, %v11014_v1  ;;  %v11016_v39 = vld [vmem:[#allocation41_spill] sm:$0xff]  ;;  %v11019_v52 = vld [vmem:[#allocation39_spill] sm:$0xff]  ;;  %v11025_v49 = vld [vmem:[#allocation46_spill] sm:$0xff] }
 0x1f8   : > { %6661 = vst.msk [vmem:[%s9452_s7 + $0x160] sm:$0xff] %vm264_vm1, %v5503_v3  ;;  %v5506_v29 = vmax.f32 %v5442_v20, %v5474_v38  ;;  %v5444_v19 = vadd.f32 %v10066_v43, %v3384_v0  ;;  %v3383_v56 = vadd.f32 %v3288_v4, %v2533_v57  ;;  %v5473_v9 = vmul.f32 0.2, %v5441_v50  ;;  %v7707_v23 = vpop.f32.mrf.mxu0  ;;  %8006 = vmatmul.mubr.msk.f32.gmra.mxu0 %vm264_vm1, %v11009_v42  ;;  %v11021_v55 = vld [vmem:[#allocation43_spill] sm:$0xff] }
 0x1f9   : > { %v7757_v8 = vpop.f32.mrf.mxu1  ;;  %8056 = vmatmul.mubr.msk.f32.gmra.mxu1 %vm264_vm1, %v6601_v7  ;;  %v10267_v5 = vadd.f32 %v7707_v23, %v11010_v44  ;;  %8008 = vmatprep.mubr.msk.f32.mxu0 %vm264_vm1, %v11011_v25  ;;  %v2537_v3 = vadd.f32 %v11018_v62, %v11017_v27  ;;  %v6605_v4 = vld [vmem:[%s8247_s27 + $0x142] sm:$0xff]  ;;  %v6606_v23 = vld [vmem:[%s8247_s27 + $0x152] sm:$0xff] }
 0x1fa   : > { %6664 = vst.msk [vmem:[%s9452_s7 + $0x178] sm:$0xff] %vm264_vm1, %v5506_v29  ;;  %v5476_v34 = vmul.f32 0.2, %v5444_v19  ;;  %v5443_v13 = vadd.f32 %v10066_v43, %v3383_v56  ;;  %v3386_v14 = vadd.f32 %v7757_v8, %v2536_v33  ;;  %8058 = vmatprep.mubr.msk.f32.mxu1 %vm264_vm1, %v6602_v35  ;;  %v5505_v10 = vmax.f32 %v5441_v50, %v5473_v9  ;;  %v2938_v16 = vpop.f32.mrf.mxu0  ;;  %v11022_v35 = vld [vmem:[#allocation20_spill] sm:$0xff]  ;;  %v11023_v29 = vld [vmem:[#allocation50_spill] sm:$0xff]  ;;  %v11026_v1 = vld [vmem:[#allocation51_spill] sm:$0xff] }
 0x1fb   : > { %v3298_v20 = vpop.f32.mrf.mxu1  ;;  %v10280_v37 = vadd.f32 %v2938_v16, %v11016_v39  ;;  %v6607_v16 = vld [vmem:[%s8247_s27 + $0x15a] sm:$0xff] }
 0x1fc   : > { %v5508_v18 = vmax.f32 %v5444_v19, %v5476_v34  ;;  %v5475_v63 = vmul.f32 0.2, %v5443_v13  ;;  %v5446_v57 = vadd.f32 %v10066_v43, %v3386_v14  ;;  %6663 = vst.msk [vmem:[%s9452_s7 + $0x170] sm:$0xff] %vm264_vm1, %v5505_v10  ;;  %v3385_v38 = vadd.f32 %v3298_v20, %v2535_v2  ;;  %v7710_v17 = vpop.f32.mrf.mxu0  ;;  %8009 = vmatmul.mubr.msk.f32.gmra.mxu0 %vm264_vm1, %v11019_v52  ;;  %v11024_v34 = vld [vmem:[#allocation48_spill] sm:$0xff]  ;;  %v11027_v10 = vld [vmem:[#allocation49_spill] sm:$0xff] }
 0x1fd   : > { %v7760_v0 = vpop.f32.mrf.mxu1  ;;  %8059 = vmatmul.mubr.msk.f32.gmra.mxu1 %vm264_vm1, %v6603_v15  ;;  %v10292_v33 = vadd.f32 %v7710_v17, %v11020_v47  ;;  %8011 = vmatprep.mubr.msk.f32.mxu0 %vm264_vm1, %v11021_v55  ;;  %v2540_v19 = vadd.f32 %v11023_v29, %v11022_v35  ;;  %v11028_v20 = vld [vmem:[#allocation21_spill] sm:$0xff]  ;;  %v11033_v47 = vld [vmem:[#allocation23_spill] sm:$0xff] }
 0x1fe   : > { %6666 = vst.msk [vmem:[%s9452_s7 + $0x188] sm:$0xff] %vm264_vm1, %v5508_v18  ;;  %v5507_v7 = vmax.f32 %v5443_v13, %v5475_v63  ;;  %v5478_v11 = vmul.f32 0.2, %v5446_v57  ;;  %v3388_v50 = vadd.f32 %v7760_v0, %v2538_v53  ;;  %8061 = vmatprep.mubr.msk.f32.mxu1 %vm264_vm1, %v6604_v60  ;;  %v5445_v58 = vadd.f32 %v10066_v43, %v3385_v38  ;;  %v2948_v56 = vpop.f32.mrf.mxu0  ;;  %v11029_v60 = vld [vmem:[#allocation53_spill] sm:$0xff]  ;;  %v11030_v63 = vld [vmem:[#allocation22_spill] sm:$0xff]  ;;  %v6608_v38 = vld [vmem:[%s8247_s27 + $0x16a] sm:$0xff] }
 0x1ff   : > { %v3308_v9 = vpop.f32.mrf.mxu1  ;;  %v10306_v13 = vadd.f32 %v2948_v56, %v11024_v34  ;;  %v2539_v18 = vadd.f32 %v11029_v60, %v11028_v20  ;;  %v6609_v34 = vld [vmem:[%s8247_s27 + $0x172] sm:$0xff] }
 0x200   : > { %6665 = vst.msk [vmem:[%s9452_s7 + $0x180] sm:$0xff] %vm264_vm1, %v5507_v7  ;;  %v5510_v8 = vmax.f32 %v5446_v57, %v5478_v11  ;;  %v5448_v42 = vadd.f32 %v10066_v43, %v3388_v50  ;;  %v3387_v44 = vadd.f32 %v3308_v9, %v2537_v3  ;;  %v5477_v14 = vmul.f32 0.2, %v5445_v58  ;;  %v7713_v25 = vpop.f32.mrf.mxu0  ;;  %8012 = vmatmul.mubr.msk.f32.gmra.mxu0 %vm264_vm1, %v11025_v49  ;;  %v11031_v57 = vld [vmem:[#allocation56_spill] sm:$0xff]  ;;  %v11032_v7 = vld [vmem:[#allocation54_spill] sm:$0xff]  ;;  %v11034_v50 = vld [vmem:[#allocation59_spill] sm:$0xff] }
 0x201   : > { %v7763_v15 = vpop.f32.mrf.mxu1  ;;  %8062 = vmatmul.mubr.msk.f32.gmra.mxu1 %vm264_vm1, %v6605_v4  ;;  %v10315_v12 = vadd.f32 %v7713_v25, %v11026_v1  ;;  %8014 = vmatprep.mubr.msk.f32.mxu0 %vm264_vm1, %v11027_v10  ;;  %v2542_v39 = vadd.f32 %v11031_v57, %v11030_v63  ;;  %v2541_v55 = vadd.f32 %v11034_v50, %v11033_v47  ;;  %v11036_v9 = vld [vmem:[#allocation57_spill] sm:$0xff]  ;;  %v11040_v10 = vld [vmem:[#allocation60_spill] sm:$0xff]  ;;  %v11041_v57 = vld [vmem:[#allocation58_spill] sm:$0xff] }
 0x202   : > { %6668 = vst.msk [vmem:[%s9452_s7 + $0x198] sm:$0xff] %vm264_vm1, %v5510_v8  ;;  %v5480_v30 = vmul.f32 0.2, %v5448_v42  ;;  %v5447_v2 = vadd.f32 %v10066_v43, %v3387_v44  ;;  %v3390_v53 = vadd.f32 %v7763_v15, %v2540_v19  ;;  %8064 = vmatprep.mubr.msk.f32.mxu1 %vm264_vm1, %v6606_v23  ;;  %v5509_v27 = vmax.f32 %v5445_v58, %v5477_v14  ;;  %v2958_v62 = vpop.f32.mrf.mxu0  ;;  %v11035_v19 = vld [vmem:[#allocation52_spill] sm:$0xff]  ;;  %v11039_v14 = vld [vmem:[#allocation62_spill] sm:$0xff] }
 0x203   : > { %v3318_v3 = vpop.f32.mrf.mxu1  ;;  %v10328_v11 = vadd.f32 %v2958_v62, %v11032_v7  ;;  %v11038_v44 = vld [vmem:[#allocation24_spill] sm:$0xff]  ;;  %v11042_v62 = vld [vmem:[#allocation63_spill] sm:$0xff]  ;;  %v11045_v7 = vld [vmem:[#allocation65_spill] sm:$0xff] }
 0x204   : > { %v5512_v17 = vmax.f32 %v5448_v42, %v5480_v30  ;;  %v5479_v0 = vmul.f32 0.2, %v5447_v2  ;;  %v5450_v52 = vadd.f32 %v10066_v43, %v3390_v53  ;;  %6667 = vst.msk [vmem:[%s9452_s7 + $0x190] sm:$0xff] %vm264_vm1, %v5509_v27  ;;  %v3389_v4 = vadd.f32 %v3318_v3, %v2539_v18  ;;  %v7716_v35 = vpop.f32.mrf.mxu0  ;;  %8015 = vmatmul.mubr.msk.f32.gmra.mxu0 %vm264_vm1, %v11035_v19  ;;  %v11037_v42 = vld [vmem:[#allocation55_spill] sm:$0xff]  ;;  %v11046_v50 = vld [vmem:[#allocation26_spill] sm:$0xff] }
 0x205   : > { %v7766_v29 = vpop.f32.mrf.mxu1  ;;  %8065 = vmatmul.mubr.msk.f32.gmra.mxu1 %vm264_vm1, %v6607_v16  ;;  %v10340_v23 = vadd.f32 %v7716_v35, %v11036_v9  ;;  %8017 = vmatprep.mubr.msk.f32.mxu0 %vm264_vm1, %v11037_v42  ;;  %v2544_v25 = vadd.f32 %v11039_v14, %v11038_v44  ;;  %v11048_v42 = vld [vmem:[#allocation66_spill] sm:$0xff]  ;;  %v11049_v44 = vld [vmem:[#allocation27_spill] sm:$0xff] }
 0x206   : > { %6670 = vst.msk [vmem:[%s9452_s7 + $0x1a8] sm:$0xff] %vm264_vm1, %v5512_v17  ;;  %v5511_v58 = vmax.f32 %v5447_v2, %v5479_v0  ;;  %v5482_v56 = vmul.f32 0.2, %v5450_v52  ;;  %v3392_v8 = vadd.f32 %v7766_v29, %v2542_v39  ;;  %8067 = vmatprep.mubr.msk.f32.mxu1 %vm264_vm1, %v6608_v38  ;;  %v5449_v15 = vadd.f32 %v10066_v43, %v3389_v4  ;;  %v2968_v49 = vpop.f32.mrf.mxu0  ;;  %v6610_v2 = vld [vmem:[%s8247_s27 + $0x182] sm:$0xff]  ;;  %v11043_v17 = vld [vmem:[#allocation61_spill] sm:$0xff]  ;;  %v6611_v0 = vld [vmem:[%s8247_s27 + $0x18a] sm:$0xff] }
 0x207   : > { %v3328_v30 = vpop.f32.mrf.mxu1  ;;  %v10354_v16 = vadd.f32 %v2968_v49, %v11040_v10  ;;  %v11050_v14 = vld [vmem:[#allocation71_spill] sm:$0xff]  ;;  %v11052_v10 = vld [vmem:[#allocation69_spill] sm:$0xff] }
 0x208   : > { %6669 = vst.msk [vmem:[%s9452_s7 + $0x1a0] sm:$0xff] %vm264_vm1, %v5511_v58  ;;  %v5514_v1 = vmax.f32 %v5450_v52, %v5482_v56  ;;  %v5452_v53 = vadd.f32 %v10066_v43, %v3392_v8  ;;  %v3391_v20 = vadd.f32 %v3328_v30, %v2541_v55  ;;  %v5481_v60 = vmul.f32 0.2, %v5449_v15  ;;  %v7719_v18 = vpop.f32.mrf.mxu0  ;;  %8018 = vmatmul.mubr.msk.f32.gmra.mxu0 %vm264_vm1, %v11041_v57  ;;  %v11044_v52 = vld [vmem:[#allocation25_spill] sm:$0xff]  ;;  %v11047_v55 = vld [vmem:[#allocation68_spill] sm:$0xff] }
 0x209   : > { %v7769_v63 = vpop.f32.mrf.mxu1  ;;  %8068 = vmatmul.mubr.msk.f32.gmra.mxu1 %vm264_vm1, %v6609_v34  ;;  %v10363_v3 = vadd.f32 %v7719_v18, %v11042_v62  ;;  %8020 = vmatprep.mubr.msk.f32.mxu0 %vm264_vm1, %v11043_v17  ;;  %v2543_v47 = vadd.f32 %v11045_v7, %v11044_v52  ;;  %v2546_v4 = vadd.f32 %v11047_v55, %v11046_v50  ;;  %v6612_v58 = vld [vmem:[%s8247_s27 + $0x19a] sm:$0xff]  ;;  %v11053_v18 = vld [vmem:[#allocation67_spill] sm:$0xff]  ;;  %v11054_v57 = vld [vmem:[#allocation28_spill] sm:$0xff] }
 0x20a   : > { %6672 = vst.msk [vmem:[%s9452_s7 + $0x1b8] sm:$0xff] %vm264_vm1, %v5514_v1  ;;  %v5484_v39 = vmul.f32 0.2, %v5452_v53  ;;  %v5451_v27 = vadd.f32 %v10066_v43, %v3391_v20  ;;  %v3394_v38 = vadd.f32 %v7769_v63, %v2544_v25  ;;  %8070 = vmatprep.mubr.msk.f32.mxu1 %vm264_vm1, %v6610_v2  ;;  %v5513_v35 = vmax.f32 %v5449_v15, %v5481_v60  ;;  %v2978_v29 = vpop.f32.mrf.mxu0  ;;  %v11051_v2 = vld [vmem:[#allocation64_spill] sm:$0xff]  ;;  %v6613_v63 = vld [vmem:[%s8247_s27 + $0x1a2] sm:$0xff] }
 0x20b   : > { %v3338_v19 = vpop.f32.mrf.mxu1  ;;  %v10376_v34 = vadd.f32 %v2978_v29, %v11048_v42  ;;  %v2545_v25 = vadd.f32 %v11050_v14, %v11049_v44  ;;  %v11056_v7 = vld [vmem:[#allocation72_spill] sm:$0xff]  ;;  %v11057_v29 = vld [vmem:[#allocation70_spill] sm:$0xff]  ;;  %v11059_v42 = vld [vmem:[#allocation29_spill] sm:$0xff] }
 0x20c   : > { %v5516_v56 = vmax.f32 %v5452_v53, %v5484_v39  ;;  %v5483_v9 = vmul.f32 0.2, %v5451_v27  ;;  %v5454_v8 = vadd.f32 %v10066_v43, %v3394_v38  ;;  %6671 = vst.msk [vmem:[%s9452_s7 + $0x1b0] sm:$0xff] %vm264_vm1, %v5513_v35  ;;  %v3393_v49 = vadd.f32 %v3338_v19, %v2543_v47  ;;  %v7722_v30 = vpop.f32.mrf.mxu0  ;;  %8021 = vmatmul.mubr.msk.f32.gmra.mxu0 %vm264_vm1, %v11051_v2  ;;  %v11055_v39 = vld [vmem:[#allocation73_spill] sm:$0xff]  ;;  %v11060_v44 = vld [vmem:[#allocation75_spill] sm:$0xff] }
 0x20d   : > { %v7772_v15 = vpop.f32.mrf.mxu1  ;;  %8071 = vmatmul.mubr.msk.f32.gmra.mxu1 %vm264_vm1, %v6611_v0  ;;  %v10388_v20 = vadd.f32 %v7722_v30, %v11052_v10  ;;  %8023 = vmatprep.mubr.msk.f32.mxu0 %vm264_vm1, %v11053_v18  ;;  %v2548_v62 = vadd.f32 %v11055_v39, %v11054_v57  ;;  %v2547_v14 = vadd.f32 %v11060_v44, %v11059_v42 }
 0x20e   : > { %6674 = vst.msk [vmem:[%s9452_s7 + $0x1c8] sm:$0xff] %vm264_vm1, %v5516_v56  ;;  %v5515_v1 = vmax.f32 %v5451_v27, %v5483_v9  ;;  %v5486_v53 = vmul.f32 0.2, %v5454_v8  ;;  %v3396_v60 = vadd.f32 %v7772_v15, %v2546_v4  ;;  %8073 = vmatprep.mubr.msk.f32.mxu1 %vm264_vm1, %v6612_v58  ;;  %v5453_v38 = vadd.f32 %v10066_v43, %v3393_v49  ;;  %v2988_v17 = vpop.f32.mrf.mxu0  ;;  %v11058_v56 = vld [vmem:[#allocation74_spill] sm:$0xff] }
 0x20f   : > { %v3348_v0 = vpop.f32.mrf.mxu1  ;;  %v10401_v47 = vadd.f32 %v2988_v17, %v11056_v7 }
 0x210   : > { %6673 = vst.msk [vmem:[%s9452_s7 + $0x1c0] sm:$0xff] %vm264_vm1, %v5515_v1  ;;  %v5518_v27 = vmax.f32 %v5454_v8, %v5486_v53  ;;  %v5456_v52 = vadd.f32 %v10066_v43, %v3396_v60  ;;  %v3395_v50 = vadd.f32 %v3348_v0, %v2545_v25  ;;  %v5485_v55 = vmul.f32 0.2, %v5453_v38  ;;  %v7725_v4 = vpop.f32.mrf.mxu0  ;;  %8024 = vmatmul.mubr.msk.f32.gmra.mxu0 %vm264_vm1, %v11057_v29  ;;  %v11061_v53 = vld [vmem:[#allocation76_spill] sm:$0xff] }
 0x211   : > { %v7775_v35 = vpop.f32.mrf.mxu1  ;;  %8074 = vmatmul.mubr.msk.f32.gmra.mxu1 %vm264_vm1, %v6613_v63  ;;  %v10410_v9 = vadd.f32 %v7725_v4, %v11058_v56 }
 0x212   : > { %6676 = vst.msk [vmem:[%s9452_s7 + $0x1d8] sm:$0xff] %vm264_vm1, %v5518_v27  ;;  %v5488_v19 = vmul.f32 0.2, %v5456_v52  ;;  %v5455_v58 = vadd.f32 %v10066_v43, %v3395_v50  ;;  %v3398_v8 = vadd.f32 %v7775_v35, %v2548_v62  ;;  %v5517_v25 = vmax.f32 %v5453_v38, %v5485_v55  ;;  %v2998_v49 = vpop.f32.mrf.mxu0 }
 0x213   : > { %v3358_v30 = vpop.f32.mrf.mxu1  ;;  %v10416_v10 = vadd.f32 %v2998_v49, %v11061_v53 }
 0x214   : > { %v5520_v15 = vmax.f32 %v5456_v52, %v5488_v19  ;;  %v5487_v2 = vmul.f32 0.2, %v5455_v58  ;;  %v5458_v1 = vadd.f32 %v10066_v43, %v3398_v8  ;;  %6675 = vst.msk [vmem:[%s9452_s7 + $0x1d0] sm:$0xff] %vm264_vm1, %v5517_v25  ;;  %v3397_v60 = vadd.f32 %v3358_v30, %v2547_v14  ;;  %v7780_v18 = vpop.f32.mrf.mxu0 }
 0x215   : > { %v7830_v63 = vpop.f32.mrf.mxu1 }
 0x216   : > { %6678 = vst.msk [vmem:[%s9452_s7 + $0x1e8] sm:$0xff] %vm264_vm1, %v5520_v15  ;;  %v5519_v57 = vmax.f32 %v5455_v58, %v5487_v2  ;;  %v5490_v39 = vmul.f32 0.2, %v5458_v1  ;;  %v10422_v62 = vadd.f32 %v7830_v63, %v7780_v18  ;;  %v5457_v38 = vadd.f32 %v10066_v43, %v3397_v60  ;;  %v3470_v17 = vpop.f32.mrf.mxu0 }
 0x217   : > { %v3698_v0 = vpop.f32.mrf.mxu1 }
 0x218   : > { %6677 = vst.msk [vmem:[%s9452_s7 + $0x1e0] sm:$0xff] %vm264_vm1, %v5519_v57  ;;  %v5522_v27 = vmax.f32 %v5458_v1, %v5490_v39  ;;  %v10427_v52 = vadd.f32 %v3698_v0, %v3470_v17  ;;  %v5489_v7 = vmul.f32 0.2, %v5457_v38  ;;  %v7783_v50 = vpop.f32.mrf.mxu0 }
 0x219   : > { %v7833_v55 = vpop.f32.mrf.mxu1 }
 0x21a   : > { %6680 = vst.msk [vmem:[%s9452_s7 + $0x1f8] sm:$0xff] %vm264_vm1, %v5522_v27  ;;  %v10431_v4 = vadd.f32 %v7833_v55, %v7783_v50  ;;  %v5521_v35 = vmax.f32 %v5457_v38, %v5489_v7  ;;  %v3480_v29 = vpop.f32.mrf.mxu0 }
 0x21b   : > { %v3708_v19 = vpop.f32.mrf.mxu1 }
 0x21c   : > { %v10433_v58 = vadd.f32 %v3708_v19, %v3480_v29  ;;  %6679 = vst.msk [vmem:[%s9452_s7 + $0x1f0] sm:$0xff] %vm264_vm1, %v5521_v35  ;;  %v7786_v56 = vpop.f32.mrf.mxu0 }
 0x21d   : > { %v7836_v8 = vpop.f32.mrf.mxu1 }
 0x21e   : > { %v10437_v42 = vadd.f32 %v7836_v8, %v7786_v56  ;;  %v3490_v44 = vpop.f32.mrf.mxu0 }
 0x21f   : > { %v3718_v14 = vpop.f32.mrf.mxu1 }
 0x220   : > { %v10439_v25 = vadd.f32 %v3718_v14, %v3490_v44  ;;  %v7789_v49 = vpop.f32.mrf.mxu0 }
 0x221   : > { %v7839_v30 = vpop.f32.mrf.mxu1 }
 0x222   : > { %v10441_v15 = vadd.f32 %v7839_v30, %v7789_v49  ;;  %v3500_v2 = vpop.f32.mrf.mxu0 }
 0x223   : > { %v3728_v1 = vpop.f32.mrf.mxu1 }
 0x224   : > { %v10443_v53 = vadd.f32 %v3728_v1, %v3500_v2  ;;  %v7792_v60 = vpop.f32.mrf.mxu0 }
 0x225   : > { %v7842_v18 = vpop.f32.mrf.mxu1 }
 0x226   : > { %v10445_v63 = vadd.f32 %v7842_v18, %v7792_v60  ;;  %v3510_v57 = vpop.f32.mrf.mxu0 }
 0x227   : > { %v3738_v39 = vpop.f32.mrf.mxu1 }
 0x228   : > { %v10447_v38 = vadd.f32 %v3738_v39, %v3510_v57  ;;  %v7795_v17 = vpop.f32.mrf.mxu0 }
 0x229   : > { %v7845_v0 = vpop.f32.mrf.mxu1 }
 0x22a   : > { %v10449_v27 = vadd.f32 %v7845_v0, %v7795_v17  ;;  %v3520_v7 = vpop.f32.mrf.mxu0 }
 0x22b   : > { %v3748_v50 = vpop.f32.mrf.mxu1 }
 0x22c   : > { %v10451_v55 = vadd.f32 %v3748_v50, %v3520_v7  ;;  %v7798_v35 = vpop.f32.mrf.mxu0 }
 0x22d   : > { %v7848_v29 = vpop.f32.mrf.mxu1 }
 0x22e   : > { %v10453_v19 = vadd.f32 %v7848_v29, %v7798_v35  ;;  %v3530_v56 = vpop.f32.mrf.mxu0 }
 0x22f   : > { %v3758_v8 = vpop.f32.mrf.mxu1 }
 0x230   : > { %v10455_v44 = vadd.f32 %v3758_v8, %v3530_v56  ;;  %v7801_v14 = vpop.f32.mrf.mxu0 }
 0x231   : > { %v7851_v49 = vpop.f32.mrf.mxu1 }
 0x232   : > { %v10457_v30 = vadd.f32 %v7851_v49, %v7801_v14  ;;  %v3540_v2 = vpop.f32.mrf.mxu0 }
 0x233   : > { %v3768_v1 = vpop.f32.mrf.mxu1 }
 0x234   : > { %11062 = vst [vmem:[#allocation42_spill] sm:$0xff] %v10457_v30  ;;  %v10459_v60 = vadd.f32 %v3768_v1, %v3540_v2  ;;  %v7804_v18 = vpop.f32.mrf.mxu0 }
 0x235   : > { %v7854_v57 = vpop.f32.mrf.mxu1 }
 0x236   : > { %11063 = vst [vmem:[#allocation10_spill] sm:$0xff] %v10459_v60  ;;  %v10461_v39 = vadd.f32 %v7854_v57, %v7804_v18  ;;  %v3550_v17 = vpop.f32.mrf.mxu0 }
 0x237   : > { %v3778_v0 = vpop.f32.mrf.mxu1 }
 0x238   : > { %11064 = vst [vmem:[#allocation11_spill] sm:$0xff] %v10461_v39  ;;  %v10463_v7 = vadd.f32 %v3778_v0, %v3550_v17  ;;  %v7807_v50 = vpop.f32.mrf.mxu0 }
 0x239   : > { %v7857_v35 = vpop.f32.mrf.mxu1 }
 0x23a   : > { %11065 = vst [vmem:[#allocation12_spill] sm:$0xff] %v10463_v7  ;;  %v10465_v29 = vadd.f32 %v7857_v35, %v7807_v50  ;;  %v3560_v56 = vpop.f32.mrf.mxu0 }
 0x23b   : > { %v3788_v8 = vpop.f32.mrf.mxu1 }
 0x23c   : > { %11066 = vst [vmem:[#allocation31_spill] sm:$0xff] %v10465_v29  ;;  %v10467_v14 = vadd.f32 %v3788_v8, %v3560_v56  ;;  %v7810_v49 = vpop.f32.mrf.mxu0 }
 0x23d   : > { %v7860_v30 = vpop.f32.mrf.mxu1 }
 0x23e   : > { %11067 = vst [vmem:[#allocation30_spill] sm:$0xff] %v10467_v14  ;;  %v10469_v2 = vadd.f32 %v7860_v30, %v7810_v49  ;;  %v3570_v1 = vpop.f32.mrf.mxu0 }
 0x23f   : > { %v3798_v60 = vpop.f32.mrf.mxu1 }
 0x240   : > { %11068 = vst [vmem:[#allocation2_spill] sm:$0xff] %v10469_v2  ;;  %v10471_v18 = vadd.f32 %v3798_v60, %v3570_v1  ;;  %v7813_v57 = vpop.f32.mrf.mxu0 }
 0x241   : > { %v7863_v39 = vpop.f32.mrf.mxu1 }
 0x242   : > { %11069 = vst [vmem:[#allocation4_spill] sm:$0xff] %v10471_v18  ;;  %v10473_v17 = vadd.f32 %v7863_v39, %v7813_v57  ;;  %v3580_v0 = vpop.f32.mrf.mxu0 }
 0x243   : > { %v3808_v7 = vpop.f32.mrf.mxu1 }
 0x244   : > { %11070 = vst [vmem:[#allocation3_spill] sm:$0xff] %v10473_v17  ;;  %v10475_v50 = vadd.f32 %v3808_v7, %v3580_v0  ;;  %v7816_v35 = vpop.f32.mrf.mxu0 }
 0x245   : > { %v7866_v29 = vpop.f32.mrf.mxu1 }
 0x246   : > { %11071 = vst [vmem:[#allocation13_spill] sm:$0xff] %v10475_v50  ;;  %v10477_v56 = vadd.f32 %v7866_v29, %v7816_v35  ;;  %v3590_v8 = vpop.f32.mrf.mxu0 }
 0x247   : > { %v3818_v14 = vpop.f32.mrf.mxu1 }
 0x248   : > { %11072 = vst [vmem:[#allocation5_spill] sm:$0xff] %v10477_v56  ;;  %v10479_v30 = vadd.f32 %v3818_v14, %v3590_v8  ;;  %v7819_v49 = vpop.f32.mrf.mxu0 }
 0x249   : > { %v7869_v2 = vpop.f32.mrf.mxu1 }
 0x24a   : > { %11073 = vst [vmem:[#allocation14_spill] sm:$0xff] %v10479_v30  ;;  %v10481_v60 = vadd.f32 %v7869_v2, %v7819_v49  ;;  %v3600_v1 = vpop.f32.mrf.mxu0 }
 0x24b   : > { %v3828_v18 = vpop.f32.mrf.mxu1 }
 0x24c   : > { %11074 = vst [vmem:[#allocation34_spill] sm:$0xff] %v10481_v60  ;;  %v10483_v39 = vadd.f32 %v3828_v18, %v3600_v1  ;;  %v7822_v57 = vpop.f32.mrf.mxu0 }
 0x24d   : > { %v7872_v17 = vpop.f32.mrf.mxu1 }
 0x24e   : > { %11075 = vst [vmem:[#allocation33_spill] sm:$0xff] %v10483_v39  ;;  %v10485_v7 = vadd.f32 %v7872_v17, %v7822_v57  ;;  %v3610_v0 = vpop.f32.mrf.mxu0 }
 0x24f   : > { %v3838_v50 = vpop.f32.mrf.mxu1 }
 0x250   : > { %11076 = vst [vmem:[#allocation15_spill] sm:$0xff] %v10485_v7  ;;  %v10487_v29 = vadd.f32 %v3838_v50, %v3610_v0  ;;  %v7825_v35 = vpop.f32.mrf.mxu0 }
 0x251   : > { %v7875_v56 = vpop.f32.mrf.mxu1 }
 0x252   : > { %11077 = vst [vmem:[#allocation8_spill] sm:$0xff] %v10487_v29  ;;  %v10489_v14 = vadd.f32 %v7875_v56, %v7825_v35  ;;  %v3620_v8 = vpop.f32.mrf.mxu0 }
 0x253   : > { %v3848_v30 = vpop.f32.mrf.mxu1 }
 0x254   : > { %11078 = vst [vmem:[#allocation32_spill] sm:$0xff] %v10489_v14  ;;  %v10491_v2 = vadd.f32 %v3848_v30, %v3620_v8  ;;  %v7880_v49 = vpop.f32.mrf.mxu0 }
 0x255   : > { %v7930_v60 = vpop.f32.mrf.mxu1  ;;  %v4219_v18 = vadd.f32 %v7880_v49, %v10054_v48 }
 0x256   : > { %11079 = vst [vmem:[#allocation7_spill] sm:$0xff] %v10491_v2  ;;  %v4059_v1 = vpop.f32.mrf.mxu0 }
 0x257   : > { %v4449_v39 = vpop.f32.mrf.mxu1  ;;  %v4609_v17 = vadd.f32 %v7930_v60, %v4219_v18  ;;  %v4218_v57 = vadd.f32 %v4059_v1, %v10070_v22 }
 0x258   : > { %v7883_v7 = vpop.f32.mrf.mxu0 }
 0x259   : > { %v7933_v50 = vpop.f32.mrf.mxu1  ;;  %v5557_v0 = vadd.f32 %v10066_v43, %v4609_v17  ;;  %v4608_v29 = vadd.f32 %v4449_v39, %v4218_v57  ;;  %v4221_v56 = vadd.f32 %v7883_v7, %v10077_v59 }
 0x25a   : > { %v4069_v35 = vpop.f32.mrf.mxu0 }
 0x25b   : > { %v4459_v30 = vpop.f32.mrf.mxu1  ;;  %v5589_v8 = vmul.f32 0.2, %v5557_v0  ;;  %v5556_v2 = vadd.f32 %v10066_v43, %v4608_v29  ;;  %v4611_v14 = vadd.f32 %v7933_v50, %v4221_v56  ;;  %v4220_v48 = vadd.f32 %v4069_v35, %v10090_v45 }
 0x25c   : > { %v7886_v49 = vpop.f32.mrf.mxu0 }
 0x25d   : > { %v7936_v60 = vpop.f32.mrf.mxu1  ;;  %v5621_v22 = vmax.f32 %v5557_v0, %v5589_v8  ;;  %v5588_v18 = vmul.f32 0.2, %v5556_v2  ;;  %v5559_v1 = vadd.f32 %v10066_v43, %v4611_v14  ;;  %v4610_v17 = vadd.f32 %v4459_v30, %v4220_v48 }
 0x25e   : > { %v4223_v39 = vadd.f32 %v7886_v49, %v10100_v36  ;;  %v4079_v59 = vpop.f32.mrf.mxu0 }
 0x25f   : > { %v4469_v7 = vpop.f32.mrf.mxu1  ;;  %6682 = vst.msk [vmem:[%s9452_s7 + $0x208] sm:$0xff] %vm264_vm1, %v5621_v22  ;;  %v5620_v57 = vmax.f32 %v5556_v2, %v5588_v18  ;;  %v5591_v29 = vmul.f32 0.2, %v5559_v1  ;;  %v5558_v50 = vadd.f32 %v10066_v43, %v4610_v17  ;;  %v4222_v45 = vadd.f32 %v4079_v59, %v10114_v21 }
 0x260   : > { %v4613_v56 = vadd.f32 %v7936_v60, %v4223_v39  ;;  %v7889_v35 = vpop.f32.mrf.mxu0 }
 0x261   : > { %v7939_v0 = vpop.f32.mrf.mxu1  ;;  %6681 = vst.msk [vmem:[%s9452_s7 + $0x200] sm:$0xff] %vm264_vm1, %v5620_v57  ;;  %v5623_v14 = vmax.f32 %v5559_v1, %v5591_v29  ;;  %v5590_v30 = vmul.f32 0.2, %v5558_v50  ;;  %v4612_v36 = vadd.f32 %v4469_v7, %v4222_v45  ;;  %v4225_v8 = vadd.f32 %v7889_v35, %v10123_v54  ;;  %v10518_v54 = vld [vmem:[%s10765_s2] ss:$0 sm:$0xff] }
 0x262   : > { %v5561_v48 = vadd.f32 %v10066_v43, %v4613_v56  ;;  %v4089_v49 = vpop.f32.mrf.mxu0 }
 0x263   : > { %v4479_v2 = vpop.f32.mrf.mxu1  ;;  %6684 = vst.msk [vmem:[%s9452_s7 + $0x218] sm:$0xff] %vm264_vm1, %v5623_v14  ;;  %v5622_v22 = vmax.f32 %v5558_v50, %v5590_v30  ;;  %v5560_v21 = vadd.f32 %v10066_v43, %v4612_v36  ;;  %v4615_v60 = vadd.f32 %v7939_v0, %v4225_v8  ;;  %v4224_v18 = vadd.f32 %v4089_v49, %v10136_v32 }
 0x264   : > { %v5593_v17 = vmul.f32 0.2, %v5561_v48  ;;  %v7892_v39 = vpop.f32.mrf.mxu0 }
 0x265   : > { %v7942_v1 = vpop.f32.mrf.mxu1  ;;  %6683 = vst.msk [vmem:[%s9452_s7 + $0x210] sm:$0xff] %vm264_vm1, %v5622_v22  ;;  %v5592_v59 = vmul.f32 0.2, %v5560_v21  ;;  %v5563_v7 = vadd.f32 %v10518_v54, %v4615_v60  ;;  %v4614_v57 = vadd.f32 %v4479_v2, %v4224_v18  ;;  %v4227_v43 = vadd.f32 %v7892_v39, %v10148_v6 }
 0x266   : > { %v5625_v29 = vmax.f32 %v5561_v48, %v5593_v17  ;;  %v4099_v32 = vpop.f32.mrf.mxu0 }
 0x267   : > { %v4489_v50 = vpop.f32.mrf.mxu1  ;;  %v5624_v45 = vmax.f32 %v5560_v21, %v5592_v59  ;;  %v5595_v56 = vmul.f32 0.2, %v5563_v7  ;;  %v5562_v35 = vadd.f32 %v10518_v54, %v4614_v57  ;;  %v4617_v0 = vadd.f32 %v7942_v1, %v4227_v43 }
 0x268   : > { %6686 = vst.msk [vmem:[%s9452_s7 + $0x228] sm:$0xff] %vm264_vm1, %v5625_v29  ;;  %v4226_v14 = vadd.f32 %v4099_v32, %v10162_v51  ;;  %v7895_v30 = vpop.f32.mrf.mxu0 }
 0x269   : > { %v7945_v36 = vpop.f32.mrf.mxu1  ;;  %6685 = vst.msk [vmem:[%s9452_s7 + $0x220] sm:$0xff] %vm264_vm1, %v5624_v45  ;;  %v5627_v8 = vmax.f32 %v5563_v7, %v5595_v56  ;;  %v5594_v6 = vmul.f32 0.2, %v5562_v35  ;;  %v5565_v48 = vadd.f32 %v10518_v54, %v4617_v0  ;;  %v4229_v49 = vadd.f32 %v7895_v30, %v10171_v61 }
 0x26a   : > { %v4616_v2 = vadd.f32 %v4489_v50, %v4226_v14  ;;  %v4109_v22 = vpop.f32.mrf.mxu0 }
 0x26b   : > { %v4499_v21 = vpop.f32.mrf.mxu1  ;;  %6688 = vst.msk [vmem:[%s9452_s7 + $0x238] sm:$0xff] %vm264_vm1, %v5627_v8  ;;  %v5626_v60 = vmax.f32 %v5562_v35, %v5594_v6  ;;  %v5597_v18 = vmul.f32 0.2, %v5565_v48  ;;  %v4619_v51 = vadd.f32 %v7945_v36, %v4229_v49  ;;  %v4228_v17 = vadd.f32 %v4109_v22, %v10184_v26 }
 0x26c   : > { %v5564_v39 = vadd.f32 %v10518_v54, %v4616_v2  ;;  %v7898_v1 = vpop.f32.mrf.mxu0 }
 0x26d   : > { %v7948_v59 = vpop.f32.mrf.mxu1  ;;  %6687 = vst.msk [vmem:[%s9452_s7 + $0x230] sm:$0xff] %vm264_vm1, %v5626_v60  ;;  %v5629_v7 = vmax.f32 %v5565_v48, %v5597_v18  ;;  %v5567_v61 = vadd.f32 %v10518_v54, %v4619_v51  ;;  %v4618_v57 = vadd.f32 %v4499_v21, %v4228_v17  ;;  %v4231_v43 = vadd.f32 %v7898_v1, %v10196_v28 }
 0x26e   : > { %v5596_v29 = vmul.f32 0.2, %v5564_v39  ;;  %v4119_v32 = vpop.f32.mrf.mxu0 }
 0x26f   : > { %v4509_v50 = vpop.f32.mrf.mxu1  ;;  %6690 = vst.msk [vmem:[%s9452_s7 + $0x248] sm:$0xff] %vm264_vm1, %v5629_v7  ;;  %v5599_v26 = vmul.f32 0.2, %v5567_v61  ;;  %v5566_v45 = vadd.f32 %v10518_v54, %v4618_v57  ;;  %v4621_v56 = vadd.f32 %v7948_v59, %v4231_v43  ;;  %v4230_v35 = vadd.f32 %v4119_v32, %v10210_v24 }
 0x270   : > { %v5628_v0 = vmax.f32 %v5564_v39, %v5596_v29  ;;  %v7901_v14 = vpop.f32.mrf.mxu0 }
 0x271   : > { %v7951_v30 = vpop.f32.mrf.mxu1  ;;  %v5631_v36 = vmax.f32 %v5567_v61, %v5599_v26  ;;  %v5598_v8 = vmul.f32 0.2, %v5566_v45  ;;  %v5569_v28 = vadd.f32 %v10518_v54, %v4621_v56  ;;  %v4620_v6 = vadd.f32 %v4509_v50, %v4230_v35 }
 0x272   : > { %6689 = vst.msk [vmem:[%s9452_s7 + $0x240] sm:$0xff] %vm264_vm1, %v5628_v0  ;;  %v4233_v48 = vadd.f32 %v7901_v14, %v10219_v41  ;;  %v4129_v49 = vpop.f32.mrf.mxu0 }
 0x273   : > { %v4519_v2 = vpop.f32.mrf.mxu1  ;;  %6692 = vst.msk [vmem:[%s9452_s7 + $0x258] sm:$0xff] %vm264_vm1, %v5631_v36  ;;  %v5630_v22 = vmax.f32 %v5566_v45, %v5598_v8  ;;  %v5601_v24 = vmul.f32 0.2, %v5569_v28  ;;  %v5568_v21 = vadd.f32 %v10518_v54, %v4620_v6  ;;  %v4232_v60 = vadd.f32 %v4129_v49, %v10232_v46 }
 0x274   : > { %v4623_v18 = vadd.f32 %v7951_v30, %v4233_v48  ;;  %v7904_v51 = vpop.f32.mrf.mxu0 }
 0x275   : > { %v7954_v17 = vpop.f32.mrf.mxu1  ;;  %6691 = vst.msk [vmem:[%s9452_s7 + $0x250] sm:$0xff] %vm264_vm1, %v5630_v22  ;;  %v5633_v39 = vmax.f32 %v5569_v28, %v5601_v24  ;;  %v5600_v1 = vmul.f32 0.2, %v5568_v21  ;;  %v4622_v41 = vadd.f32 %v4519_v2, %v4232_v60  ;;  %v4235_v59 = vadd.f32 %v7904_v51, %v10244_v31 }
 0x276   : > { %v5571_v7 = vadd.f32 %v10518_v54, %v4623_v18  ;;  %v4139_v61 = vpop.f32.mrf.mxu0 }
 0x277   : > { %v4529_v57 = vpop.f32.mrf.mxu1  ;;  %6694 = vst.msk [vmem:[%s9452_s7 + $0x268] sm:$0xff] %vm264_vm1, %v5633_v39  ;;  %v5632_v43 = vmax.f32 %v5568_v21, %v5600_v1  ;;  %v5570_v46 = vadd.f32 %v10518_v54, %v4622_v41  ;;  %v4625_v29 = vadd.f32 %v7954_v17, %v4235_v59  ;;  %v4234_v32 = vadd.f32 %v4139_v61, %v10258_v40 }
 0x278   : > { %v5603_v50 = vmul.f32 0.2, %v5571_v7  ;;  %v7907_v26 = vpop.f32.mrf.mxu0 }
 0x279   : > { %v7957_v45 = vpop.f32.mrf.mxu1  ;;  %6693 = vst.msk [vmem:[%s9452_s7 + $0x260] sm:$0xff] %vm264_vm1, %v5632_v43  ;;  %v5602_v31 = vmul.f32 0.2, %v5570_v46  ;;  %v5573_v56 = vadd.f32 %v10518_v54, %v4625_v29  ;;  %v4624_v35 = vadd.f32 %v4529_v57, %v4234_v32  ;;  %v4237_v0 = vadd.f32 %v7907_v26, %v10267_v5 }
 0x27a   : > { %v5635_v14 = vmax.f32 %v5571_v7, %v5603_v50  ;;  %v4149_v30 = vpop.f32.mrf.mxu0 }
 0x27b   : > { %v4539_v36 = vpop.f32.mrf.mxu1  ;;  %v5634_v8 = vmax.f32 %v5570_v46, %v5602_v31  ;;  %v5605_v28 = vmul.f32 0.2, %v5573_v56  ;;  %v5572_v40 = vadd.f32 %v10518_v54, %v4624_v35  ;;  %v4627_v6 = vadd.f32 %v7957_v45, %v4237_v0 }
 0x27c   : > { %6696 = vst.msk [vmem:[%s9452_s7 + $0x278] sm:$0xff] %vm264_vm1, %v5635_v14  ;;  %v4236_v48 = vadd.f32 %v4149_v30, %v10280_v37  ;;  %v7910_v49 = vpop.f32.mrf.mxu0 }
 0x27d   : > { %v7960_v2 = vpop.f32.mrf.mxu1  ;;  %6695 = vst.msk [vmem:[%s9452_s7 + $0x270] sm:$0xff] %vm264_vm1, %v5634_v8  ;;  %v5637_v22 = vmax.f32 %v5573_v56, %v5605_v28  ;;  %v5604_v5 = vmul.f32 0.2, %v5572_v40  ;;  %v5575_v24 = vadd.f32 %v10518_v54, %v4627_v6  ;;  %v4239_v21 = vadd.f32 %v7910_v49, %v10292_v33 }
 0x27e   : > { %v4626_v60 = vadd.f32 %v4539_v36, %v4236_v48  ;;  %v4159_v18 = vpop.f32.mrf.mxu0 }
 0x27f   : > { %v4549_v51 = vpop.f32.mrf.mxu1  ;;  %6698 = vst.msk [vmem:[%s9452_s7 + $0x288] sm:$0xff] %vm264_vm1, %v5637_v22  ;;  %v5636_v17 = vmax.f32 %v5572_v40, %v5604_v5  ;;  %v5607_v39 = vmul.f32 0.2, %v5575_v24  ;;  %v4629_v37 = vadd.f32 %v7960_v2, %v4239_v21  ;;  %v4238_v1 = vadd.f32 %v4159_v18, %v10306_v13 }
 0x280   : > { %v5574_v41 = vadd.f32 %v10518_v54, %v4626_v60  ;;  %v7913_v59 = vpop.f32.mrf.mxu0 }
 0x281   : > { %v7963_v7 = vpop.f32.mrf.mxu1  ;;  %6697 = vst.msk [vmem:[%s9452_s7 + $0x280] sm:$0xff] %vm264_vm1, %v5636_v17  ;;  %v5639_v61 = vmax.f32 %v5575_v24, %v5607_v39  ;;  %v5577_v33 = vadd.f32 %v10518_v54, %v4629_v37  ;;  %v4628_v57 = vadd.f32 %v4549_v51, %v4238_v1  ;;  %v4241_v43 = vadd.f32 %v7913_v59, %v10315_v12 }
 0x282   : > { %v5606_v46 = vmul.f32 0.2, %v5574_v41  ;;  %v4169_v29 = vpop.f32.mrf.mxu0 }
 0x283   : > { %v4559_v32 = vpop.f32.mrf.mxu1  ;;  %6700 = vst.msk [vmem:[%s9452_s7 + $0x298] sm:$0xff] %vm264_vm1, %v5639_v61  ;;  %v5609_v13 = vmul.f32 0.2, %v5577_v33  ;;  %v5576_v50 = vadd.f32 %v10518_v54, %v4628_v57  ;;  %v4631_v26 = vadd.f32 %v7963_v7, %v4241_v43  ;;  %v4240_v45 = vadd.f32 %v4169_v29, %v10328_v11 }
 0x284   : > { %v5638_v31 = vmax.f32 %v5574_v41, %v5606_v46  ;;  %v7916_v56 = vpop.f32.mrf.mxu0 }
 0x285   : > { %v7966_v35 = vpop.f32.mrf.mxu1  ;;  %v5641_v0 = vmax.f32 %v5577_v33, %v5609_v13  ;;  %v5608_v14 = vmul.f32 0.2, %v5576_v50  ;;  %v5579_v12 = vadd.f32 %v10518_v54, %v4631_v26  ;;  %v4630_v30 = vadd.f32 %v4559_v32, %v4240_v45 }
 0x286   : > { %6699 = vst.msk [vmem:[%s9452_s7 + $0x290] sm:$0xff] %vm264_vm1, %v5638_v31  ;;  %v4243_v36 = vadd.f32 %v7916_v56, %v10340_v23  ;;  %v4179_v8 = vpop.f32.mrf.mxu0 }
 0x287   : > { %v4569_v28 = vpop.f32.mrf.mxu1  ;;  %6702 = vst.msk [vmem:[%s9452_s7 + $0x2a8] sm:$0xff] %vm264_vm1, %v5641_v0  ;;  %v5640_v40 = vmax.f32 %v5576_v50, %v5608_v14  ;;  %v5611_v11 = vmul.f32 0.2, %v5579_v12  ;;  %v5578_v6 = vadd.f32 %v10518_v54, %v4630_v30  ;;  %v4242_v48 = vadd.f32 %v4179_v8, %v10354_v16 }
 0x288   : > { %v4633_v49 = vadd.f32 %v7966_v35, %v4243_v36  ;;  %v7919_v2 = vpop.f32.mrf.mxu0 }
 0x289   : > { %v7969_v22 = vpop.f32.mrf.mxu1  ;;  %6701 = vst.msk [vmem:[%s9452_s7 + $0x2a0] sm:$0xff] %vm264_vm1, %v5640_v40  ;;  %v5643_v5 = vmax.f32 %v5579_v12, %v5611_v11  ;;  %v5610_v24 = vmul.f32 0.2, %v5578_v6  ;;  %v4632_v23 = vadd.f32 %v4569_v28, %v4242_v48  ;;  %v4245_v21 = vadd.f32 %v7919_v2, %v10363_v3 }
 0x28a   : > { %v5581_v60 = vadd.f32 %v10518_v54, %v4633_v49  ;;  %v4189_v18 = vpop.f32.mrf.mxu0 }
 0x28b   : > { %v4579_v51 = vpop.f32.mrf.mxu1  ;;  %6704 = vst.msk [vmem:[%s9452_s7 + $0x2b8] sm:$0xff] %vm264_vm1, %v5643_v5  ;;  %v5642_v17 = vmax.f32 %v5578_v6, %v5610_v24  ;;  %v5580_v16 = vadd.f32 %v10518_v54, %v4632_v23  ;;  %v4635_v39 = vadd.f32 %v7969_v22, %v4245_v21  ;;  %v4244_v37 = vadd.f32 %v4189_v18, %v10376_v34 }
 0x28c   : > { %v5613_v1 = vmul.f32 0.2, %v5581_v60  ;;  %v7922_v41 = vpop.f32.mrf.mxu0 }
 0x28d   : > { %v7972_v59 = vpop.f32.mrf.mxu1  ;;  %6703 = vst.msk [vmem:[%s9452_s7 + $0x2b0] sm:$0xff] %vm264_vm1, %v5642_v17  ;;  %v5612_v3 = vmul.f32 0.2, %v5580_v16  ;;  %v5583_v7 = vadd.f32 %v10518_v54, %v4635_v39  ;;  %v4634_v61 = vadd.f32 %v4579_v51, %v4244_v37  ;;  %v4247_v33 = vadd.f32 %v7922_v41, %v10388_v20 }
 0x28e   : > { %v5645_v57 = vmax.f32 %v5581_v60, %v5613_v1  ;;  %v4199_v43 = vpop.f32.mrf.mxu0 }
 0x28f   : > { %v4589_v46 = vpop.f32.mrf.mxu1  ;;  %v5644_v29 = vmax.f32 %v5580_v16, %v5612_v3  ;;  %v5615_v32 = vmul.f32 0.2, %v5583_v7  ;;  %v5582_v34 = vadd.f32 %v10518_v54, %v4634_v61  ;;  %v4637_v13 = vadd.f32 %v7972_v59, %v4247_v33 }
 0x290   : > { %6706 = vst.msk [vmem:[%s9452_s7 + $0x2c8] sm:$0xff] %vm264_vm1, %v5645_v57  ;;  %v4246_v50 = vadd.f32 %v4199_v43, %v10401_v47  ;;  %v7925_v26 = vpop.f32.mrf.mxu0 }
 0x291   : > { %v7975_v45 = vpop.f32.mrf.mxu1  ;;  %6705 = vst.msk [vmem:[%s9452_s7 + $0x2c0] sm:$0xff] %vm264_vm1, %v5644_v29  ;;  %v5647_v31 = vmax.f32 %v5583_v7, %v5615_v32  ;;  %v5614_v20 = vmul.f32 0.2, %v5582_v34  ;;  %v5585_v56 = vadd.f32 %v10518_v54, %v4637_v13  ;;  %v4249_v35 = vadd.f32 %v7925_v26, %v10410_v9 }
 0x292   : > { %v4636_v0 = vadd.f32 %v4589_v46, %v4246_v50  ;;  %v4209_v14 = vpop.f32.mrf.mxu0 }
 0x293   : > { %v4599_v12 = vpop.f32.mrf.mxu1  ;;  %6708 = vst.msk [vmem:[%s9452_s7 + $0x2d8] sm:$0xff] %vm264_vm1, %v5647_v31  ;;  %v5646_v30 = vmax.f32 %v5582_v34, %v5614_v20  ;;  %v5617_v36 = vmul.f32 0.2, %v5585_v56  ;;  %v4639_v47 = vadd.f32 %v7975_v45, %v4249_v35  ;;  %v4248_v8 = vadd.f32 %v4209_v14, %v10416_v10 }
 0x294   : > { %v5584_v28 = vadd.f32 %v10518_v54, %v4636_v0  ;;  %v7980_v40 = vpop.f32.mrf.mxu0 }
 0x295   : > { %v8030_v11 = vpop.f32.mrf.mxu1  ;;  %6707 = vst.msk [vmem:[%s9452_s7 + $0x2d0] sm:$0xff] %vm264_vm1, %v5646_v30  ;;  %v5649_v6 = vmax.f32 %v5585_v56, %v5617_v36  ;;  %v5587_v9 = vadd.f32 %v10518_v54, %v4639_v47  ;;  %v4638_v48 = vadd.f32 %v4599_v12, %v4248_v8  ;;  %v4871_v49 = vadd.f32 %v7980_v40, %v10422_v62 }
 0x296   : > { %v5616_v2 = vmul.f32 0.2, %v5584_v28  ;;  %v4711_v22 = vpop.f32.mrf.mxu0 }
 0x297   : > { %v5101_v5 = vpop.f32.mrf.mxu1  ;;  %6710 = vst.msk [vmem:[%s9452_s7 + $0x2e8] sm:$0xff] %vm264_vm1, %v5649_v6  ;;  %v5619_v10 = vmul.f32 0.2, %v5587_v9  ;;  %v5586_v24 = vadd.f32 %v10518_v54, %v4638_v48  ;;  %v5261_v23 = vadd.f32 %v8030_v11, %v4871_v49  ;;  %v4870_v21 = vadd.f32 %v4711_v22, %v10427_v52 }
 0x298   : > { %v5648_v60 = vmax.f32 %v5584_v28, %v5616_v2  ;;  %v7983_v18 = vpop.f32.mrf.mxu0 }
 0x299   : > { %v8033_v51 = vpop.f32.mrf.mxu1  ;;  %v5651_v17 = vmax.f32 %v5587_v9, %v5619_v10  ;;  %v5618_v16 = vmul.f32 0.2, %v5586_v24  ;;  %v5686_v62 = vadd.f32 %v10518_v54, %v5261_v23  ;;  %v5260_v39 = vadd.f32 %v5101_v5, %v4870_v21 }
 0x29a   : > { %6709 = vst.msk [vmem:[%s9452_s7 + $0x2e0] sm:$0xff] %vm264_vm1, %v5648_v60  ;;  %v4873_v37 = vadd.f32 %v7983_v18, %v10431_v4  ;;  %v4721_v1 = vpop.f32.mrf.mxu0 }
 0x29b   : > { %v5111_v41 = vpop.f32.mrf.mxu1  ;;  %6712 = vst.msk [vmem:[%s9452_s7 + $0x2f8] sm:$0xff] %vm264_vm1, %v5651_v17  ;;  %v5650_v59 = vmax.f32 %v5586_v24, %v5618_v16  ;;  %v5718_v52 = vmul.f32 0.2, %v5686_v62  ;;  %v5685_v3 = vadd.f32 %v10518_v54, %v5260_v39  ;;  %v4872_v7 = vadd.f32 %v4721_v1, %v10433_v58 }
 0x29c   : > { %v5263_v61 = vadd.f32 %v8033_v51, %v4873_v37  ;;  %v7986_v33 = vpop.f32.mrf.mxu0 }
 0x29d   : > { %v8036_v57 = vpop.f32.mrf.mxu1  ;;  %6711 = vst.msk [vmem:[%s9452_s7 + $0x2f0] sm:$0xff] %vm264_vm1, %v5650_v59  ;;  %v5750_v43 = vmax.f32 %v5686_v62, %v5718_v52  ;;  %v5717_v46 = vmul.f32 0.2, %v5685_v3  ;;  %v5262_v4 = vadd.f32 %v5111_v41, %v4872_v7  ;;  %v4875_v29 = vadd.f32 %v7986_v33, %v10437_v42 }
 0x29e   : > { %v5688_v32 = vadd.f32 %v10518_v54, %v5263_v61  ;;  %v4731_v34 = vpop.f32.mrf.mxu0 }
 0x29f   : > { %v5121_v13 = vpop.f32.mrf.mxu1  ;;  %6714 = vst.msk [vmem:[%s9452_s7 + $0x308] sm:$0xff] %vm264_vm1, %v5750_v43  ;;  %v5749_v50 = vmax.f32 %v5685_v3, %v5717_v46  ;;  %v5687_v58 = vadd.f32 %v10518_v54, %v5262_v4  ;;  %v5265_v26 = vadd.f32 %v8036_v57, %v4875_v29  ;;  %v4874_v45 = vadd.f32 %v4731_v34, %v10439_v25 }
 0x2a0   : > { %v5720_v31 = vmul.f32 0.2, %v5688_v32  ;;  %v7989_v20 = vpop.f32.mrf.mxu0 }
 0x2a1   : > { %v8039_v56 = vpop.f32.mrf.mxu1  ;;  %6713 = vst.msk [vmem:[%s9452_s7 + $0x300] sm:$0xff] %vm264_vm1, %v5749_v50  ;;  %v5719_v42 = vmul.f32 0.2, %v5687_v58  ;;  %v5690_v35 = vadd.f32 %v10518_v54, %v5265_v26  ;;  %v5264_v0 = vadd.f32 %v5121_v13, %v4874_v45  ;;  %v4877_v14 = vadd.f32 %v7989_v20, %v10441_v15 }
 0x2a2   : > { %v5752_v12 = vmax.f32 %v5688_v32, %v5720_v31  ;;  %v4741_v30 = vpop.f32.mrf.mxu0  ;;  %v11080_v31 = vld [vmem:[#allocation42_spill] sm:$0xff] }
 0x2a3   : > { %v5131_v36 = vpop.f32.mrf.mxu1  ;;  %v5751_v47 = vmax.f32 %v5687_v58, %v5719_v42  ;;  %v5722_v8 = vmul.f32 0.2, %v5690_v35  ;;  %v5689_v25 = vadd.f32 %v10518_v54, %v5264_v0  ;;  %v5267_v28 = vadd.f32 %v8039_v56, %v4877_v14 }
 0x2a4   : > { %6716 = vst.msk [vmem:[%s9452_s7 + $0x318] sm:$0xff] %vm264_vm1, %v5752_v12  ;;  %v4876_v40 = vadd.f32 %v4741_v30, %v10443_v53  ;;  %v7992_v11 = vpop.f32.mrf.mxu0  ;;  %v11081_v12 = vld [vmem:[#allocation10_spill] sm:$0xff] }
 0x2a5   : > { %v8042_v6 = vpop.f32.mrf.mxu1  ;;  %6715 = vst.msk [vmem:[%s9452_s7 + $0x310] sm:$0xff] %vm264_vm1, %v5751_v47  ;;  %v5754_v9 = vmax.f32 %v5690_v35, %v5722_v8  ;;  %v5721_v15 = vmul.f32 0.2, %v5689_v25  ;;  %v5692_v48 = vadd.f32 %v10518_v54, %v5267_v28  ;;  %v4879_v49 = vadd.f32 %v7992_v11, %v10445_v63  ;;  %v11082_v11 = vld [vmem:[#allocation11_spill] sm:$0xff] }
 0x2a6   : > { %v5266_v2 = vadd.f32 %v5131_v36, %v4876_v40  ;;  %v4751_v22 = vpop.f32.mrf.mxu0 }
 0x2a7   : > { %v5141_v5 = vpop.f32.mrf.mxu1  ;;  %6718 = vst.msk [vmem:[%s9452_s7 + $0x328] sm:$0xff] %vm264_vm1, %v5754_v9  ;;  %v5753_v10 = vmax.f32 %v5689_v25, %v5721_v15  ;;  %v5724_v24 = vmul.f32 0.2, %v5692_v48  ;;  %v5269_v53 = vadd.f32 %v8042_v6, %v4879_v49  ;;  %v4878_v23 = vadd.f32 %v4751_v22, %v10447_v38 }
 0x2a8   : > { %v5691_v21 = vadd.f32 %v10518_v54, %v5266_v2  ;;  %v7995_v60 = vpop.f32.mrf.mxu0 }
 0x2a9   : > { %v8045_v18 = vpop.f32.mrf.mxu1  ;;  %6717 = vst.msk [vmem:[%s9452_s7 + $0x320] sm:$0xff] %vm264_vm1, %v5753_v10  ;;  %v5756_v51 = vmax.f32 %v5692_v48, %v5724_v24  ;;  %v5694_v63 = vadd.f32 %v10518_v54, %v5269_v53  ;;  %v5268_v17 = vadd.f32 %v5141_v5, %v4878_v23  ;;  %v4881_v16 = vadd.f32 %v7995_v60, %v10449_v27  ;;  %v11083_v10 = vld [vmem:[#allocation12_spill] sm:$0xff] }
 0x2aa   : > { %v5723_v62 = vmul.f32 0.2, %v5691_v21  ;;  %v4761_v39 = vpop.f32.mrf.mxu0 }
 0x2ab   : > { %v5151_v37 = vpop.f32.mrf.mxu1  ;;  %6720 = vst.msk [vmem:[%s9452_s7 + $0x338] sm:$0xff] %vm264_vm1, %v5756_v51  ;;  %v5726_v38 = vmul.f32 0.2, %v5694_v63  ;;  %v5693_v1 = vadd.f32 %v10518_v54, %v5268_v17  ;;  %v5271_v41 = vadd.f32 %v8045_v18, %v4881_v16  ;;  %v4880_v59 = vadd.f32 %v4761_v39, %v10451_v55  ;;  %v11084_v51 = vld [vmem:[#allocation31_spill] sm:$0xff] }
 0x2ac   : > { %v5755_v52 = vmax.f32 %v5691_v21, %v5723_v62  ;;  %v7998_v3 = vpop.f32.mrf.mxu0 }
 0x2ad   : > { %v8048_v7 = vpop.f32.mrf.mxu1  ;;  %v5758_v61 = vmax.f32 %v5694_v63, %v5726_v38  ;;  %v5725_v33 = vmul.f32 0.2, %v5693_v1  ;;  %v5696_v27 = vadd.f32 %v10518_v54, %v5271_v41  ;;  %v5270_v57 = vadd.f32 %v5151_v37, %v4880_v59 }
 0x2ae   : > { %6719 = vst.msk [vmem:[%s9452_s7 + $0x330] sm:$0xff] %vm264_vm1, %v5755_v52  ;;  %v4883_v43 = vadd.f32 %v7998_v3, %v10453_v19  ;;  %v4771_v46 = vpop.f32.mrf.mxu0 }
 0x2af   : > { %v5161_v4 = vpop.f32.mrf.mxu1  ;;  %6722 = vst.msk [vmem:[%s9452_s7 + $0x348] sm:$0xff] %vm264_vm1, %v5758_v61  ;;  %v5757_v29 = vmax.f32 %v5693_v1, %v5725_v33  ;;  %v5728_v55 = vmul.f32 0.2, %v5696_v27  ;;  %v5695_v32 = vadd.f32 %v10518_v54, %v5270_v57  ;;  %v4882_v34 = vadd.f32 %v4771_v46, %v10455_v44  ;;  %v11085_v1 = vld [vmem:[#allocation30_spill] sm:$0xff] }
 0x2b0   : > { %v5273_v13 = vadd.f32 %v8048_v7, %v4883_v43  ;;  %v8001_v50 = vpop.f32.mrf.mxu0 }
 0x2b1   : > { %v8051_v58 = vpop.f32.mrf.mxu1  ;;  %6721 = vst.msk [vmem:[%s9452_s7 + $0x340] sm:$0xff] %vm264_vm1, %v5757_v29  ;;  %v5760_v26 = vmax.f32 %v5696_v27, %v5728_v55  ;;  %v5727_v45 = vmul.f32 0.2, %v5695_v32  ;;  %v5272_v19 = vadd.f32 %v5161_v4, %v4882_v34  ;;  %v4885_v20 = vadd.f32 %v8001_v50, %v11080_v31  ;;  %v11086_v27 = vld [vmem:[#allocation2_spill] sm:$0xff]  ;;  %v11087_v34 = vld [vmem:[#allocation4_spill] sm:$0xff] }
 0x2b2   : > { %v5698_v56 = vadd.f32 %v10518_v54, %v5273_v13  ;;  %v4781_v42 = vpop.f32.mrf.mxu0 }
 0x2b3   : > { %v5171_v35 = vpop.f32.mrf.mxu1  ;;  %6724 = vst.msk [vmem:[%s9452_s7 + $0x358] sm:$0xff] %vm264_vm1, %v5760_v26  ;;  %v5759_v0 = vmax.f32 %v5695_v32, %v5727_v45  ;;  %v5697_v44 = vadd.f32 %v10518_v54, %v5272_v19  ;;  %v5275_v14 = vadd.f32 %v8051_v58, %v4885_v20  ;;  %v4884_v30 = vadd.f32 %v4781_v42, %v11081_v12 }
 0x2b4   : > { %v5730_v36 = vmul.f32 0.2, %v5698_v56  ;;  %v8004_v47 = vpop.f32.mrf.mxu0 }
 0x2b5   : > { %v8054_v8 = vpop.f32.mrf.mxu1  ;;  %6723 = vst.msk [vmem:[%s9452_s7 + $0x350] sm:$0xff] %vm264_vm1, %v5759_v0  ;;  %v5729_v25 = vmul.f32 0.2, %v5697_v44  ;;  %v5700_v28 = vadd.f32 %v10518_v54, %v5275_v14  ;;  %v5274_v40 = vadd.f32 %v5171_v35, %v4884_v30  ;;  %v4887_v6 = vadd.f32 %v8004_v47, %v11082_v11  ;;  %v11089_v30 = vld [vmem:[#allocation13_spill] sm:$0xff] }
 0x2b6   : > { %v5762_v9 = vmax.f32 %v5698_v56, %v5730_v36  ;;  %v4791_v15 = vpop.f32.mrf.mxu0  ;;  %v11088_v56 = vld [vmem:[#allocation3_spill] sm:$0xff] }
 0x2b7   : > { %v5181_v48 = vpop.f32.mrf.mxu1  ;;  %v5761_v49 = vmax.f32 %v5697_v44, %v5729_v25  ;;  %v5732_v2 = vmul.f32 0.2, %v5700_v28  ;;  %v5699_v22 = vadd.f32 %v10518_v54, %v5274_v40  ;;  %v5277_v5 = vadd.f32 %v8054_v8, %v4887_v6  ;;  %v11090_v6 = vld [vmem:[#allocation5_spill] sm:$0xff] }
 0x2b8   : > { %6726 = vst.msk [vmem:[%s9452_s7 + $0x368] sm:$0xff] %vm264_vm1, %v5762_v9  ;;  %v4886_v24 = vadd.f32 %v4791_v15, %v11083_v10  ;;  %v8007_v53 = vpop.f32.mrf.mxu0  ;;  %v11091_v10 = vld [vmem:[#allocation14_spill] sm:$0xff] }
 0x2b9   : > { %v8057_v23 = vpop.f32.mrf.mxu1  ;;  %6725 = vst.msk [vmem:[%s9452_s7 + $0x360] sm:$0xff] %vm264_vm1, %v5761_v49  ;;  %v5764_v21 = vmax.f32 %v5700_v28, %v5732_v2  ;;  %v5731_v60 = vmul.f32 0.2, %v5699_v22  ;;  %v5702_v18 = vadd.f32 %v10518_v54, %v5277_v5  ;;  %v4889_v63 = vadd.f32 %v8007_v53, %v11084_v51 }
 0x2ba   : > { %v5276_v17 = vadd.f32 %v5181_v48, %v4886_v24  ;;  %v4801_v16 = vpop.f32.mrf.mxu0 }
 0x2bb   : > { %v5191_v62 = vpop.f32.mrf.mxu1  ;;  %6728 = vst.msk [vmem:[%s9452_s7 + $0x378] sm:$0xff] %vm264_vm1, %v5764_v21  ;;  %v5763_v39 = vmax.f32 %v5699_v22, %v5731_v60  ;;  %v5734_v37 = vmul.f32 0.2, %v5702_v18  ;;  %v5279_v38 = vadd.f32 %v8057_v23, %v4889_v63  ;;  %v4888_v41 = vadd.f32 %v4801_v16, %v11085_v1  ;;  %v11092_v63 = vld [vmem:[#allocation34_spill] sm:$0xff] }
 0x2bc   : > { %v5701_v59 = vadd.f32 %v10518_v54, %v5276_v17  ;;  %v8010_v52 = vpop.f32.mrf.mxu0 }
 0x2bd   : > { %v8060_v3 = vpop.f32.mrf.mxu1  ;;  %6727 = vst.msk [vmem:[%s9452_s7 + $0x370] sm:$0xff] %vm264_vm1, %v5763_v39  ;;  %v5766_v7 = vmax.f32 %v5702_v18, %v5734_v37  ;;  %v5704_v61 = vadd.f32 %v10518_v54, %v5279_v38  ;;  %v5278_v33 = vadd.f32 %v5191_v62, %v4888_v41  ;;  %v4891_v57 = vadd.f32 %v8010_v52, %v11086_v27 }
 0x2be   : > { %v5733_v43 = vmul.f32 0.2, %v5701_v59  ;;  %v4811_v46 = vpop.f32.mrf.mxu0 }
 0x2bf   : > { %v5201_v4 = vpop.f32.mrf.mxu1  ;;  %6730 = vst.msk [vmem:[%s9452_s7 + $0x388] sm:$0xff] %vm264_vm1, %v5766_v7  ;;  %v5736_v29 = vmul.f32 0.2, %v5704_v61  ;;  %v5703_v55 = vadd.f32 %v10518_v54, %v5278_v33  ;;  %v5281_v32 = vadd.f32 %v8060_v3, %v4891_v57  ;;  %v4890_v13 = vadd.f32 %v4811_v46, %v11087_v34  ;;  %v11094_v57 = vld [vmem:[#allocation15_spill] sm:$0xff] }
 0x2c0   : > { %v5765_v50 = vmax.f32 %v5701_v59, %v5733_v43  ;;  %v8013_v58 = vpop.f32.mrf.mxu0  ;;  %v11093_v59 = vld [vmem:[#allocation33_spill] sm:$0xff] }
 0x2c1   : > { %v8063_v26 = vpop.f32.mrf.mxu1  ;;  %v5768_v45 = vmax.f32 %v5704_v61, %v5736_v29  ;;  %v5735_v19 = vmul.f32 0.2, %v5703_v55  ;;  %v5706_v31 = vadd.f32 %v10518_v54, %v5281_v32  ;;  %v5280_v20 = vadd.f32 %v5201_v4, %v4890_v13  ;;  %v11095_v13 = vld [vmem:[#allocation8_spill] sm:$0xff] }
 0x2c2   : > { %6729 = vst.msk [vmem:[%s9452_s7 + $0x380] sm:$0xff] %vm264_vm1, %v5765_v50  ;;  %v4893_v42 = vadd.f32 %v8013_v58, %v11088_v56  ;;  %v4821_v35 = vpop.f32.mrf.mxu0  ;;  %v11096_v56 = vld [vmem:[#allocation32_spill] sm:$0xff] }
 0x2c3   : > { %v5211_v0 = vpop.f32.mrf.mxu1  ;;  %6732 = vst.msk [vmem:[%s9452_s7 + $0x398] sm:$0xff] %vm264_vm1, %v5768_v45  ;;  %v5767_v44 = vmax.f32 %v5703_v55, %v5735_v19  ;;  %v5738_v14 = vmul.f32 0.2, %v5706_v31  ;;  %v5705_v12 = vadd.f32 %v10518_v54, %v5280_v20  ;;  %v4892_v36 = vadd.f32 %v4821_v35, %v11089_v30  ;;  %v11097_v30 = vld [vmem:[#allocation7_spill] sm:$0xff] }
 0x2c4   : > { %v5283_v47 = vadd.f32 %v8063_v26, %v4893_v42  ;;  %v8016_v8 = vpop.f32.mrf.mxu0 }
 0x2c5   : > { %v8066_v25 = vpop.f32.mrf.mxu1  ;;  %6731 = vst.msk [vmem:[%s9452_s7 + $0x390] sm:$0xff] %vm264_vm1, %v5767_v44  ;;  %v5770_v28 = vmax.f32 %v5706_v31, %v5738_v14  ;;  %v5737_v40 = vmul.f32 0.2, %v5705_v12  ;;  %v5282_v11 = vadd.f32 %v5211_v0, %v4892_v36  ;;  %v4895_v9 = vadd.f32 %v8016_v8, %v11090_v6 }
 0x2c6   : > { %v5708_v15 = vadd.f32 %v10518_v54, %v5283_v47  ;;  %v4831_v48 = vpop.f32.mrf.mxu0 }
 0x2c7   : > { %v5221_v49 = vpop.f32.mrf.mxu1  ;;  %6734 = vst.msk [vmem:[%s9452_s7 + $0x3a8] sm:$0xff] %vm264_vm1, %v5770_v28  ;;  %v5769_v2 = vmax.f32 %v5705_v12, %v5737_v40  ;;  %v5707_v22 = vadd.f32 %v10518_v54, %v5282_v11  ;;  %v5285_v5 = vadd.f32 %v8066_v25, %v4895_v9  ;;  %v4894_v24 = vadd.f32 %v4831_v48, %v11091_v10 }
 0x2c8   : > { %v5740_v53 = vmul.f32 0.2, %v5708_v15  ;;  %v8019_v23 = vpop.f32.mrf.mxu0 }
 0x2c9   : > { %v8069_v21 = vpop.f32.mrf.mxu1  ;;  %6733 = vst.msk [vmem:[%s9452_s7 + $0x3a0] sm:$0xff] %vm264_vm1, %v5769_v2  ;;  %v5739_v60 = vmul.f32 0.2, %v5707_v22  ;;  %v5710_v18 = vadd.f32 %v10518_v54, %v5285_v5  ;;  %v5284_v51 = vadd.f32 %v5221_v49, %v4894_v24  ;;  %v4897_v17 = vadd.f32 %v8019_v23, %v11092_v63 }
 0x2ca   : > { %v5772_v16 = vmax.f32 %v5708_v15, %v5740_v53  ;;  %v4841_v62 = vpop.f32.mrf.mxu0 }
 0x2cb   : > { %v5231_v39 = vpop.f32.mrf.mxu1  ;;  %v5771_v37 = vmax.f32 %v5707_v22, %v5739_v60  ;;  %v5742_v38 = vmul.f32 0.2, %v5710_v18  ;;  %v5709_v1 = vadd.f32 %v10518_v54, %v5284_v51  ;;  %v5287_v41 = vadd.f32 %v8069_v21, %v4897_v17 }
 0x2cc   : > { %6736 = vst.msk [vmem:[%s9452_s7 + $0x3b8] sm:$0xff] %vm264_vm1, %v5772_v16  ;;  %v4896_v52 = vadd.f32 %v4841_v62, %v11093_v59  ;;  %v8022_v3 = vpop.f32.mrf.mxu0 }
 0x2cd   : > { %v8072_v7 = vpop.f32.mrf.mxu1  ;;  %6735 = vst.msk [vmem:[%s9452_s7 + $0x3b0] sm:$0xff] %vm264_vm1, %v5771_v37  ;;  %v5774_v61 = vmax.f32 %v5710_v18, %v5742_v38  ;;  %v5741_v33 = vmul.f32 0.2, %v5709_v1  ;;  %v5712_v27 = vadd.f32 %v10518_v54, %v5287_v41  ;;  %v4899_v43 = vadd.f32 %v8022_v3, %v11094_v57 }
 0x2ce   : > { %v5286_v46 = vadd.f32 %v5231_v39, %v4896_v52  ;;  %v4851_v4 = vpop.f32.mrf.mxu0 }
 0x2cf   : > { %v5241_v29 = vpop.f32.mrf.mxu1  ;;  %6738 = vst.msk [vmem:[%s9452_s7 + $0x3c8] sm:$0xff] %vm264_vm1, %v5774_v61  ;;  %v5773_v55 = vmax.f32 %v5709_v1, %v5741_v33  ;;  %v5744_v32 = vmul.f32 0.2, %v5712_v27  ;;  %v5289_v34 = vadd.f32 %v8072_v7, %v4899_v43  ;;  %v4898_v50 = vadd.f32 %v4851_v4, %v11095_v13 }
 0x2d0   : > { %v5711_v58 = vadd.f32 %v10518_v54, %v5286_v46  ;;  %v8025_v26 = vpop.f32.mrf.mxu0 }
 0x2d1   : > { %v8075_v45 = vpop.f32.mrf.mxu1  ;;  %6737 = vst.msk [vmem:[%s9452_s7 + $0x3c0] sm:$0xff] %vm264_vm1, %v5773_v55  ;;  %v5776_v19 = vmax.f32 %v5712_v27, %v5744_v32  ;;  %v5714_v31 = vadd.f32 %v10518_v54, %v5289_v34  ;;  %v5288_v20 = vadd.f32 %v5241_v29, %v4898_v50  ;;  %v4901_v42 = vadd.f32 %v8025_v26, %v11096_v56 }
 0x2d2   : > { %v5743_v35 = vmul.f32 0.2, %v5711_v58  ;;  %v4861_v0 = vpop.f32.mrf.mxu0 }
 0x2d3   : > { %6740 = vst.msk [vmem:[%s9452_s7 + $0x3d8] sm:$0xff] %vm264_vm1, %v5776_v19  ;;  %v5746_v44 = vmul.f32 0.2, %v5714_v31  ;;  %v5713_v14 = vadd.f32 %v10518_v54, %v5288_v20  ;;  %v5291_v12 = vadd.f32 %v8075_v45, %v4901_v42  ;;  %v4900_v36 = vadd.f32 %v4861_v0, %v11097_v30  ;;  %v5251_v8 = vpop.f32.mrf.mxu1 }
 0x2d4   : > { %v5775_v47 = vmax.f32 %v5711_v58, %v5743_v35 }
 0x2d5   : > { %v5778_v25 = vmax.f32 %v5714_v31, %v5746_v44  ;;  %v5745_v28 = vmul.f32 0.2, %v5713_v14  ;;  %v5716_v40 = vadd.f32 %v10518_v54, %v5291_v12  ;;  %v5290_v11 = vadd.f32 %v5251_v8, %v4900_v36 }
 0x2d6   : > { %6739 = vst.msk [vmem:[%s9452_s7 + $0x3d0] sm:$0xff] %vm264_vm1, %v5775_v47 }
 0x2d7   : > { %6742 = vst.msk [vmem:[%s9452_s7 + $0x3e8] sm:$0xff] %vm264_vm1, %v5778_v25  ;;  %v5777_v6 = vmax.f32 %v5713_v14, %v5745_v28  ;;  %v5748_v9 = vmul.f32 0.2, %v5716_v40  ;;  %v5715_v15 = vadd.f32 %v10518_v54, %v5290_v11 }
 0x2d9   : > { %6741 = vst.msk [vmem:[%s9452_s7 + $0x3e0] sm:$0xff] %vm264_vm1, %v5777_v6  ;;  %v5780_v48 = vmax.f32 %v5716_v40, %v5748_v9  ;;  %v5747_v49 = vmul.f32 0.2, %v5715_v15 }
 0x2db   : > { %6744 = vst.msk [vmem:[%s9452_s7 + $0x3f8] sm:$0xff] %vm264_vm1, %v5780_v48  ;;  %v5779_v2 = vmax.f32 %v5715_v15, %v5747_v49 }
 0x2dd   : > { %6743 = vst.msk [vmem:[%s9452_s7 + $0x3f0] sm:$0xff] %vm264_vm1, %v5779_v2 }
 0x2de PF: > { %s13_s14 = sadd.s32 1, %s8183_s14   ;;  %s11098_s12 = smov %s8179_s13 }
 0x2df   : > { %p10_p5 = scmp.ge.s32.totalorder %s13_s14, 4   ;;  %s11099_s13 = smov %s11101_s15 }
 0x2e1   :  { %12 = sbr.rel (!%p10_p5) target bundleno = 2 (0x2), region = 83 }

</bundles_post_ra>
